<compile_context>
chip_gen: v6e
topology: v6e:2x2x1
jax: 0.10.0
libtpu: 0.0.40
codegen_flags: <defaults>
</compile_context>

<pallas_src>
import functools
import math

import jax
import jax.numpy as jnp
import numpy as np
from jax.experimental import pallas as pl
from jax.experimental.pallas import tpu as pltpu


# -----------------------------------------------------------------------------
# Helpers (plain-JAX / numpy glue)
# -----------------------------------------------------------------------------
def _round_up(x, m):
    return ((x + m - 1) // m) * m


def _make_positions(inp, padding_idx):
    """fairseq make_positions: count non-pad tokens, pads map to padding_idx."""
    mask = (inp != padding_idx).astype(jnp.int32)
    return jnp.cumsum(mask, axis=1) * mask + padding_idx


def _inv_freqs(embedding_dim, div_half_dim):
    half = embedding_dim // 2
    denom = half if div_half_dim else (half - 1)
    scale = math.log(10000.0) / denom
    return np.exp(np.arange(half, dtype=np.float32) * np.float32(-scale))


def _min_splits(num_batches):
    # v7x megacore: aim for >= 4 total grid points so both TensorCores get work.
    return max(1, -(-4 // max(1, int(num_batches))))


def _pick_tile(n, mult, bytes_per_unit, budget_bytes, min_splits=1):
    """Choose a tile along an axis of extent `n`.

    Returns (tile, exact): `tile` is a multiple of `mult` (or the full extent),
    `exact` says whether it divides `n` (otherwise the caller uses a pl.cdiv
    grid and relies on Pallas block boundary handling).  `bytes_per_unit` must
    already account for lane/sublane padding of the block.
    """
    n = int(n)
    if n <= mult:
        return n, True
    cap = max(1, budget_bytes // max(1, bytes_per_unit))
    cap = (min(cap, n) // mult) * mult
    if cap < mult:
        cap = mult  # smallest legal tile, even if (slightly) over budget
    # Megacore: prefer >= min_splits tiles along this axis when the resulting
    # block stays reasonably sized (>= 256 KiB).
    if min_splits > 1:
        split_cap = ((n // min_splits) // mult) * mult
        if split_cap >= mult and split_cap * bytes_per_unit >= (256 << 10):
            cap = min(cap, split_cap)
    # Largest multiple of `mult` <= cap dividing n exactly.
    for t in range(cap, mult - 1, -mult):
        if n % t == 0:
            return t, True
    # n is not a multiple of mult: whole extent if it fits, else cdiv grid.
    if n * bytes_per_unit <= budget_bytes:
        return n, True
    return cap, False


# -----------------------------------------------------------------------------
# Pallas kernels
# -----------------------------------------------------------------------------
def _spe1d_kernel(freq_ref, pos_ref, out_ref, *, padding_idx):
    """1D SPE: (b, seq, E) output, one fused store per tile.

    freq_ref: (1, half) f32, pos_ref: (1, TS, 1) f32, out_ref: (1, TS, E).
    sin/cos halves are concatenated along lanes (XLU slot, free in this
    store-bound kernel) so the row store is a single — unmasked when E >= 128 —
    vst instead of two masked half-width ones.
    """
    pos = pos_ref[0]                                           # (TS, 1)
    mask = (pos != jnp.float32(padding_idx)).astype(jnp.float32)
    ph = pos * freq_ref[...]                                   # (TS, half) dense
    emb = jnp.concatenate([jnp.sin(ph), jnp.cos(ph)], axis=-1) * mask
    # TODO(synk): for E < 128 this single store is still lane-masked; a fully
    # lane-packed (b, s*E/128, 128) variant needs an in-kernel cross-lane
    # relayout and is left out for lowering robustness.
    out_ref[0] = emb.astype(out_ref.dtype)


def _spe2d_grid_kernel(freq_ref, pos_x_ref, pos_y_ref, out_ref, *, padding_idx):
    """2D SPE tile with the natural (TH, TW) block (dense when TW % 128 == 0).

    freq_ref:  (half, 1, 1) f32
    pos_x_ref: (1, 1, TW)   f32   positions along width (this column-tile)
    pos_y_ref: (1, TH, 1)   f32   positions along height (this row-tile)
    out_ref:   (1, 2E, TH, TW)    channels [0:half)=sin_x, [half:E)=cos_x,
                                           [E:E+half)=sin_y, [E+half:2E)=cos_y
    Transcendentals are O(half*(TW+TH)) per block (amortized over O(E*TH*TW)
    output bytes); casts happen on the small slabs before broadcast.
    """
    half = freq_ref.shape[0]
    E = 2 * half
    TH = pos_y_ref.shape[1]
    TW = pos_x_ref.shape[2]
    dt = out_ref.dtype
    pad = jnp.float32(padding_idx)
    f = freq_ref[...]                                          # (half, 1, 1)

    # x-embedding: constant over rows -> sublane broadcast of a (half,1,TW) slab.
    px = pos_x_ref[...]                                        # (1, 1, TW)
    mx = (px != pad).astype(jnp.float32)
    phx = f * px                                               # (half, 1, TW)
    sx = (jnp.sin(phx) * mx).astype(dt)
    cx = (jnp.cos(phx) * mx).astype(dt)
    out_ref[0, 0:half] = jnp.broadcast_to(sx, (half, TH, TW))
    out_ref[0, half:E] = jnp.broadcast_to(cx, (half, TH, TW))

    # y-embedding: constant over columns -> lane broadcast of a (half,TH,1) slab.
    py = pos_y_ref[...]                                        # (1, TH, 1)
    my = (py != pad).astype(jnp.float32)
    phy = f * py                                               # (half, TH, 1)
    sy = (jnp.sin(phy) * my).astype(dt)
    cy = (jnp.cos(phy) * my).astype(dt)
    out_ref[0, E:E + half] = jnp.broadcast_to(sy, (half, TH, TW))
    out_ref[0, E + half:] = jnp.broadcast_to(cy, (half, TH, TW))


def _spe2d_folded_kernel(freq_ref, xpat_ref, yfold_ref, out_ref, *, padding_idx):
    """2D SPE tile over the folded (h*w) axis: every store is a full 128-lane vst.

    Requires w | 128 and (h*w) % 128 == 0 (checked by the wrapper).
    freq_ref:  (half, 1, 1) f32
    xpat_ref:  (1, 1, 128)  f32  x positions tiled to one 128-lane vreg row
                                 (identical for every folded row since w | 128)
    yfold_ref: (1, Rt, 128) f32  y positions pre-expanded to the folded layout
    out_ref:   (1, 2E, Rt, 128)
    """
    half = freq_ref.shape[0]
    E = 2 * half
    Rt = yfold_ref.shape[1]
    dt = out_ref.dtype
    pad = jnp.float32(padding_idx)
    f = freq_ref[...]                                          # (half, 1, 1)

    # x channels: one 128-lane pattern, sublane-broadcast over the Rt rows
    # (transcendentals fully amortized: O(half*128) per block).
    px = xpat_ref[...]                                         # (1, 1, 128)
    mx = (px != pad).astype(jnp.float32)
    phx = f * px                                               # (half, 1, 128)
    sx = (jnp.sin(phx) * mx).astype(dt)
    cx = (jnp.cos(phx) * mx).astype(dt)
    out_ref[0, 0:half] = jnp.broadcast_to(sx, (half, Rt, 128))
    out_ref[0, half:E] = jnp.broadcast_to(cx, (half, Rt, 128))

    # y channels: positions arrive pre-expanded; per-element sin/cos (VPU/EUP
    # have slack in this store-bound kernel) keeps all stores lane-dense
    # without any in-kernel cross-lane relayout.
    py = yfold_ref[...]                                        # (1, Rt, 128)
    my = (py != pad).astype(jnp.float32)
    phy = f * py                                               # (half, Rt, 128)
    out_ref[0, E:E + half] = (jnp.sin(phy) * my).astype(dt)
    out_ref[0, E + half:] = (jnp.cos(phy) * my).astype(dt)


# -----------------------------------------------------------------------------
# Module wrapper
# -----------------------------------------------------------------------------
class SinusoidalPositionalEmbedding:
    def __init__(self, embedding_dim, padding_idx, init_size=1024,
                 div_half_dim=False, center_shift=None, block_bytes=None):
        assert embedding_dim % 2 == 0, "embedding_dim must be divisible by 2"
        self.embedding_dim = embedding_dim
        self.padding_idx = padding_idx
        self.div_half_dim = div_half_dim
        self.center_shift = center_shift

        # Scoped VMEM request: ~3/4 of physical (48 MiB on v7x, 96 MiB on
        # v5e/v6e).  Per-output-block budget defaults to 8 MiB; double-buffered
        # that is well inside the limit on every generation.
        try:
            vmem_cap = int(pltpu.get_tpu_info().vmem_capacity_bytes)
        except Exception:
            vmem_cap = 64 << 20
        self.vmem_limit_bytes = int(min(vmem_cap * 3 // 4, 96 << 20))
        if block_bytes is None:
            block_bytes = 8 << 20
        self.block_bytes = int(min(block_bytes, self.vmem_limit_bytes // 4))

        # Deterministic "parameters": the sinusoid frequencies (the torch table
        # is a pure function of these).  Kept as a tiny kernel input for exact
        # numerical parity with the torch table.
        self.freqs = jnp.asarray(_inv_freqs(embedding_dim, div_half_dim))
        # TODO(synk): the torch module lazily regrows self.weights when
        # max_pos > init_size; unnecessary here since sin/cos are computed
        # analytically in-kernel (numerically identical).

    # ---- forward dispatch (mirrors torch forward) ----------------------------
    def __call__(self, x, **kwargs):
        assert x.ndim in (2, 4), "Input dimension should be 2 (1D) or 4 (2D)"
        if x.ndim == 4:
            return self.make_grid2d_like(x, **kwargs)
        return self._forward_1d(x)

    def _compiler_params(self, n_axes):
        return pltpu.CompilerParams(
            dimension_semantics=("parallel",) * n_axes,
            vmem_limit_bytes=self.vmem_limit_bytes)

    # ---- 1D path: (b, seq) -> (b, seq, emb_dim) f32 ---------------------------
    def _forward_1d(self, inp):
        b, s = inp.shape
        E = self.embedding_dim
        half = E // 2
        positions = _make_positions(inp, self.padding_idx).astype(jnp.float32)
        pos = positions.reshape(b, s, 1)

        # Per-seq-row padded VMEM bytes: output row (E lanes padded to >=128)
        # plus the (lane-padded) position row.
        unit = (_round_up(E, 128) + 128) * 4
        ts, exact = _pick_tile(s, 8, unit, self.block_bytes,
                               min_splits=_min_splits(b))
        gs = s // ts if exact else pl.cdiv(s, ts)

        kernel = functools.partial(_spe1d_kernel, padding_idx=self.padding_idx)
        return pl.pallas_call(
            kernel,
            out_shape=jax.ShapeDtypeStruct((b, s, E), jnp.float32),
            grid=(b, gs),
            in_specs=[
                pl.BlockSpec((1, half), lambda i, t: (0, 0)),
                pl.BlockSpec((1, ts, 1), lambda i, t: (i, t, 0)),
            ],
            out_specs=pl.BlockSpec((1, ts, E), lambda i, t: (i, t, 0)),
            compiler_params=self._compiler_params(2),
        )(self.freqs.reshape(1, half), pos)

    # ---- 2D path --------------------------------------------------------------
    def make_grid2d(self, height, width, num_batches=1, center_shift=None,
                    out_dtype=jnp.float32):
        h, w = int(height), int(width)
        if center_shift is None:
            center_shift = self.center_shift
        h_shift = 0
        w_shift = 0
        if center_shift is not None:
            h_shift = center_shift - (h // 2 if h % 2 == 0 else h // 2 + 1)
            w_shift = center_shift - (w // 2 if w % 2 == 0 else w // 2 + 1)

        nb = int(num_batches)
        x_axis = jnp.tile(jnp.arange(1, w + 1, dtype=jnp.int32)[None, :],
                          (nb, 1)) + w_shift
        y_axis = jnp.tile(jnp.arange(1, h + 1, dtype=jnp.int32)[None, :],
                          (nb, 1)) + h_shift
        pos_x = _make_positions(x_axis, self.padding_idx).astype(jnp.float32)  # (nb, w)
        pos_y = _make_positions(y_axis, self.padding_idx).astype(jnp.float32)  # (nb, h)

        E = self.embedding_dim
        half = E // 2
        isz = np.dtype(out_dtype).itemsize
        sub_mult = max(8, 32 // isz)          # 8 for f32, 16 for bf16, ...
        ms = _min_splits(nb)
        freqs3 = self.freqs.reshape(half, 1, 1)

        use_folded = (w % 128 != 0) and (128 % w == 0) and ((h * w) % 128 == 0)

        if use_folded:
            # ---- folded lane-dense path (narrow w): out (nb, 2E, h*w/128, 128)
            R = (h * w) // 128
            xpat = jnp.tile(pos_x, (1, 128 // w)).reshape(nb, 1, 128)
            yfold = jnp.repeat(pos_y, w, axis=1).reshape(nb, R, 128)
            rt, exact = _pick_tile(R, sub_mult, 2 * E * 128 * isz,
                                   self.block_bytes, ms)
            gr = R // rt if exact else pl.cdiv(R, rt)

            kernel = functools.partial(_spe2d_folded_kernel,
                                       padding_idx=self.padding_idx)
            out = pl.pallas_call(
                kernel,
                out_shape=jax.ShapeDtypeStruct((nb, 2 * E, R, 128), out_dtype),
                grid=(nb, gr),
                in_specs=[
                    pl.BlockSpec((half, 1, 1), lambda i, t: (0, 0, 0)),
                    pl.BlockSpec((1, 1, 128), lambda i, t: (i, 0, 0)),
                    pl.BlockSpec((1, rt, 128), lambda i, t: (i, t, 0)),
                ],
                out_specs=pl.BlockSpec((1, 2 * E, rt, 128),
                                       lambda i, t: (i, 0, t, 0)),
                compiler_params=self._compiler_params(2),
            )(freqs3, xpat, yfold)
            # Same contiguity as NCHW -> free metadata reshape.
            return out.reshape(nb, 2 * E, h, w)

        # ---- natural (TH, TW) path: dense when w % 128 == 0, else full-w fallback
        if w % 128 == 0:
            tw, tw_exact = _pick_tile(w, 128, 2 * E * sub_mult * isz,
                                      self.block_bytes, 1)
        else:
            tw, tw_exact = w, True
        th_unit = 2 * E * _round_up(tw, 128) * isz   # padded lane bytes per h-row
        th, th_exact = _pick_tile(h, sub_mult, th_unit, self.block_bytes, ms)
        gw = w // tw if tw_exact else pl.cdiv(w, tw)
        gh = h // th if th_exact else pl.cdiv(h, th)

        pos_x3 = pos_x.reshape(nb, 1, w)
        pos_y3 = pos_y.reshape(nb, h, 1)
        kernel = functools.partial(_spe2d_grid_kernel,
                                   padding_idx=self.padding_idx)
        return pl.pallas_call(
            kernel,
            out_shape=jax.ShapeDtypeStruct((nb, 2 * E, h, w), out_dtype),
            grid=(nb, gh, gw),
            in_specs=[
                pl.BlockSpec((half, 1, 1), lambda i, t, u: (0, 0, 0)),
                pl.BlockSpec((1, 1, tw), lambda i, t, u: (i, 0, u)),
                pl.BlockSpec((1, th, 1), lambda i, t, u: (i, t, 0)),
            ],
            out_specs=pl.BlockSpec((1, 2 * E, th, tw),
                                   lambda i, t, u: (i, 0, t, u)),
            compiler_params=self._compiler_params(3),
        )(freqs3, pos_x3, pos_y3)

    def make_grid2d_like(self, x, center_shift=None):
        h, w = x.shape[-2:]
        return self.make_grid2d(h, w, x.shape[0], center_shift,
                                out_dtype=x.dtype)


# -----------------------------------------------------------------------------
# Pure numpy reference (faithful translation of the torch module) for checking
# -----------------------------------------------------------------------------
def _np_get_embedding(num, dim, padding_idx, div_half_dim=False):
    half = dim // 2
    inv_f = _inv_freqs(dim, div_half_dim)
    emb = np.arange(num, dtype=np.float32)[:, None] * inv_f[None, :]
    emb = np.concatenate([np.sin(emb), np.cos(emb)], axis=1).astype(np.float32)
    if padding_idx is not None:
        emb[padding_idx, :] = 0
    return emb


def _np_forward_1d(inp, dim, padding_idx, div_half_dim=False):
    b, s = inp.shape
    max_pos = padding_idx + 1 + s
    table = _np_get_embedding(max(1024, max_pos), dim, padding_idx, div_half_dim)
    mask = (inp != padding_idx).astype(np.int64)
    positions = np.cumsum(mask, axis=1) * mask + padding_idx
    return table[positions.reshape(-1)].reshape(b, s, dim)


def _np_forward_2d(x, dim, padding_idx, center_shift=None, div_half_dim=False):
    b = x.shape[0]
    h, w = x.shape[-2:]
    h_shift = w_shift = 0
    if center_shift is not None:
        h_shift = center_shift - (h // 2 if h % 2 == 0 else h // 2 + 1)
        w_shift = center_shift - (w // 2 if w % 2 == 0 else w // 2 + 1)
    x_axis = np.tile(np.arange(1, w + 1)[None, :], (b, 1)) + w_shift
    y_axis = np.tile(np.arange(1, h + 1)[None, :], (b, 1)) + h_shift
    x_emb = _np_forward_1d(x_axis, dim, padding_idx, div_half_dim).transpose(0, 2, 1)
    y_emb = _np_forward_1d(y_axis, dim, padding_idx, div_half_dim).transpose(0, 2, 1)
    x_grid = np.repeat(x_emb[:, :, None, :], h, axis=2)
    y_grid = np.repeat(y_emb[:, :, :, None], w, axis=3)
    return np.concatenate([x_grid, y_grid], axis=1).astype(x.dtype)


# -----------------------------------------------------------------------------
# Main
# -----------------------------------------------------------------------------
if __name__ == "__main__":
    key = jax.random.PRNGKey(0)
    k1, k2, k3, k4, k5 = jax.random.split(key, 5)
    pad_idx = 0

    # --- 2D (SPE2d), narrow w=16 -> folded lane-dense path ---------------------
    emb_dim = 16
    spe = SinusoidalPositionalEmbedding(embedding_dim=emb_dim, padding_idx=pad_idx)
    x = jax.random.normal(k1, (2, 4, 16, 16), dtype=jnp.float32)
    out2d = jax.block_until_ready(spe(x))
    assert out2d.shape == (2, 2 * emb_dim, 16, 16)
    ref2d = _np_forward_2d(np.asarray(x), emb_dim, pad_idx)
    np.testing.assert_allclose(np.asarray(out2d), ref2d, atol=1e-4, rtol=1e-4)

    # --- 2D, w=128 -> dense natural-block path ---------------------------------
    x_w128 = jax.random.normal(k1, (1, 2, 16, 128), dtype=jnp.float32)
    out_w128 = jax.block_until_ready(spe(x_w128))
    assert out_w128.shape == (1, 2 * emb_dim, 16, 128)
    ref_w128 = _np_forward_2d(np.asarray(x_w128), emb_dim, pad_idx)
    np.testing.assert_allclose(np.asarray(out_w128), ref_w128, atol=1e-4, rtol=1e-4)

    # --- 2D, odd w=24 -> full-w fallback path -----------------------------------
    x_w24 = jax.random.normal(k2, (1, 2, 16, 24), dtype=jnp.float32)
    out_w24 = jax.block_until_ready(spe(x_w24))
    assert out_w24.shape == (1, 2 * emb_dim, 16, 24)
    ref_w24 = _np_forward_2d(np.asarray(x_w24), emb_dim, pad_idx)
    np.testing.assert_allclose(np.asarray(out_w24), ref_w24, atol=1e-4, rtol=1e-4)

    # --- 2D, bf16 output (cast on small slabs before broadcast) -----------------
    x_bf = jax.random.normal(k2, (1, 3, 32, 128), dtype=jnp.bfloat16)
    out_bf = jax.block_until_ready(spe(x_bf))
    assert out_bf.dtype == jnp.bfloat16
    ref_bf = _np_forward_2d(np.asarray(x_bf).astype(np.float32), emb_dim, pad_idx)
    np.testing.assert_allclose(np.asarray(out_bf).astype(np.float32), ref_bf,
                               atol=2e-2, rtol=2e-2)

    # --- 1D, small E (single fused store; no wrapper transpose round trip) ------
    tokens = jax.random.randint(k2, (2, 8), 0, 10, dtype=jnp.int32)
    out1d = jax.block_until_ready(spe(tokens))
    assert out1d.shape == (2, 8, emb_dim)
    ref1d = _np_forward_1d(np.asarray(tokens), emb_dim, pad_idx)
    np.testing.assert_allclose(np.asarray(out1d), ref1d, atol=1e-4, rtol=1e-4)

    # --- 1D, E=128 (single full-width unmasked store per row) -------------------
    emb_big = 128
    spe_big = SinusoidalPositionalEmbedding(embedding_dim=emb_big, padding_idx=pad_idx)
    tokens_b = jax.random.randint(k3, (2, 24), 0, 20, dtype=jnp.int32)
    out1d_b = jax.block_until_ready(spe_big(tokens_b))
    assert out1d_b.shape == (2, 24, emb_big)
    ref1d_b = _np_forward_1d(np.asarray(tokens_b), emb_big, pad_idx)
    np.testing.assert_allclose(np.asarray(out1d_b), ref1d_b, atol=1e-4, rtol=1e-4)

    # --- 1D, seq not a multiple of 8 (full-extent block fallback) ---------------
    tokens_u = jax.random.randint(k5, (2, 20), 0, 15, dtype=jnp.int32)
    out1d_u = jax.block_until_ready(spe_big(tokens_u))
    assert out1d_u.shape == (2, 20, emb_big)
    ref1d_u = _np_forward_1d(np.asarray(tokens_u), emb_big, pad_idx)
    np.testing.assert_allclose(np.asarray(out1d_u), ref1d_u, atol=1e-4, rtol=1e-4)

    # --- force multi-tile grids (tiny block budget) ------------------------------
    spe_big_tiled = SinusoidalPositionalEmbedding(emb_big, pad_idx, block_bytes=8 * 1024)
    tokens_t = jax.random.randint(k4, (2, 64), 0, 50, dtype=jnp.int32)
    out_t = jax.block_until_ready(spe_big_tiled(tokens_t))        # grid (2, 8)
    ref_t = _np_forward_1d(np.asarray(tokens_t), emb_big, pad_idx)
    np.testing.assert_allclose(np.asarray(out_t), ref_t, atol=1e-4, rtol=1e-4)

    spe2_tiled = SinusoidalPositionalEmbedding(emb_dim, pad_idx, block_bytes=8 * 1024)
    x2 = jax.random.normal(k1, (1, 3, 256, 16), dtype=jnp.float32)
    out2d_t = jax.block_until_ready(spe2_tiled(x2))               # folded, grid (1, 4)
    assert out2d_t.shape == (1, 2 * emb_dim, 256, 16)
    ref2d_t = _np_forward_2d(np.asarray(x2), emb_dim, pad_idx)
    np.testing.assert_allclose(np.asarray(out2d_t), ref2d_t, atol=1e-4, rtol=1e-4)

    print("KERNEL_OK")
</pallas_src>

<mosaic_0001>
module attributes {stable_mosaic.version = 11 : i64} {
  func.func @_spe2d_folded_kernel(%arg0: i32, %arg1: i32, %arg2: memref<8x1x1xf32, #tpu.memory_space<vmem>>, %arg3: memref<1x1x128xf32, #tpu.memory_space<vmem>>, %arg4: memref<1x2x128xf32, #tpu.memory_space<vmem>>, %arg5: memref<1x32x2x128xf32, #tpu.memory_space<vmem>>) attributes {dimension_semantics = [#tpu.dimension_semantics<parallel>, #tpu.dimension_semantics<parallel>], iteration_bounds = array<i64: 2, 1>, scalar_prefetch = 0 : i64, scratch_operands = 0 : i64, tpu.core_type = #tpu.core_type<tc>, window_params = [{pipeline_mode = #tpu.pipeline_mode<synchronous>, transform_indices = @transform_0, window_bounds = array<i64: 8, 1, 1>}, {transform_indices = @transform_1, window_bounds = array<i64: 1, 1, 128>}, {transform_indices = @transform_2, window_bounds = array<i64: 1, 2, 128>}, {transform_indices = @transform_3, window_bounds = array<i64: 1, 32, 2, 128>}]} {
    %c0 = arith.constant 0 : index
    %c0_0 = arith.constant 0 : index
    %c0_1 = arith.constant 0 : index
    %0 = vector.load %arg2[%c0, %c0_0, %c0_1] : memref<8x1x1xf32, #tpu.memory_space<vmem>>, vector<8x1x1xf32>
    %c0_2 = arith.constant 0 : index
    %c0_3 = arith.constant 0 : index
    %c0_4 = arith.constant 0 : index
    %1 = vector.load %arg3[%c0_2, %c0_3, %c0_4] : memref<1x1x128xf32, #tpu.memory_space<vmem>>, vector<1x1x128xf32>
    %cst = arith.constant 0.000000e+00 : f32
    %2 = vector.broadcast %cst : f32 to vector<1x1x128xf32>
    %3 = arith.cmpf one, %1, %2 : vector<1x1x128xf32>
    %4 = arith.extui %3 : vector<1x1x128xi1> to vector<1x1x128xi32>
    %5 = arith.sitofp %4 : vector<1x1x128xi32> to vector<1x1x128xf32>
    %6 = vector.broadcast %0 : vector<8x1x1xf32> to vector<8x1x128xf32>
    %7 = vector.broadcast %1 : vector<1x1x128xf32> to vector<8x1x128xf32>
    %8 = arith.mulf %6, %7 : vector<8x1x128xf32>
    %9 = math.sin %8 : vector<8x1x128xf32>
    %10 = vector.broadcast %5 : vector<1x1x128xf32> to vector<8x1x128xf32>
    %11 = arith.mulf %9, %10 : vector<8x1x128xf32>
    %12 = math.cos %8 : vector<8x1x128xf32>
    %13 = vector.broadcast %5 : vector<1x1x128xf32> to vector<8x1x128xf32>
    %14 = arith.mulf %12, %13 : vector<8x1x128xf32>
    %15 = vector.shape_cast %11 : vector<8x1x128xf32> to vector<8x1x128xf32>
    %16 = vector.broadcast %15 : vector<8x1x128xf32> to vector<8x2x128xf32>
    %c0_5 = arith.constant 0 : index
    %c0_6 = arith.constant 0 : index
    %c0_7 = arith.constant 0 : index
    %c0_8 = arith.constant 0 : index
    %17 = vector.load %arg5[%c0_5, %c0_6, %c0_7, %c0_8] : memref<1x32x2x128xf32, #tpu.memory_space<vmem>>, vector<1x8x2x128xf32>
    %18 = vector.shape_cast %17 : vector<1x8x2x128xf32> to vector<8x2x128xf32>
    %19 = vector.shape_cast %16 : vector<8x2x128xf32> to vector<1x8x2x128xf32>
    tpu.vector_store %arg5[%c0_5, %c0_6, %c0_7, %c0_8], %19 {strides = array<i32>} : memref<1x32x2x128xf32, #tpu.memory_space<vmem>>, vector<1x8x2x128xf32>,
    %20 = vector.shape_cast %14 : vector<8x1x128xf32> to vector<8x1x128xf32>
    %21 = vector.broadcast %20 : vector<8x1x128xf32> to vector<8x2x128xf32>
    %c0_9 = arith.constant 0 : index
    %c8 = arith.constant 8 : index
    %c0_10 = arith.constant 0 : index
    %c0_11 = arith.constant 0 : index
    %22 = vector.load %arg5[%c0_9, %c8, %c0_10, %c0_11] : memref<1x32x2x128xf32, #tpu.memory_space<vmem>>, vector<1x8x2x128xf32>
    %23 = vector.shape_cast %22 : vector<1x8x2x128xf32> to vector<8x2x128xf32>
    %24 = vector.shape_cast %21 : vector<8x2x128xf32> to vector<1x8x2x128xf32>
    tpu.vector_store %arg5[%c0_9, %c8, %c0_10, %c0_11], %24 {strides = array<i32>} : memref<1x32x2x128xf32, #tpu.memory_space<vmem>>, vector<1x8x2x128xf32>,
    %c0_12 = arith.constant 0 : index
    %c0_13 = arith.constant 0 : index
    %c0_14 = arith.constant 0 : index
    %25 = vector.load %arg4[%c0_12, %c0_13, %c0_14] : memref<1x2x128xf32, #tpu.memory_space<vmem>>, vector<1x2x128xf32>
    %cst_15 = arith.constant 0.000000e+00 : f32
    %26 = vector.broadcast %cst_15 : f32 to vector<1x2x128xf32>
    %27 = arith.cmpf one, %25, %26 : vector<1x2x128xf32>
    %28 = arith.extui %27 : vector<1x2x128xi1> to vector<1x2x128xi32>
    %29 = arith.sitofp %28 : vector<1x2x128xi32> to vector<1x2x128xf32>
    %30 = vector.broadcast %0 : vector<8x1x1xf32> to vector<8x2x128xf32>
    %31 = vector.broadcast %25 : vector<1x2x128xf32> to vector<8x2x128xf32>
    %32 = arith.mulf %30, %31 : vector<8x2x128xf32>
    %33 = math.sin %32 : vector<8x2x128xf32>
    %34 = vector.broadcast %29 : vector<1x2x128xf32> to vector<8x2x128xf32>
    %35 = arith.mulf %33, %34 : vector<8x2x128xf32>
    %c0_16 = arith.constant 0 : index
    %c16 = arith.constant 16 : index
    %c0_17 = arith.constant 0 : index
    %c0_18 = arith.constant 0 : index
    %36 = vector.load %arg5[%c0_16, %c16, %c0_17, %c0_18] : memref<1x32x2x128xf32, #tpu.memory_space<vmem>>, vector<1x8x2x128xf32>
    %37 = vector.shape_cast %36 : vector<1x8x2x128xf32> to vector<8x2x128xf32>
    %38 = vector.shape_cast %35 : vector<8x2x128xf32> to vector<1x8x2x128xf32>
    tpu.vector_store %arg5[%c0_16, %c16, %c0_17, %c0_18], %38 {strides = array<i32>} : memref<1x32x2x128xf32, #tpu.memory_space<vmem>>, vector<1x8x2x128xf32>,
    %39 = math.cos %32 : vector<8x2x128xf32>
    %40 = vector.broadcast %29 : vector<1x2x128xf32> to vector<8x2x128xf32>
    %41 = arith.mulf %39, %40 : vector<8x2x128xf32>
    %c0_19 = arith.constant 0 : index
    %c24 = arith.constant 24 : index
    %c0_20 = arith.constant 0 : index
    %c0_21 = arith.constant 0 : index
    %42 = vector.load %arg5[%c0_19, %c24, %c0_20, %c0_21] : memref<1x32x2x128xf32, #tpu.memory_space<vmem>>, vector<1x8x2x128xf32>
    %43 = vector.shape_cast %42 : vector<1x8x2x128xf32> to vector<8x2x128xf32>
    %44 = vector.shape_cast %41 : vector<8x2x128xf32> to vector<1x8x2x128xf32>
    tpu.vector_store %arg5[%c0_19, %c24, %c0_20, %c0_21], %44 {strides = array<i32>} : memref<1x32x2x128xf32, #tpu.memory_space<vmem>>, vector<1x8x2x128xf32>,
    return
  }
  func.func @transform_0(%arg0: i32, %arg1: i32) -> (i32, i32, i32) {
    %c0_i32 = arith.constant 0 : i32
    %c0_i32_0 = arith.constant 0 : i32
    %c0_i32_1 = arith.constant 0 : i32
    %c0_i32_2 = arith.constant 0 : i32
    return %c0_i32, %c0_i32_0, %c0_i32_1 : i32, i32, i32
  }
  func.func @transform_1(%arg0: i32, %arg1: i32) -> (i32, i32, i32) {
    %c0_i32 = arith.constant 0 : i32
    %c0_i32_0 = arith.constant 0 : i32
    %c0_i32_1 = arith.constant 0 : i32
    return %arg0, %c0_i32, %c0_i32_0 : i32, i32, i32
  }
  func.func @transform_2(%arg0: i32, %arg1: i32) -> (i32, i32, i32) {
    %c0_i32 = arith.constant 0 : i32
    %c0_i32_0 = arith.constant 0 : i32
    return %arg0, %arg1, %c0_i32 : i32, i32, i32
  }
  func.func @transform_3(%arg0: i32, %arg1: i32) -> (i32, i32, i32, i32) {
    %c0_i32 = arith.constant 0 : i32
    %c0_i32_0 = arith.constant 0 : i32
    %c0_i32_1 = arith.constant 0 : i32
    return %arg0, %c0_i32, %arg1, %c0_i32_0 : i32, i32, i32, i32
  }
}

</mosaic_0001>

<bundles_post_ra>
// kernel: tpu_custom_call.1
= control target key start
LH: loop header
LB: loop body
LE: loop exit
PB: predicated region body
PF: predicated region fallthrough
CT: control target
= control target key end

     0   :  { %8 = vsyncpa [#allocation3], 0  ;;  %s6223_s0 = inlined_call_operand.vmem [shape: f32[8,1,1], index: 0, kind: input, shape index: {}]   ;;  %s6224_s1 = inlined_call_operand.vmem [shape: f32[2,1,128], index: 1, kind: input, shape index: {}]   ;;  %s6225_s2 = inlined_call_operand.vmem [shape: f32[2,2,128], index: 2, kind: input, shape index: {}]   ;;  %s6226_s3 = inlined_call_operand.hbm [shape: f32[2,32,2,128], index: 3, kind: output, shape index: {}]  }
   0x1   :  { %10 = vsyncpa [#allocation3 + $0x1], 0  ;;  %s4420_s12 = smov 0   ;;  %s4422_s13 = smov 0  }
   0x2   :  { %s4424_s14 = smov 0   ;;  %s4426_s15 = smov 0  }
   0x3   :  { %s4428_s16 = smov 0   ;;  %s4430_s17 = smov 0  }
   0x4 LB: > { %s3947_s18 = sadd.s32 4294967295, %s4387_s17   ;;  %s3948_s19 = sadd.s32 4294967294, %s4387_s17   ;;  %s4387_s17 = sphi %s4430_s17, %s16_s17   ;;  %s4383_s16 = sphi %s4428_s16, %s6261_s16   ;;  %s4379_s15 = sphi %s4426_s15, %s6260_s15   ;;  %s4375_s14 = sphi %s4424_s14, %s6259_s14   ;;  %s4371_s13 = sphi %s4422_s13, %s6258_s13   ;;  %s4367_s12 = sphi %s4420_s12, %s6257_s12  }
   0x5   : > { %s28_s20 = sadd.s32 1, %s4383_s16  ;;  %s112_s21 = sadd.s32 1, %s4375_s14 }
   0x6   : > { %p30_p0 = scmp.ge.s32.totalorder %s28_s20, 2  ;;  %p122_p1 = scmp.ne.s32.totalorder %s4375_s14, %s4371_s13 }
   0x7   : > { %p123_p2 = scmp.eq.s32.totalorder %s3947_s18, 1  ;;  %p128_p3 = scmp.ne.s32.totalorder %s4371_s13, %s4367_s12 }
   0x8   : > { %s6263_s20 = smov (%p30_p0, %s28_s20), 0  ;;  %p129_p5 = scmp.eq.s32.totalorder %s3948_s19, 1 }
   0x9   : > { %p4460_p4 = por %p123_p2, %p122_p1  ;;  %s107_s23 = ssub.s32 %s4383_s16, %s6263_s20 }
   0xa   : > { %p3951_p6 = scmp.ge.s32.totalorder %s4387_s17, 1  ;;  %p110_p7 = scmp.eq.s32.totalorder %s107_s23, 0 }
   0xb   : > { %p4467_p8 = por %p129_p5, %p128_p3  ;;  %p166_p9 = scmp.lt.s32.totalorder %s4387_s17, 3 }
   0xc   : > { %s4473_s25 = scalar_select %p110_p7, %s4375_s14, %s112_s21  }
   0xd   : > { %p167_p10 = pnand %p3951_p6, %p166_p9 }
   0xe   : > { %p195_p11 = scmp.lt.s32.totalorder (!%p167_p10), %s4379_s15, 1  ;;  %s192_s29 = sand.u32 (!%p167_p10), 1, %s4371_s13  }
   0xf   : > { %170 = sbr.rel (%p167_p10) target bundleno = 642 (0x282), region = 32  ;;  %s3952_s30 = sshll.u32 (!%p167_p10), %s192_s29, 6 }
  0x10   : > { %s4853_s4 = scalar_lea.vmem (!%p167_p10), [#allocation2], %s3952_s30  ;;  %s4113_s9 = sshll.u32 (!%p167_p10), %s4379_s15, 10 }
  0x11   : > { %s3863_s10 = sshll.u32 (!%p167_p10), %s4853_s4, 4  ;;  %s6168_s19 = scalar_lea.hbm (!%p167_p10), %s6226_s3, %s4113_s9  ;;  %s6170_s10 = int_to_ptr.vmem [resolvable:$true] %s3863_s10 }
  0x12   : > { %s4311_s21 = scalar_lea.vmem (!%p167_p10), %s6170_s10, 1024 }
  0x13   : > { %p4312_p12 = scmp.ne.s32.totalorder (!%p167_p10), %s6170_s10, %s4311_s21 }
  0x14   : > { %v207_v0 = vld [vmem:[%s6223_s0 + $0x2] sm:$0x1]  ;;  %v205_v1 = vld [vmem:[%s6223_s0] sm:$0x1]  ;;  %v4389_v2 = vmov 0   ;;  %v222_v3 = vlaneseq  ;;  %s4511_s23 = scalar_select %p195_p11, %s4379_s15, 1 }
  0x15   : > { %4244 = vset.pattern.permute.xlu1 %v4389_v2  ;;  %4243 = vset.pattern.permute.xlu0 %v4389_v2  ;;  %v208_v4 = vld [vmem:[%s6223_s0 + $0x3] sm:$0x1]  ;;  %v206_v5 = vld [vmem:[%s6223_s0 + $0x1] sm:$0x1]  ;;  %v210_v7 = vld [vmem:[%s6223_s0 + $0x5] sm:$0x1]  ;;  %p4313_p13 = pnand %p4312_p12, %p4460_p4 }
  0x16   : > { %237 = vperm.xlu1 %4244, %v207_v0   ;;  %219 = vperm.xlu0 %4243, %v205_v1   ;;  %v223_v6 = vshrl.u32 %v222_v3, 7  ;;  %v209_v8 = vld [vmem:[%s6223_s0 + $0x4] sm:$0x1]  ;;  %v212_v10 = vld [vmem:[%s6223_s0 + $0x7] sm:$0x1]  ;;  %s4517_s28 = scalar_lea.vmem %s6224_s1, %s4511_s23  ;;  %s3953_s5 = sshll.u32 %s4511_s23, 1 }
  0x17   : > { %v211_v11 = vld [vmem:[%s6223_s0 + $0x6] sm:$0x1]  ;;  %v4520_v21 = vld [vmem:[%s4517_s28] sm:$0x1]  ;;  %v4390_v55 = vmov 683565275   ;;  %s5248_s8 = scalar_lea.vmem %s6225_s2, %s3953_s5  ;;  %p4314_p0 = pneg %p4313_p13 }
  0x18   : > { %v4493_v9 = vsub.s32 0, %v223_v6  ;;  %v4391_v59 = vmov 2475754826   ;;  %v4392_v61 = vmov 2131351028   ;;  %s6178_s15 = scalar_lea.sflag [#allocation3], %s192_s29 }
  0x19   : > { %v4393_v63 = vmov 2102212464   ;;  %s4397_s23 = smov [#allocation2]  }
  0x1a   : > { %246 = vperm.xlu1 %4244, %v208_v4   ;;  %228 = vperm.xlu0 %4243, %v206_v5   ;;  %v2093_v12 = vrot.slane %v206_v5, %v4493_v9  ;;  %v2089_v13 = vrot.slane %v205_v1, %v4493_v9  ;;  %v2101_v14 = vrot.slane %v208_v4, %v4493_v9  ;;  %v4394_v1 = vmov 920167782   ;;  %s4315_s26 = sshll.u32 %s4397_s23, 4  ;;  %s4316_s26 = int_to_ptr.vmem [resolvable:$false] %s4315_s26 }
  0x1b   : > { %v2097_v15 = vrot.slane %v207_v0, %v4493_v9  ;;  %v2109_v16 = vrot.slane %v210_v7, %v4493_v9  ;;  %v2105_v17 = vrot.slane %v209_v8, %v4493_v9  ;;  %v2117_v18 = vrot.slane %v212_v10, %v4493_v9  ;;  %s4317_s27 = scalar_lea.vmem %s4316_s26, 2048  ;;  %p4318_p1 = scmp.lt.s32.totalorder %s6170_s10, %s4316_s26 }
  0x1c   : > { %v2113_v19 = vrot.slane %v211_v11, %v4493_v9  ;;  %p4319_p2 = scmp.lt.s32.totalorder %s4317_s27, %s4311_s21 }
  0x1e   : > { %264 = vperm.xlu1 %4244, %v210_v7   ;;  %255 = vperm.xlu0 %4243, %v209_v8   ;;  %v4395_v8 = vmov 1326507024   ;;  %p4320_p3 = por %p4319_p2, %p4318_p1 }
  0x20   : > { %p4321_p5 = pnand %p4320_p3, %p4314_p0 }
  0x22   : > { %282 = vperm.xlu1 %4244, %v212_v10   ;;  %273 = vperm.xlu0 %4243, %v211_v11  }
  0x26   : > { %2123 = vperm.xlu1 %4244, %v2093_v12   ;;  %2119 = vperm.xlu0 %4243, %v2089_v13  }
  0x2a   : > { %2131 = vperm.xlu1 %4244, %v2101_v14   ;;  %2127 = vperm.xlu0 %4243, %v2097_v15  }
  0x2e   : > { %2139 = vperm.xlu1 %4244, %v2109_v16   ;;  %2135 = vperm.xlu0 %4243, %v2105_v17  }
  0x32   : > { %2147 = vperm.xlu1 %4244, %v2117_v18   ;;  %2143 = vperm.xlu0 %4243, %v2113_v19  }
  0x91   : > { %v238_v20 = vpop.permute.xlu1 %237  ;;  %v220_v22 = vpop.permute.xlu0 %219 }
  0x92   : > { %v243_v23 = vrot.slane %v238_v20, %v4493_v9  ;;  %v225_v24 = vrot.slane %v220_v22, %v4493_v9 }
  0x94   : > { %v4525_v25 = vmul.f32 %v243_v23, %v4520_v21  ;;  %v4528_v26 = vmul.f32 %v225_v24, %v4520_v21 }
  0x95   : > { %v247_v27 = vpop.permute.xlu1 %246 }
  0x96   : > { %v505_v28 = vand.u32 2147483647, %v4525_v25  ;;  %v508_v29 = vand.u32 2139095040, %v4525_v25  ;;  %v297_v30 = vand.u32 2147483647, %v4528_v26  ;;  %v300_v31 = vand.u32 2139095040, %v4528_v26 }
  0x97   : > { %v252_v33 = vrot.slane %v247_v27, %v4493_v9  ;;  %vm507_vm13 = vcmp.lt.s32.totalorder %v4525_v25, 0  ;;  %vm299_vm14 = vcmp.lt.s32.totalorder %v4528_v26, 0 }
  0x98   : > { %v509_v32 = vshrl.u32 %v508_v29, 23  ;;  %v512_v34 = vand.u32 8388607, %v505_v28  ;;  %v301_v35 = vshrl.u32 %v300_v31, 23  ;;  %v304_v36 = vand.u32 8388607, %v297_v30 }
  0x99   : > { %v4540_v38 = vmul.f32 %v252_v33, %v4520_v21 }
  0x9a   : > { %v3963_v37 = vadd.s32 4294967169, %v509_v32  ;;  %v3955_v39 = vadd.s32 4294967169, %v301_v35  ;;  %v513_v41 = vor.u32 8388608, %v512_v34  ;;  %v305_v42 = vor.u32 8388608, %v304_v36 }
  0x9b   : > { %v612_v44 = vand.u32 2139095040, %v4540_v38  ;;  %v609_v53 = vand.u32 2147483647, %v4540_v38 }
  0x9c   : > { %v515_v40 = vadd.s32 1, %v3963_v37  ;;  %v307_v43 = vadd.s32 1, %v3955_v39  ;;  %v4543_v50 = vshll.u32 %v513_v41, 8  ;;  %v4547_v52 = vshll.u32 %v305_v42, 8 }
  0x9d   : > { %v613_v46 = vshrl.u32 %v612_v44, 23 }
  0x9e   : > { %vm516_vm0 = vcmp.gt.s32.totalorder %v515_v40, 0  ;;  %vm308_vm1 = vcmp.gt.s32.totalorder %v307_v43, 0 }
  0x9f   : > { %v517_v45 = vsel %vm516_vm0, %v515_v40, 0  ;;  %v309_v49 = vsel %vm308_vm1, %v307_v43, 0  ;;  %v4551_v58 = vadd.s32 4294967169, %v613_v46  ;;  %vm4658_vm1 = vcmp.le.f32.partialorder %v505_v28, 0.7853982 }
  0xa0   : > { %v518_v47 = vshrl.u32 %v517_v45, 5  ;;  %v519_v48 = vand.u32 31, %v517_v45  ;;  %v4545_v51 = vshrl.u32 %v309_v49, 5  ;;  %v311_v57 = vand.u32 31, %v309_v49 }
  0xa2   : > { %v520_v54 = vsub.s32 32, %v519_v48  ;;  %v522_v56 = vshll.u32 %v4390_v55, %v519_v48  ;;  %v525_v60 = vshll.u32 %v4391_v59, %v519_v48  ;;  %v528_v62 = vshll.u32 %v4392_v61, %v519_v48 }
  0xa3   : > { %v531_v0 = vshll.u32 %v4393_v63, %v519_v48  ;;  %v534_v2 = vshll.u32 %v4394_v1, %v519_v48  ;;  %vm537_vm2 = vcmp.lt.s32.totalorder %v518_v47, 1  ;;  %vm538_vm3 = vcmp.lt.s32.totalorder %v518_v47, 2 }
  0xa4   : > { %v523_v3 = vshrl.u32 %v4391_v59, %v520_v54  ;;  %v526_v4 = vshrl.u32 %v4392_v61, %v520_v54  ;;  %v529_v5 = vshrl.u32 %v4393_v63, %v520_v54  ;;  %v521_v6 = vshrl.u32 %v4390_v55, %v520_v54 }
  0xa5   : > { %v532_v7 = vshrl.u32 %v4394_v1, %v520_v54  ;;  %v535_v10 = vshrl.u32 %v4395_v8, %v520_v54  ;;  %v312_v14 = vsub.s32 32, %v311_v57  ;;  %vm539_vm4 = vcmp.lt.s32.totalorder %v518_v47, 3 }
  0xa6   : > { %v524_v11 = vor.u32 %v523_v3, %v522_v56  ;;  %v527_v12 = vor.u32 %v526_v4, %v525_v60  ;;  %v530_v13 = vor.u32 %v529_v5, %v528_v62  ;;  %vm540_vm5 = vcmp.lt.s32.totalorder %v518_v47, 4 }
  0xa7   : > { %v533_v15 = vor.u32 %v532_v7, %v531_v0  ;;  %v536_v16 = vor.u32 %v535_v10, %v534_v2  ;;  %v314_v27 = vshll.u32 %v4390_v55, %v311_v57  ;;  %v315_v32 = vshrl.u32 %v4391_v59, %v312_v14 }
  0xa8   : > { %v541_v17 = vsel %vm537_vm2, %v521_v6, %v524_v11  ;;  %v542_v18 = vsel %vm540_vm5, %v530_v13, 2102212464  ;;  %v545_v19 = vsel %vm537_vm2, %v524_v11, %v527_v12  ;;  %v549_v20 = vsel %vm537_vm2, %v527_v12, %v530_v13 }
  0xa9   : > { %v543_v22 = vsel %vm539_vm4, %v527_v12, %v542_v18  ;;  %v546_v23 = vsel %vm540_vm5, %v533_v15, 920167782  ;;  %v550_v24 = vsel %vm540_vm5, %v536_v16, 1326507024  ;;  %v317_v33 = vshll.u32 %v4391_v59, %v311_v57 }
  0xaa   : > { %v547_v29 = vsel %vm539_vm4, %v530_v13, %v546_v23  ;;  %v551_v31 = vsel %vm539_vm4, %v533_v15, %v550_v24  ;;  %v544_v34 = vsel %vm538_vm3, %v541_v17, %v543_v22  ;;  %v318_v37 = vshrl.u32 %v4392_v61, %v312_v14  ;;  %v229_v13 = vpop.permute.xlu0 %228 }
  0xab   : > { %v548_v35 = vsel %vm538_vm3, %v545_v19, %v547_v29  ;;  %v552_v36 = vsel %vm538_vm3, %v549_v20, %v551_v31  ;;  %v316_v43 = vor.u32 %v315_v32, %v314_v27  ;;  %v320_v45 = vshll.u32 %v4392_v61, %v311_v57 }
  0xac   : > { %v4574_v39 = vmul.u32.u64.low %v4543_v50, %v552_v36  ;;  %v4575_v40 = vmul.u32.u64.high %v4543_v50, %v552_v36, %v4574_v39  ;;  %v4578_v41 = vmul.u32.u64.low %v4543_v50, %v548_v35  ;;  %v4579_v42 = vmul.u32.u64.high %v4543_v50, %v548_v35, %v4578_v41 }
  0xad   : > { %v319_v44 = vor.u32 %v318_v37, %v317_v33  ;;  %v321_v46 = vshrl.u32 %v4393_v63, %v312_v14  ;;  %v313_v47 = vshrl.u32 %v4390_v55, %v312_v14  ;;  %v323_v48 = vshll.u32 %v4393_v63, %v311_v57 }
  0xae   : > { %v324_v49 = vshrl.u32 %v4394_v1, %v312_v14  ;;  %v327_v54 = vshrl.u32 %v4395_v8, %v312_v14  ;;  %v560_v56 = vmul.u32 %v4543_v50, %v544_v34  ;;  %v326_v62 = vshll.u32 %v4394_v1, %v311_v57 }
  0xaf   : > { %v322_v60 = vor.u32 %v321_v46, %v320_v45  ;;  %vm329_vm6 = vcmp.lt.s32.totalorder %v4545_v51, 1  ;;  %vm562_vm7 = vc.u32 %v4575_v40, %v4578_v41  ;;  %v563_v0 = vadd.s32 1, %v4579_v42 }
  0xb0   : > { %v325_v2 = vor.u32 %v324_v49, %v323_v48  ;;  %vm330_vm8 = vcmp.lt.s32.totalorder %v4545_v51, 2  ;;  %v328_v3 = vor.u32 %v327_v54, %v326_v62  ;;  %vm331_vm9 = vcmp.lt.s32.totalorder %v4545_v51, 3 }
  0xb1   : > { %vm332_vm10 = vcmp.lt.s32.totalorder %v4545_v51, 4  ;;  %v337_v4 = vsel %vm329_vm6, %v316_v43, %v319_v44  ;;  %v564_v50 = vsel %vm562_vm7, %v563_v0, %v4579_v42  ;;  %v341_v6 = vsel %vm329_vm6, %v319_v44, %v322_v60 }
  0xb2   : > { %v334_v5 = vsel %vm332_vm10, %v322_v60, 2102212464  ;;  %v338_v57 = vsel %vm332_vm10, %v325_v2, 920167782  ;;  %v565_v7 = vadd.s32 %v564_v50, %v560_v56  ;;  %v333_v10 = vsel %vm329_vm6, %v313_v47, %v316_v43 }
  0xb3   : > { %v339_v11 = vsel %vm331_vm9, %v322_v60, %v338_v57  ;;  %v342_v12 = vsel %vm332_vm10, %v328_v3, 1326507024  ;;  %v335_v14 = vsel %vm331_vm9, %v319_v44, %v334_v5  ;;  %v619_v17 = vadd.s32 1, %v4551_v58 }
  0xb4   : > { %v340_v15 = vsel %vm330_vm8, %v337_v4, %v339_v11  ;;  %v343_v16 = vsel %vm331_vm9, %v325_v2, %v342_v12  ;;  %v566_v18 = vadd.s32 536870912, %v565_v7  ;;  %v234_v27 = vrot.slane %v229_v13, %v4493_v9 }
  0xb5   : > { %v344_v19 = vsel %vm330_vm8, %v341_v6, %v343_v16  ;;  %v4604_v20 = vmul.u32.u64.low %v4547_v52, %v340_v15  ;;  %v4605_v22 = vmul.u32.u64.high %v4547_v52, %v340_v15, %v4604_v20  ;;  %vm620_vm11 = vcmp.gt.s32.totalorder %v619_v17, 0 }
  0xb6   : > { %v4608_v23 = vmul.u32.u64.low %v4547_v52, %v344_v19  ;;  %v4609_v24 = vmul.u32.u64.high %v4547_v52, %v344_v19, %v4608_v23  ;;  %v567_v29 = vshrl.u32 %v566_v18, 30  ;;  %v336_v31 = vsel %vm330_vm8, %v333_v10, %v335_v14 }
  0xb7   : > { %v621_v58 = vsel %vm620_vm11, %v619_v17, 0  ;;  %v355_v33 = vadd.s32 1, %v4605_v22  ;;  %v616_v34 = vand.u32 8388607, %v609_v53  ;;  %v352_v35 = vmul.u32 %v4547_v52, %v336_v31 }
  0xb8   : > { %v568_v32 = vshll.u32 %v567_v29, 30  ;;  %vm354_vm12 = vc.u32 %v4609_v24, %v4604_v20  ;;  %v4620_v36 = vmul.f32 %v234_v27, %v4520_v21  ;;  %v623_v42 = vand.u32 31, %v621_v58 }
  0xb9   : > { %v356_v39 = vsel %vm354_vm12, %v355_v33, %v4605_v22  ;;  %v617_v44 = vor.u32 8388608, %v616_v34  ;;  %v591_v48 = vsub.s32 4, %v567_v29  ;;  %v561_v56 = vadd.s32 %v4578_v41, %v4575_v40 }
  0xba   : > { %v569_v37 = vsub.s32 %v565_v7, %v568_v32  ;;  %v357_v51 = vadd.s32 %v356_v39, %v352_v35  ;;  %v404_v46 = vand.u32 2139095040, %v4620_v36  ;;  %v624_v49 = vsub.s32 32, %v623_v42 }
  0xbb   : > { %v401_v54 = vand.u32 2147483647, %v4620_v36  ;;  %v4629_v62 = vshrl.u32 %v621_v58, 5  ;;  %v4631_v0 = vshll.u32 %v617_v44, 8  ;;  %v4634_v2 = vadd.s32 %v4604_v20, %v4609_v24 }
  0xbc   : > { %v571_v43 = vsub.s32 0, %v569_v37  ;;  %v358_v45 = vadd.s32 536870912, %v357_v51  ;;  %v626_v4 = vshll.u32 %v4390_v55, %v623_v42  ;;  %v405_v50 = vshrl.u32 %v404_v46, 23 }
  0xbd   : > { %v4639_v57 = vsel %vm507_vm13, %v591_v48, %v567_v29  ;;  %v627_v40 = vshrl.u32 %v4391_v59, %v624_v49  ;;  %v630_v41 = vshrl.u32 %v4392_v61, %v624_v49  ;;  %v629_v7 = vshll.u32 %v4391_v59, %v623_v42 }
  0xbe   : > { %v3964_v47 = vmin.u32 %v571_v43, %v569_v37  ;;  %v359_v52 = vshrl.u32 %v358_v45, 30  ;;  %v633_v10 = vshrl.u32 %v4393_v63, %v624_v49  ;;  %v636_v11 = vshrl.u32 %v4394_v1, %v624_v49 }
  0xbf   : > { %v625_v13 = vshrl.u32 %v4390_v55, %v624_v49  ;;  %v632_v14 = vshll.u32 %v4392_v61, %v623_v42  ;;  %v635_v17 = vshll.u32 %v4393_v63, %v623_v42  ;;  %v639_v18 = vshrl.u32 %v4395_v8, %v624_v49 }
  0xc0   : > { %v573_v60 = vclz %v3964_v47  ;;  %v360_v3 = vshll.u32 %v359_v52, 30  ;;  %v383_v12 = vsub.s32 4, %v359_v52  ;;  %v628_v22 = vor.u32 %v627_v40, %v626_v4 }
  0xc1   : > { %v631_v23 = vor.u32 %v630_v41, %v629_v7  ;;  %v634_v27 = vor.u32 %v633_v10, %v632_v14  ;;  %v637_v29 = vor.u32 %v636_v11, %v635_v17  ;;  %v638_v31 = vshll.u32 %v4394_v1, %v623_v42 }
  0xc2   : > { %v3965_v5 = vadd.s32 4294967294, %v573_v60  ;;  %v4643_v6 = vsub.s32 %v357_v51, %v360_v3  ;;  %vm641_vm0 = vcmp.lt.s32.totalorder %v4629_v62, 1  ;;  %v384_v39 = vsel %vm299_vm14, %v383_v12, %v359_v52 }
  0xc3   : > { %v640_v51 = vor.u32 %v639_v18, %v638_v31  ;;  %vm642_vm2 = vcmp.lt.s32.totalorder %v4629_v62, 2  ;;  %vm644_vm3 = vcmp.lt.s32.totalorder %v4629_v62, 4  ;;  %vm643_vm4 = vcmp.lt.s32.totalorder %v4629_v62, 3  ;;  %v265_v62 = vpop.permute.xlu1 %264 }
  0xc4   : > { %vm3966_vm15 = vcmp.lt.s32.totalorder %v3965_v5, 0  ;;  %v363_v16 = vsub.s32 0, %v4643_v6  ;;  %v645_v28 = vsel %vm641_vm0, %v625_v13, %v628_v22  ;;  %v650_v45 = vsel %vm644_vm3, %v637_v29, 920167782 }
  0xc5   : > { %v576_v15 = vsel %vm3966_vm15, 0, %v3965_v5  ;;  %v646_v47 = vsel %vm644_vm3, %v634_v27, 2102212464  ;;  %v651_v48 = vsel %vm643_vm4, %v634_v27, %v650_v45  ;;  %v653_v49 = vsel %vm641_vm0, %v631_v23, %v634_v27  ;;  %v4721_v45 = vpop.permute.xlu0 %255 }
  0xc6   : > { %v577_v19 = vsub.s32 32, %v576_v15  ;;  %v581_v20 = vsub.s32 4294967266, %v576_v15  ;;  %v3956_v24 = vmin.u32 %v363_v16, %v4643_v6  ;;  %v578_v58 = vshll.u32 %v569_v37, %v576_v15 }
  0xc7   : > { %v649_v37 = vsel %vm641_vm0, %v628_v22, %v631_v23  ;;  %v654_v60 = vsel %vm644_vm3, %v640_v51, 1326507024  ;;  %v3959_v40 = vadd.s32 4294967169, %v405_v50  ;;  %vm214_vm6 = vcmp.ne.f32.partialorder %v4520_v21, 0.0 }
  0xc8   : > { %v579_v32 = vshrl.u32 %v561_v56, %v577_v19  ;;  %v582_v33 = vadd.s32 127, %v581_v20  ;;  %v365_v35 = vclz %v3956_v24  ;;  %v652_v56 = vsel %vm642_vm2, %v649_v37, %v651_v48 }
  0xc9   : > { %v655_v5 = vsel %vm643_vm4, %v637_v29, %v654_v60  ;;  %v647_v10 = vsel %vm643_vm4, %v631_v23, %v646_v47  ;;  %v4691_v17 = vmul.u32.u64.low %v4631_v0, %v652_v56  ;;  %v4692_v18 = vmul.u32.u64.high %v4631_v0, %v652_v56, %v4691_v17 }
  0xca   : > { %v580_v43 = vor.u32 %v579_v32, %v578_v58  ;;  %v583_v42 = vshll.u32 %v582_v33, 23  ;;  %v3957_v44 = vadd.s32 4294967294, %v365_v35  ;;  %v656_v11 = vsel %vm642_vm2, %v653_v49, %v655_v5 }
  0xcb   : > { %v4686_v14 = vmul.u32.u64.low %v4631_v0, %v656_v11  ;;  %v4687_v15 = vmul.u32.u64.high %v4631_v0, %v656_v11, %v4686_v14  ;;  %v594_v20 = vsel %vm4658_vm1, 0, %v4639_v57  ;;  %vm4700_vm7 = vcmp.le.f32.partialorder %v297_v30, 0.7853982 }
  0xcc   : > { %v584_v46 = vor.u32 4788187, %v583_v42  ;;  %v587_v52 = vcvt.s32.f32 %v580_v43  ;;  %vm3958_vm5 = vcmp.lt.s32.totalorder %v3957_v44, 0  ;;  %v411_v22 = vadd.s32 1, %v3959_v40 }
  0xcd   : > { %v368_v4 = vsel %vm3958_vm5, 0, %v3957_v44  ;;  %v386_v24 = vsel %vm4700_vm7, 0, %v384_v39  ;;  %v648_v27 = vsel %vm642_vm2, %v645_v28, %v647_v10  ;;  %vm666_vm8 = vc.u32 %v4687_v15, %v4691_v17 }
  0xce   : > { %v585_v3 = vand.u32 2147483647, %v584_v46  ;;  %v369_v41 = vsub.s32 32, %v368_v4  ;;  %v373_v7 = vsub.s32 4294967266, %v368_v4  ;;  %v370_v13 = vshll.u32 %v4643_v6, %v368_v4 }
  0xcf   : > { %v408_v30 = vand.u32 8388607, %v401_v54  ;;  %vm412_vm9 = vcmp.gt.s32.totalorder %v411_v22, 0  ;;  %v598_v31 = vadd.s32 3, %v594_v20  ;;  %v667_v32 = vadd.s32 1, %v4692_v18 }
  0xd0   : > { %v588_v12 = vmul.f32 %v587_v52, %v585_v3  ;;  %v371_v16 = vshrl.u32 %v4634_v2, %v369_v41  ;;  %v374_v50 = vadd.s32 127, %v373_v7  ;;  %v390_v33 = vadd.s32 3, %v386_v24 }
  0xd1   : > { %v664_v35 = vmul.u32 %v4631_v0, %v648_v27  ;;  %v413_v39 = vsel %vm412_vm9, %v411_v22, 0  ;;  %v668_v42 = vsel %vm666_vm8, %v667_v32, %v4692_v18  ;;  %v409_v44 = vor.u32 8388608, %v408_v30 }
  0xd2   : > { %v589_v19 = vxor.u32 2147483648, %v588_v12  ;;  %v372_v23 = vor.u32 %v371_v16, %v370_v13  ;;  %v375_v2 = vshll.u32 %v374_v50, 23  ;;  %v415_v28 = vand.u32 31, %v413_v39 }
  0xd3   : > { %v669_v37 = vadd.s32 %v668_v42, %v664_v35  ;;  %v270_v34 = vrot.slane %v265_v62, %v4493_v9  ;;  %v4723_v46 = vand.u32 3, %v598_v31  ;;  %v4725_v47 = vand.u32 3, %v594_v20 }
  0xd4   : > { %v590_v29 = vsel %vm507_vm13, %v589_v19, %v588_v12  ;;  %v376_v58 = vor.u32 4788187, %v375_v2  ;;  %v379_v43 = vcvt.s32.f32 %v372_v23  ;;  %v4396_v49 = vmov 0.0  }
  0xd5   : > { %v593_v57 = vsel %vm4658_vm1, %v4525_v25, %v590_v29  ;;  %v4730_v0 = vsel %vm214_vm6, 1.0, %v4396_v49  ;;  %v670_v52 = vadd.s32 536870912, %v669_v37  ;;  %v416_v56 = vsub.s32 32, %v415_v28 }
  0xd6   : > { %4245 = vcosq.f32 %v593_v57  ;;  %v377_v51 = vand.u32 2147483647, %v376_v58  ;;  %v4732_v3 = vand.u32 3, %v390_v33  ;;  %v4734_v4 = vand.u32 3, %v386_v24 }
  0xd7   : > { %4247 = vsinq.f32 %v593_v57  ;;  %v261_v5 = vrot.slane %v4721_v45, %v4493_v9  ;;  %vm611_vm10 = vcmp.lt.s32.totalorder %v4540_v38, 0  ;;  %v671_v40 = vshrl.u32 %v670_v52, 30 }
  0xd8   : > { %v380_v48 = vmul.f32 %v379_v43, %v377_v51  ;;  %v4739_v41 = vshrl.u32 %v413_v39, 5  ;;  %v4741_v7 = vshll.u32 %v409_v44, 8  ;;  %v4744_v10 = vmul.f32 %v270_v34, %v4520_v21 }
  0xd9   : > { %vm604_vm11 = vcmp.eq.s32.totalorder %v4723_v46, 2  ;;  %vm1441_vm12 = vcmp.eq.s32.totalorder %v4725_v47, 2  ;;  %v419_v12 = vshrl.u32 %v4391_v59, %v416_v56  ;;  %v422_v13 = vshrl.u32 %v4392_v61, %v416_v56 }
  0xda   : > { %v381_v60 = vxor.u32 2147483648, %v380_v48  ;;  %v428_v14 = vshrl.u32 %v4394_v1, %v416_v56  ;;  %vm601_vm13 = vcmp.eq.s32.totalorder %v4723_v46, 0  ;;  %vm1438_vm15 = vcmp.eq.s32.totalorder %v4725_v47, 0 }
  0xdb   : > { %v672_v50 = vshll.u32 %v671_v40, 30  ;;  %v418_v18 = vshll.u32 %v4390_v55, %v415_v28  ;;  %v431_v19 = vshrl.u32 %v4395_v8, %v416_v56  ;;  %vm1437_vm0 = vcmp.lt.s32.totalorder %v4725_v47, 2 }
  0xdc   : > { %v382_v11 = vsel %vm299_vm14, %v381_v60, %v380_v48  ;;  %vm600_vm14 = vcmp.lt.s32.totalorder %v4723_v46, 2  ;;  %v421_v20 = vshll.u32 %v4391_v59, %v415_v28  ;;  %v425_v22 = vshrl.u32 %v4393_v63, %v416_v56 }
  0xdd   : > { %v385_v16 = vsel %vm4700_vm7, %v4528_v26, %v382_v11  ;;  %v427_v23 = vshll.u32 %v4393_v63, %v415_v28  ;;  %vm597_vm1 = vweird.f32 %v4525_v25  ;;  %v4766_v6 = vsub.s32 %v669_v37, %v672_v50 }
  0xde   : > { %4249 = vcosq.f32 %v385_v16  ;;  %v424_v2 = vshll.u32 %v4392_v61, %v415_v28  ;;  %v430_v24 = vshll.u32 %v4394_v1, %v415_v28  ;;  %v695_v27 = vsub.s32 4, %v671_v40 }
  0xdf   : > { %4251 = vsinq.f32 %v385_v16  ;;  %v420_v29 = vor.u32 %v419_v12, %v418_v18  ;;  %v423_v30 = vor.u32 %v422_v13, %v421_v20  ;;  %v429_v57 = vor.u32 %v428_v14, %v427_v23 }
  0xe0   : > { %v4772_v31 = vadd.s32 %v4691_v17, %v4687_v15  ;;  %v675_v58 = vsub.s32 0, %v4766_v6  ;;  %v432_v32 = vor.u32 %v431_v19, %v430_v24  ;;  %v820_v62 = vand.u32 2139095040, %v4744_v10 }
  0xe1   : > { %v426_v35 = vor.u32 %v425_v22, %v424_v2  ;;  %vm433_vm2 = vcmp.lt.s32.totalorder %v4739_v41, 1  ;;  %vm434_vm3 = vcmp.lt.s32.totalorder %v4739_v41, 2  ;;  %vm435_vm4 = vcmp.lt.s32.totalorder %v4739_v41, 3 }
  0xe2   : > { %v3968_v43 = vmin.u32 %v675_v58, %v4766_v6  ;;  %v417_v15 = vshrl.u32 %v4390_v55, %v416_v56  ;;  %vm436_vm5 = vcmp.lt.s32.totalorder %v4739_v41, 4  ;;  %v4785_v42 = vsel %vm611_vm10, %v695_v27, %v671_v40 }
  0xe3   : > { %v4246_v33 = vpop.eup %4245  ;;  %v441_v37 = vsel %vm433_vm2, %v420_v29, %v423_v30  ;;  %v442_v44 = vsel %vm436_vm5, %v429_v57, 920167782  ;;  %vm396_vm6 = vcmp.eq.s32.totalorder %v4732_v3, 2  ;;  %vm1235_vm7 = vcmp.eq.s32.totalorder %v4734_v4, 2 }
  0xe4   : > { %v4248_v39 = vpop.eup %4247  ;;  %v605_v51 = vxor.u32 2147483648, %v4246_v33  ;;  %v677_v48 = vclz %v3968_v43  ;;  %v446_v52 = vsel %vm436_vm5, %v432_v32, 1326507024  ;;  %vm393_vm8 = vcmp.eq.s32.totalorder %v4732_v3, 0 }
  0xe5   : > { %v602_v17 = vxor.u32 2147483648, %v4248_v39  ;;  %vm1232_vm9 = vcmp.eq.s32.totalorder %v4734_v4, 0  ;;  %v438_v40 = vsel %vm436_vm5, %v426_v35, 2102212464  ;;  %v445_v11 = vsel %vm433_vm2, %v423_v30, %v426_v35 }
  0xe6   : > { %v606_v28 = vsel %vm604_vm11, %v605_v51, %v4248_v39  ;;  %v1443_v34 = vsel %vm1441_vm12, %v605_v51, %v4248_v39  ;;  %vm392_vm11 = vcmp.lt.s32.totalorder %v4732_v3, 2  ;;  %vm1231_vm12 = vcmp.lt.s32.totalorder %v4734_v4, 2 }
  0xe7   : > { %v603_v56 = vsel %vm601_vm13, %v4246_v33, %v602_v17  ;;  %v1440_v60 = vsel %vm1438_vm15, %v4246_v33, %v602_v17  ;;  %v3969_v14 = vadd.s32 4294967294, %v677_v48  ;;  %v443_v16 = vsel %vm435_vm4, %v426_v35, %v442_v44 }
  0xe8   : > { %v607_v12 = vsel %vm600_vm14, %v603_v56, %v606_v28  ;;  %v1444_v13 = vsel %vm1437_vm0, %v1440_v60, %v1443_v34  ;;  %vm389_vm13 = vweird.f32 %v4528_v26  ;;  %v444_v46 = vsel %vm434_vm3, %v441_v37, %v443_v16 }
  0xe9   : > { %v608_v50 = vsel %vm597_vm1, nan, %v607_v12  ;;  %v1445_v18 = vsel %vm597_vm1, nan, %v1444_v13  ;;  %v447_v47 = vsel %vm435_vm4, %v429_v57, %v446_v52  ;;  %vm3970_vm15 = vcmp.lt.s32.totalorder %v3969_v14, 0 }
  0xea   : > { %v1131_v19 = vmul.f32 %v4730_v0, %v608_v50  ;;  %v1963_v20 = vmul.f32 %v4730_v0, %v1445_v18  ;;  %v448_v22 = vsel %vm434_vm3, %v445_v11, %v447_v47  ;;  %vm4834_vm14 = vcmp.le.f32.partialorder %v609_v53, 0.7853982 }
  0xeb   : > { %v680_v23 = vsel %vm3970_vm15, 0, %v3969_v14  ;;  %v437_v2 = vsel %vm433_vm2, %v417_v15, %v420_v29  ;;  %v4841_v24 = vmul.u32.u64.low %v4741_v7, %v448_v22  ;;  %v4842_v27 = vmul.u32.u64.high %v4741_v7, %v448_v22, %v4841_v24  ;;  %v4250_v57 = vpop.eup %4249 }
  0xec   : > { %v1988_v58 = vrot.slane %v1131_v19, %v4493_v9  ;;  %v2044_v32 = vrot.slane %v1963_v20, %v4493_v9  ;;  %v681_v33 = vsub.s32 32, %v680_v23  ;;  %v439_v53 = vsel %vm435_vm4, %v423_v30, %v438_v40  ;;  %v4252_v35 = vpop.eup %4251 }
  0xed   : > { %v397_v39 = vxor.u32 2147483648, %v4250_v57  ;;  %v685_v51 = vsub.s32 4294967266, %v680_v23  ;;  %v4849_v43 = vmul.u32.u64.low %v4741_v7, %v444_v46  ;;  %v4850_v17 = vmul.u32.u64.high %v4741_v7, %v444_v46, %v4849_v43 }
  0xee   : > { %2019 = vst [vmem:[%s4853_s4 + $0x4] sm:$0x3] %v1988_v58  ;;  %4021 = vst [vmem:[%s4853_s4 + $0x14] sm:$0x3] %v2044_v32  ;;  %v394_v29 = vxor.u32 2147483648, %v4252_v35  ;;  %v682_v15 = vshll.u32 %v4766_v6, %v680_v23  ;;  %v683_v37 = vshrl.u32 %v4772_v31, %v681_v33  ;;  %v821_v30 = vshrl.u32 %v820_v62, 23 }
  0xef   : > { %v398_v44 = vsel %vm396_vm6, %v397_v39, %v4252_v35  ;;  %v1237_v28 = vsel %vm1235_vm7, %v397_v39, %v4252_v35  ;;  %v686_v34 = vadd.s32 127, %v685_v51  ;;  %v440_v48 = vsel %vm434_vm3, %v437_v2, %v439_v53 }
  0xf0   : > { %v395_v52 = vsel %vm393_vm8, %v4250_v57, %v394_v29  ;;  %v1234_v6 = vsel %vm1232_vm9, %v4250_v57, %v394_v29  ;;  %v684_v31 = vor.u32 %v683_v37, %v682_v15  ;;  %vm458_vm0 = vc.u32 %v4842_v27, %v4849_v43 }
  0xf1   : > { %v399_v62 = vsel %vm392_vm11, %v395_v52, %v398_v44  ;;  %v1238_v56 = vsel %vm1231_vm12, %v1234_v6, %v1237_v28  ;;  %v687_v60 = vshll.u32 %v686_v34, 23  ;;  %v459_v41 = vadd.s32 1, %v4850_v17 }
  0xf2   : > { %v400_v40 = vsel %vm389_vm13, nan, %v399_v62  ;;  %v1239_v11 = vsel %vm389_vm13, nan, %v1238_v56  ;;  %v456_v12 = vmul.u32 %v4741_v7, %v440_v48  ;;  %v3975_v13 = vadd.s32 4294967169, %v821_v30 }
  0xf3   : > { %v1129_v3 = vmul.f32 %v4730_v0, %v400_v40  ;;  %v1961_v14 = vmul.f32 %v4730_v0, %v1239_v11  ;;  %v688_v4 = vor.u32 4788187, %v687_v60  ;;  %v460_v16 = vsel %vm458_vm0, %v459_v41, %v4850_v17 }
  0xf4   : > { %v698_v50 = vsel %vm4834_vm14, 0, %v4785_v42  ;;  %v461_v18 = vadd.s32 %v460_v16, %v456_v12  ;;  %v817_v26 = vand.u32 2147483647, %v4744_v10  ;;  %v827_v46 = vadd.s32 1, %v3975_v13 }
  0xf5   : > { %v1980_v7 = vrot.slane %v1129_v3, %v4493_v9  ;;  %v2036_v47 = vrot.slane %v1961_v14, %v4493_v9  ;;  %v689_v19 = vand.u32 2147483647, %v688_v4  ;;  %v691_v20 = vcvt.s32.f32 %v684_v31 }
  0xf6   : > { %v462_v22 = vadd.s32 536870912, %v461_v18  ;;  %vm828_vm1 = vcmp.gt.s32.totalorder %v827_v46, 0  ;;  %v702_v2 = vadd.s32 3, %v698_v50  ;;  %v824_v42 = vand.u32 8388607, %v817_v26 }
  0xf7   : > { %2017 = vst [vmem:[%s4853_s4] sm:$0x3] %v1980_v7  ;;  %4019 = vst [vmem:[%s4853_s4 + $0x10] sm:$0x3] %v2036_v47  ;;  %v692_v23 = vmul.f32 %v691_v20, %v689_v19  ;;  %v829_v24 = vsel %vm828_vm1, %v827_v46, 0  ;;  %v4902_v32 = vmul.f32 %v261_v5, %v4520_v21  ;;  %v4909_v17 = vand.u32 3, %v698_v50 }
  0xf8   : > { %v4894_v57 = vshrl.u32 %v462_v22, 30  ;;  %v831_v58 = vand.u32 31, %v829_v24  ;;  %v4907_v51 = vand.u32 3, %v702_v2  ;;  %v825_v45 = vor.u32 8388608, %v824_v42 }
  0xf9   : > { %v693_v33 = vxor.u32 2147483648, %v692_v23  ;;  %v716_v21 = vand.u32 2139095040, %v4902_v32  ;;  %v830_v5 = vshrl.u32 %v829_v24, 5  ;;  %v457_v31 = vadd.s32 %v4849_v43, %v4842_v27 }
  0xfa   : > { %v464_v53 = vshll.u32 %v4894_v57, 30  ;;  %v832_v35 = vsub.s32 32, %v831_v58  ;;  %v834_v28 = vshll.u32 %v4390_v55, %v831_v58  ;;  %v837_v34 = vshll.u32 %v4391_v59, %v831_v58 }
  0xfb   : > { %v694_v39 = vsel %vm611_vm10, %v693_v33, %v692_v23  ;;  %v840_v25 = vshll.u32 %v4392_v61, %v831_v58  ;;  %v843_v52 = vshll.u32 %v4393_v63, %v831_v58  ;;  %v4929_v11 = vshll.u32 %v825_v45, 8 }
  0xfc   : > { %v697_v29 = vsel %vm4834_vm14, %v4540_v38, %v694_v39  ;;  %v4914_v15 = vsub.s32 %v461_v18, %v464_v53  ;;  %v835_v37 = vshrl.u32 %v4391_v59, %v832_v35  ;;  %v838_v30 = vshrl.u32 %v4392_v61, %v832_v35 }
  0xfd   : > { %4253 = vcosq.f32 %v697_v29  ;;  %v841_v48 = vshrl.u32 %v4393_v63, %v832_v35  ;;  %v844_v6 = vshrl.u32 %v4394_v1, %v832_v35  ;;  %v713_v12 = vand.u32 2147483647, %v4902_v32 }
  0xfe   : > { %4255 = vsinq.f32 %v697_v29  ;;  %v467_v44 = vsub.s32 0, %v4914_v15  ;;  %v836_v56 = vor.u32 %v835_v37, %v834_v28  ;;  %v839_v60 = vor.u32 %v838_v30, %v837_v34 }
  0xff   : > { %v842_v41 = vor.u32 %v841_v48, %v840_v25  ;;  %v845_v40 = vor.u32 %v844_v6, %v843_v52  ;;  %v487_v3 = vsub.s32 4, %v4894_v57  ;;  %v833_v14 = vshrl.u32 %v4390_v55, %v832_v35 }
 0x100   : > { %v3960_v62 = vmin.u32 %v467_v44, %v4914_v15  ;;  %v717_v4 = vshrl.u32 %v716_v21, 23  ;;  %vm403_vm10 = vcmp.lt.s32.totalorder %v4620_v36, 0  ;;  %v846_v27 = vshll.u32 %v4394_v1, %v831_v58 }
 0x101   : > { %v847_v43 = vshrl.u32 %v4395_v8, %v832_v35  ;;  %vm849_vm2 = vcmp.lt.s32.totalorder %v830_v5, 1  ;;  %vm850_vm3 = vcmp.lt.s32.totalorder %v830_v5, 2  ;;  %vm1544_vm4 = vcmp.eq.s32.totalorder %v4909_v17, 2 }
 0x102   : > { %v469_v13 = vclz %v3960_v62  ;;  %vm851_vm5 = vcmp.lt.s32.totalorder %v830_v5, 3  ;;  %vm852_vm6 = vcmp.lt.s32.totalorder %v830_v5, 4  ;;  %v857_v50 = vsel %vm849_vm2, %v836_v56, %v839_v60 }
 0x103   : > { %vm705_vm7 = vcmp.eq.s32.totalorder %v4907_v51, 0  ;;  %vm1541_vm8 = vcmp.eq.s32.totalorder %v4909_v17, 0  ;;  %v848_v18 = vor.u32 %v847_v43, %v846_v27  ;;  %v853_v46 = vsel %vm849_vm2, %v833_v14, %v836_v56 }
 0x104   : > { %v3961_v16 = vadd.s32 4294967294, %v469_v13  ;;  %v854_v7 = vsel %vm852_vm6, %v842_v41, 2102212464  ;;  %v858_v47 = vsel %vm852_vm6, %v845_v40, 920167782  ;;  %vm704_vm9 = vcmp.lt.s32.totalorder %v4907_v51, 2 }
 0x105   : > { %vm1540_vm11 = vcmp.lt.s32.totalorder %v4909_v17, 2  ;;  %v855_v19 = vsel %vm851_vm5, %v839_v60, %v854_v7  ;;  %v859_v20 = vsel %vm851_vm5, %v842_v41, %v858_v47  ;;  %v861_v22 = vsel %vm849_vm2, %v839_v60, %v842_v41  ;;  %v283_v7 = vpop.permute.xlu1 %282 }
 0x106   : > { %vm3962_vm12 = vcmp.lt.s32.totalorder %v3961_v16, 0  ;;  %vm701_vm13 = vweird.f32 %v4540_v38  ;;  %v860_v2 = vsel %vm850_vm3, %v857_v50, %v859_v20  ;;  %v862_v24 = vsel %vm852_vm6, %v848_v18, 1326507024 }
 0x107   : > { %v472_v23 = vsel %vm3962_vm12, 0, %v3961_v16  ;;  %v3971_v42 = vadd.s32 4294967169, %v717_v4  ;;  %v856_v53 = vsel %vm850_vm3, %v853_v46, %v855_v19  ;;  %v863_v35 = vsel %vm851_vm5, %v845_v40, %v862_v24 }
 0x108   : > { %v473_v58 = vsub.s32 32, %v472_v23  ;;  %v477_v33 = vsub.s32 4294967266, %v472_v23  ;;  %vm4956_vm15 = vcmp.le.f32.partialorder %v401_v54, 0.7853982  ;;  %v474_v29 = vshll.u32 %v4914_v15, %v472_v23 }
 0x109   : > { %v864_v45 = vsel %vm850_vm3, %v861_v22, %v863_v35  ;;  %v4963_v21 = vmul.u32.u64.low %v4929_v11, %v860_v2  ;;  %v4964_v37 = vmul.u32.u64.high %v4929_v11, %v860_v2, %v4963_v21  ;;  %vm708_vm14 = vcmp.eq.s32.totalorder %v4907_v51, 2 }
 0x10a   : > { %v4254_v30 = vpop.eup %4253  ;;  %v475_v44 = vshrl.u32 %v457_v31, %v473_v58  ;;  %v478_v28 = vadd.s32 127, %v477_v33  ;;  %v4968_v34 = vmul.u32.u64.low %v4929_v11, %v864_v45  ;;  %v4969_v25 = vmul.u32.u64.high %v4929_v11, %v864_v45, %v4968_v34 }
 0x10b   : > { %v4256_v54 = vpop.eup %4255  ;;  %v709_v48 = vxor.u32 2147483648, %v4254_v30  ;;  %v4974_v15 = vand.u32 8388607, %v713_v12  ;;  %v723_v5 = vadd.s32 1, %v3971_v42  ;;  %v488_v31 = vsel %vm403_vm10, %v487_v3, %v4894_v57 }
 0x10c   : > { %v706_v52 = vxor.u32 2147483648, %v4256_v54  ;;  %v476_v6 = vor.u32 %v475_v44, %v474_v29  ;;  %v479_v62 = vshll.u32 %v478_v28, 23  ;;  %v872_v41 = vmul.u32 %v4929_v11, %v856_v53 }
 0x10d   : > { %v710_v56 = vsel %vm708_vm14, %v709_v48, %v4256_v54  ;;  %v1546_v60 = vsel %vm1544_vm4, %v709_v48, %v4256_v54  ;;  %v875_v40 = vadd.s32 1, %v4964_v37  ;;  %vm724_vm0 = vcmp.gt.s32.totalorder %v723_v5, 0 }
 0x10e   : > { %v707_v13 = vsel %vm705_vm7, %v4254_v30, %v706_v52  ;;  %v1543_v14 = vsel %vm1541_vm8, %v4254_v30, %v706_v52  ;;  %v480_v4 = vor.u32 4788187, %v479_v62  ;;  %v483_v3 = vcvt.s32.f32 %v476_v6 }
 0x10f   : > { %v711_v27 = vsel %vm704_vm9, %v707_v13, %v710_v56  ;;  %v1547_v57 = vsel %vm1540_vm11, %v1543_v14, %v1546_v60  ;;  %vm874_vm1 = vc.u32 %v4969_v25, %v4963_v21  ;;  %v725_v46 = vsel %vm724_vm0, %v723_v5, 0 }
 0x110   : > { %v712_v11 = vsel %vm701_vm13, nan, %v711_v27  ;;  %v1548_v43 = vsel %vm701_vm13, nan, %v1547_v57  ;;  %v481_v16 = vand.u32 2147483647, %v480_v4  ;;  %v876_v50 = vsel %vm874_vm1, %v875_v40, %v4964_v37  ;;  %v5034_v4 = vld [vmem:[%s4517_s28] sm:$0x1] }
 0x111   : > { %v1132_v51 = vmul.f32 %v4730_v0, %v712_v11  ;;  %v1964_v17 = vmul.f32 %v4730_v0, %v1548_v43  ;;  %v877_v18 = vadd.s32 %v876_v50, %v872_v41  ;;  %v490_v19 = vsel %vm4956_vm15, 0, %v488_v31 }
 0x112   : > { %v484_v47 = vmul.f32 %v483_v3, %v481_v16  ;;  %v727_v20 = vand.u32 31, %v725_v46  ;;  %v288_v42 = vrot.slane %v283_v7, %v4493_v9  ;;  %v494_v58 = vadd.s32 3, %v490_v19 }
 0x113   : > { %v1992_v38 = vrot.slane %v1132_v51, %v4493_v9  ;;  %v2048_v22 = vrot.slane %v1964_v17, %v4493_v9  ;;  %v878_v23 = vadd.s32 536870912, %v877_v18  ;;  %v721_v53 = vor.u32 8388608, %v4974_v15 }
 0x114   : > { %v485_v2 = vxor.u32 2147483648, %v484_v47  ;;  %v728_v24 = vsub.s32 32, %v727_v20  ;;  %v726_v35 = vshrl.u32 %v725_v46, 5  ;;  %v730_v45 = vshll.u32 %v4390_v55, %v727_v20 }
 0x115   : > { %2020 = vst [vmem:[%s4853_s4 + $0x6] sm:$0x3] %v1992_v38  ;;  %4022 = vst [vmem:[%s4853_s4 + $0x16] sm:$0x3] %v2048_v22  ;;  %v5007_v33 = vshrl.u32 %v878_v23, 30  ;;  %v733_v34 = vshll.u32 %v4391_v59, %v727_v20  ;;  %v736_v48 = vshll.u32 %v4392_v61, %v727_v20  ;;  %v739_v15 = vshll.u32 %v4393_v63, %v727_v20 }
 0x116   : > { %v486_v29 = vsel %vm403_vm10, %v485_v2, %v484_v47  ;;  %v731_v37 = vshrl.u32 %v4391_v59, %v728_v24  ;;  %v734_v30 = vshrl.u32 %v4392_v61, %v728_v24  ;;  %v737_v54 = vshrl.u32 %v4393_v63, %v728_v24 }
 0x117   : > { %v489_v44 = vsel %vm4956_vm15, %v4620_v36, %v486_v29  ;;  %v880_v28 = vshll.u32 %v5007_v33, 30  ;;  %v740_v5 = vshrl.u32 %v4394_v1, %v728_v24  ;;  %v742_v39 = vshll.u32 %v4394_v1, %v727_v20 }
 0x118   : > { %4257 = vcosq.f32 %v489_v44  ;;  %v732_v6 = vor.u32 %v731_v37, %v730_v45  ;;  %v735_v62 = vor.u32 %v734_v30, %v733_v34  ;;  %v738_v31 = vor.u32 %v737_v54, %v736_v48 }
 0x119   : > { %4259 = vsinq.f32 %v489_v44  ;;  %v5024_v52 = vsub.s32 %v877_v18, %v880_v28  ;;  %v741_v56 = vor.u32 %v740_v5, %v739_v15  ;;  %v743_v60 = vshrl.u32 %v4395_v8, %v728_v24 }
 0x11a   : > { %v5028_v41 = vand.u32 3, %v490_v19  ;;  %v5031_v13 = vand.u32 3, %v494_v58  ;;  %v5037_v27 = vmul.f32 %v5034_v4, %v288_v42  ;;  %v729_v3 = vshrl.u32 %v4390_v55, %v728_v24 }
 0x11b   : > { %v883_v40 = vsub.s32 0, %v5024_v52  ;;  %v744_v14 = vor.u32 %v743_v60, %v742_v39  ;;  %vm745_vm10 = vcmp.lt.s32.totalorder %v726_v35, 1  ;;  %vm748_vm2 = vcmp.lt.s32.totalorder %v726_v35, 4 }
 0x11c   : > { %v750_v11 = vsel %vm748_vm2, %v738_v31, 2102212464  ;;  %v753_v43 = vsel %vm745_vm10, %v732_v6, %v735_v62  ;;  %v754_v16 = vsel %vm748_vm2, %v741_v56, 920167782  ;;  %v5041_v50 = vshll.u32 %v721_v53, 8 }
 0x11d   : > { %v3976_v57 = vmin.u32 %v883_v40, %v5024_v52  ;;  %vm1338_vm3 = vcmp.eq.s32.totalorder %v5028_v41, 2  ;;  %vm746_vm4 = vcmp.lt.s32.totalorder %v726_v35, 2  ;;  %vm747_vm5 = vcmp.lt.s32.totalorder %v726_v35, 3 }
 0x11e   : > { %v749_v17 = vsel %vm745_vm10, %v729_v3, %v732_v6  ;;  %vm1335_vm6 = vcmp.eq.s32.totalorder %v5028_v41, 0  ;;  %v751_v18 = vsel %vm747_vm5, %v735_v62, %v750_v11  ;;  %v755_v46 = vsel %vm747_vm5, %v738_v31, %v754_v16 }
 0x11f   : > { %v885_v51 = vclz %v3976_v57  ;;  %v757_v7 = vsel %vm745_vm10, %v735_v62, %v738_v31  ;;  %v758_v47 = vsel %vm748_vm2, %v744_v14, 1326507024  ;;  %vm496_vm7 = vcmp.lt.s32.totalorder %v5031_v13, 2 }
 0x120   : > { %vm1334_vm8 = vcmp.lt.s32.totalorder %v5028_v41, 2  ;;  %v756_v20 = vsel %vm746_vm4, %v753_v43, %v755_v46  ;;  %v759_v38 = vsel %vm747_vm5, %v741_v56, %v758_v47  ;;  %vm493_vm9 = vweird.f32 %v4620_v36 }
 0x121   : > { %v3977_v19 = vadd.s32 4294967294, %v885_v51  ;;  %vm819_vm11 = vcmp.lt.s32.totalorder %v4744_v10, 0  ;;  %v752_v22 = vsel %vm746_vm4, %v749_v17, %v751_v18  ;;  %v760_v23 = vsel %vm746_vm4, %v757_v7, %v759_v38 }
 0x122   : > { %v5053_v2 = vmul.u32.u64.low %v5041_v50, %v756_v20  ;;  %v5054_v24 = vmul.u32.u64.high %v5041_v50, %v756_v20, %v5053_v2  ;;  %v5058_v42 = vmul.u32.u64.low %v5041_v50, %v760_v23  ;;  %v5059_v58 = vmul.u32.u64.high %v5041_v50, %v760_v23, %v5058_v42 }
 0x123   : > { %vm3978_vm12 = vcmp.lt.s32.totalorder %v3977_v19, 0  ;;  %v1028_v53 = vand.u32 2139095040, %v5037_v27  ;;  %vm497_vm13 = vcmp.eq.s32.totalorder %v5031_v13, 0  ;;  %vm500_vm15 = vcmp.eq.s32.totalorder %v5031_v13, 2  ;;  %v274_v42 = vpop.permute.xlu0 %273 }
 0x124   : > { %v888_v29 = vsel %vm3978_vm12, 0, %v3977_v19  ;;  %v1025_v35 = vand.u32 2147483647, %v5037_v27  ;;  %v873_v37 = vadd.s32 %v4963_v21, %v4969_v25  ;;  %v903_v48 = vsub.s32 4, %v5007_v33 }
 0x125   : > { %v4258_v45 = vpop.eup %4257  ;;  %v889_v30 = vsub.s32 32, %v888_v29  ;;  %v893_v44 = vsub.s32 4294967266, %v888_v29  ;;  %v1029_v28 = vshrl.u32 %v1028_v53, 23  ;;  %v768_v15 = vmul.u32 %v5041_v50, %v752_v22 }
 0x126   : > { %v4260_v34 = vpop.eup %4259  ;;  %v501_v54 = vxor.u32 2147483648, %v4258_v45  ;;  %v771_v5 = vadd.s32 1, %v5054_v24  ;;  %v890_v39 = vshll.u32 %v5024_v52, %v888_v29  ;;  %vm770_vm14 = vc.u32 %v5059_v58, %v5053_v2 }
 0x127   : > { %v498_v6 = vxor.u32 2147483648, %v4260_v34  ;;  %v891_v62 = vshrl.u32 %v873_v37, %v889_v30  ;;  %v894_v31 = vadd.s32 127, %v893_v44  ;;  %v3983_v25 = vadd.s32 4294967169, %v1029_v28 }
 0x128   : > { %v502_v56 = vsel %vm500_vm15, %v501_v54, %v4260_v34  ;;  %v1340_v21 = vsel %vm1338_vm3, %v501_v54, %v4260_v34  ;;  %v772_v11 = vsel %vm770_vm14, %v771_v5, %v5054_v24  ;;  %v904_v17 = vsel %vm819_vm11, %v903_v48, %v5007_v33 }
 0x129   : > { %v499_v60 = vsel %vm497_vm13, %v4258_v45, %v498_v6  ;;  %v1337_v40 = vsel %vm1335_vm6, %v4258_v45, %v498_v6  ;;  %v892_v14 = vor.u32 %v891_v62, %v890_v39  ;;  %v895_v52 = vshll.u32 %v894_v31, 23 }
 0x12a   : > { %v503_v57 = vsel %vm496_vm7, %v499_v60, %v502_v56  ;;  %v1341_v3 = vsel %vm1334_vm8, %v1337_v40, %v1340_v21  ;;  %v1035_v43 = vadd.s32 1, %v3983_v25  ;;  %v773_v18 = vadd.s32 %v772_v11, %v768_v15 }
 0x12b   : > { %v504_v16 = vsel %vm493_vm9, nan, %v503_v57  ;;  %v1342_v50 = vsel %vm493_vm9, nan, %v1341_v3  ;;  %v896_v51 = vor.u32 4788187, %v895_v52  ;;  %v899_v7 = vcvt.s32.f32 %v892_v14 }
 0x12c   : > { %v1130_v13 = vmul.f32 %v4730_v0, %v504_v16  ;;  %v1962_v41 = vmul.f32 %v4730_v0, %v1342_v50  ;;  %vm1036_vm0 = vcmp.gt.s32.totalorder %v1035_v43, 0  ;;  %vm5099_vm1 = vcmp.le.f32.partialorder %v817_v26, 0.7853982 }
 0x12d   : > { %v897_v46 = vand.u32 2147483647, %v896_v51  ;;  %v1037_v47 = vsel %vm1036_vm0, %v1035_v43, 0  ;;  %v774_v33 = vadd.s32 536870912, %v773_v18  ;;  %v906_v22 = vsel %vm5099_vm1, 0, %v904_v17 }
 0x12e   : > { %v1984_v19 = vrot.slane %v1130_v13, %v4493_v9  ;;  %v2040_v36 = vrot.slane %v1962_v41, %v4493_v9  ;;  %v1032_v23 = vand.u32 8388607, %v1025_v35  ;;  %v1039_v24 = vand.u32 31, %v1037_v47 }
 0x12f   : > { %v900_v38 = vmul.f32 %v899_v7, %v897_v46  ;;  %v5109_v53 = vshrl.u32 %v774_v33, 30  ;;  %v910_v26 = vadd.s32 3, %v906_v22  ;;  %v5111_v37 = vand.u32 3, %v906_v22 }
 0x130   : > { %2018 = vst [vmem:[%s4853_s4 + $0x2] sm:$0x3] %v1984_v19  ;;  %4020 = vst [vmem:[%s4853_s4 + $0x12] sm:$0x3] %v2040_v36  ;;  %v1040_v45 = vsub.s32 32, %v1039_v24  ;;  %v279_v44 = vrot.slane %v274_v42, %v4493_v9  ;;  %v1033_v34 = vor.u32 8388608, %v1032_v23  ;;  %v1042_v6 = vshll.u32 %v4390_v55, %v1039_v24 }
 0x131   : > { %v901_v29 = vxor.u32 2147483648, %v900_v38  ;;  %v776_v30 = vshll.u32 %v5109_v53, 30  ;;  %v5126_v62 = vshrl.u32 %v1037_v47, 5  ;;  %v1045_v31 = vshll.u32 %v4391_v59, %v1039_v24 }
 0x132   : > { %v1043_v54 = vshrl.u32 %v4391_v59, %v1040_v45  ;;  %v1046_v48 = vshrl.u32 %v4392_v61, %v1040_v45  ;;  %v1049_v39 = vshrl.u32 %v4393_v63, %v1040_v45  ;;  %v1048_v56 = vshll.u32 %v4392_v61, %v1039_v24 }
 0x133   : > { %v902_v28 = vsel %vm819_vm11, %v901_v29, %v900_v38  ;;  %v5122_v5 = vsub.s32 %v773_v18, %v776_v30  ;;  %v1051_v60 = vshll.u32 %v4393_v63, %v1039_v24  ;;  %v1052_v14 = vshrl.u32 %v4394_v1, %v1040_v45 }
 0x134   : > { %v905_v15 = vsel %vm5099_vm1, %v4744_v10, %v902_v28  ;;  %v1044_v25 = vor.u32 %v1043_v54, %v1042_v6  ;;  %v1047_v40 = vor.u32 %v1046_v48, %v1045_v31  ;;  %v1054_v52 = vshll.u32 %v4394_v1, %v1039_v24 }
 0x135   : > { %4261 = vcosq.f32 %v905_v15  ;;  %v779_v21 = vsub.s32 0, %v5122_v5  ;;  %v1055_v57 = vshrl.u32 %v4395_v8, %v1040_v45  ;;  %v5135_v3 = vand.u32 3, %v910_v26 }
 0x136   : > { %4263 = vsinq.f32 %v905_v15  ;;  %vm715_vm10 = vcmp.lt.s32.totalorder %v4902_v32, 0  ;;  %v1050_v43 = vor.u32 %v1049_v39, %v1048_v56  ;;  %v5140_v16 = vmul.f32 %v5034_v4, %v279_v44 }
 0x137   : > { %v3972_v11 = vmin.u32 %v779_v21, %v5122_v5  ;;  %v1053_v50 = vor.u32 %v1052_v14, %v1051_v60  ;;  %v1056_v51 = vor.u32 %v1055_v57, %v1054_v52  ;;  %vm1057_vm2 = vcmp.lt.s32.totalorder %v5126_v62, 1 }
 0x138   : > { %v5143_v17 = vshll.u32 %v1033_v34, 8  ;;  %vm1058_vm3 = vcmp.lt.s32.totalorder %v5126_v62, 2  ;;  %vm1059_vm4 = vcmp.lt.s32.totalorder %v5126_v62, 3  ;;  %vm1060_vm5 = vcmp.lt.s32.totalorder %v5126_v62, 4 }
 0x139   : > { %v781_v13 = vclz %v3972_v11  ;;  %vm5150_vm6 = vcmp.le.f32.partialorder %v713_v12, 0.7853982  ;;  %v799_v4 = vsub.s32 4, %v5109_v53  ;;  %v1041_v18 = vshrl.u32 %v4390_v55, %v1040_v45 }
 0x13a   : > { %v1065_v46 = vsel %vm1057_vm2, %v1044_v25, %v1047_v40  ;;  %v1066_v7 = vsel %vm1060_vm5, %v1053_v50, 920167782  ;;  %vm1750_vm7 = vcmp.eq.s32.totalorder %v5111_v37, 2  ;;  %v1062_v19 = vsel %vm1060_vm5, %v1050_v43, 2102212464 }
 0x13b   : > { %v3973_v47 = vadd.s32 4294967294, %v781_v13  ;;  %v1067_v36 = vsel %vm1059_vm4, %v1050_v43, %v1066_v7  ;;  %v1069_v12 = vsel %vm1057_vm2, %v1047_v40, %v1050_v43  ;;  %vm913_vm8 = vcmp.eq.s32.totalorder %v5135_v3, 0 }
 0x13c   : > { %vm1747_vm9 = vcmp.eq.s32.totalorder %v5111_v37, 0  ;;  %v1061_v20 = vsel %vm1057_vm2, %v1041_v18, %v1044_v25  ;;  %v1068_v33 = vsel %vm1058_vm3, %v1065_v46, %v1067_v36  ;;  %v1070_v38 = vsel %vm1060_vm5, %v1056_v51, 1326507024 }
 0x13d   : > { %v924_v22 = vand.u32 2139095040, %v5140_v16  ;;  %vm912_vm11 = vcmp.lt.s32.totalorder %v5135_v3, 2  ;;  %vm1746_vm12 = vcmp.lt.s32.totalorder %v5111_v37, 2  ;;  %vm3974_vm13 = vcmp.lt.s32.totalorder %v3973_v47, 0 }
 0x13e   : > { %v1071_v23 = vsel %vm1059_vm4, %v1053_v50, %v1070_v38  ;;  %v5175_v24 = vmul.u32.u64.low %v5143_v17, %v1068_v33  ;;  %v5176_v42 = vmul.u32.u64.high %v5143_v17, %v1068_v33, %v5175_v24  ;;  %vm909_vm15 = vweird.f32 %v4744_v10 }
 0x13f   : > { %v784_v29 = vsel %vm3974_vm13, 0, %v3973_v47  ;;  %v1063_v45 = vsel %vm1059_vm4, %v1047_v40, %v1062_v19  ;;  %v1072_v26 = vsel %vm1058_vm3, %v1069_v12, %v1071_v23  ;;  %v925_v30 = vshrl.u32 %v924_v22, 23 }
 0x140   : > { %vm916_vm14 = vcmp.eq.s32.totalorder %v5135_v3, 2  ;;  %v769_v44 = vadd.s32 %v5053_v2, %v5059_v58  ;;  %v785_v28 = vsub.s32 32, %v784_v29  ;;  %v789_v34 = vsub.s32 4294967266, %v784_v29 }
 0x141   : > { %v800_v54 = vsel %vm715_vm10, %v799_v4, %v5109_v53  ;;  %v5191_v48 = vmul.u32.u64.low %v5143_v17, %v1072_v26  ;;  %v5192_v15 = vmul.u32.u64.high %v5143_v17, %v1072_v26, %v5191_v48  ;;  %v3979_v6 = vadd.s32 4294967169, %v925_v30 }
 0x142   : > { %v4262_v39 = vpop.eup %4261  ;;  %v786_v31 = vshll.u32 %v5122_v5, %v784_v29  ;;  %v787_v56 = vshrl.u32 %v769_v44, %v785_v28  ;;  %v790_v21 = vadd.s32 127, %v789_v34  ;;  %v1064_v25 = vsel %vm1058_vm3, %v1061_v20, %v1063_v45 }
 0x143   : > { %v4264_v2 = vpop.eup %4263  ;;  %v917_v58 = vxor.u32 2147483648, %v4262_v39  ;;  %v1083_v60 = vadd.s32 1, %v5176_v42  ;;  %v921_v40 = vand.u32 2147483647, %v5140_v16  ;;  %v931_v53 = vadd.s32 1, %v3979_v6 }
 0x144   : > { %v914_v14 = vxor.u32 2147483648, %v4264_v2  ;;  %v788_v52 = vor.u32 %v787_v56, %v786_v31  ;;  %v791_v57 = vshll.u32 %v790_v21, 23  ;;  %v802_v11 = vsel %vm5150_vm6, 0, %v800_v54 }
 0x145   : > { %v918_v5 = vsel %vm916_vm14, %v917_v58, %v4264_v2  ;;  %v1752_v62 = vsel %vm1750_vm7, %v917_v58, %v4264_v2  ;;  %v1080_v43 = vmul.u32 %v5143_v17, %v1064_v25  ;;  %vm1082_vm0 = vc.u32 %v5192_v15, %v5175_v24 }
 0x146   : > { %v915_v50 = vsel %vm913_vm8, %v4262_v39, %v914_v14  ;;  %v1749_v51 = vsel %vm1747_vm9, %v4262_v39, %v914_v14  ;;  %v792_v13 = vor.u32 4788187, %v791_v57  ;;  %v795_v4 = vcvt.s32.f32 %v788_v52  ;;  %v2124_v57 = vpop.permute.xlu1 %2123 }
 0x147   : > { %v919_v18 = vsel %vm912_vm11, %v915_v50, %v918_v5  ;;  %v1753_v46 = vsel %vm1746_vm12, %v1749_v51, %v1752_v62  ;;  %v1084_v7 = vsel %vm1082_vm0, %v1083_v60, %v5176_v42  ;;  %vm932_vm1 = vcmp.gt.s32.totalorder %v931_v53, 0 }
 0x148   : > { %v920_v17 = vsel %vm909_vm15, nan, %v919_v18  ;;  %v1754_v47 = vsel %vm909_vm15, nan, %v1753_v46  ;;  %v793_v19 = vand.u32 2147483647, %v792_v13  ;;  %v1085_v36 = vadd.s32 %v1084_v7, %v1080_v43 }
 0x149   : > { %v1134_v3 = vmul.f32 %v4730_v0, %v920_v17  ;;  %v1966_v12 = vmul.f32 %v4730_v0, %v1754_v47  ;;  %v806_v37 = vadd.s32 3, %v802_v11  ;;  %v933_v20 = vsel %vm932_vm1, %v931_v53, 0 }
 0x14a   : > { %v796_v33 = vmul.f32 %v795_v4, %v793_v19  ;;  %v1086_v38 = vadd.s32 536870912, %v1085_v36  ;;  %v928_v22 = vand.u32 8388607, %v921_v40  ;;  %v935_v23 = vand.u32 31, %v933_v20 }
 0x14b   : > { %v2000_v10 = vrot.slane %v1134_v3, %v4493_v9  ;;  %v2056_v42 = vrot.slane %v1966_v12, %v4493_v9  ;;  %v5232_v30 = vand.u32 3, %v802_v11  ;;  %v5236_v28 = vand.u32 3, %v806_v37  ;;  %v5260_v11 = vld [vmem:[%s5248_s8] sm:$0x3] }
 0x14c   : > { %v797_v29 = vxor.u32 2147483648, %v796_v33  ;;  %v5227_v45 = vshrl.u32 %v1086_v38, 30  ;;  %v936_v26 = vsub.s32 32, %v935_v23  ;;  %v929_v54 = vor.u32 8388608, %v928_v22 }
 0x14d   : > { %2022 = vst [vmem:[%s4853_s4 + $0xa] sm:$0x3] %v2000_v10  ;;  %4024 = vst [vmem:[%s4853_s4 + $0x1a] sm:$0x3] %v2056_v42  ;;  %v938_v21 = vshll.u32 %v4390_v55, %v935_v23  ;;  %v941_v25 = vshll.u32 %v4391_v59, %v935_v23  ;;  %v944_v2 = vshll.u32 %v4392_v61, %v935_v23  ;;  %v934_v53 = vshrl.u32 %v933_v20, 5 }
 0x14e   : > { %v798_v44 = vsel %vm715_vm10, %v797_v29, %v796_v33  ;;  %v1088_v34 = vshll.u32 %v5227_v45, 30  ;;  %v939_v6 = vshrl.u32 %v4391_v59, %v936_v26  ;;  %v942_v39 = vshrl.u32 %v4392_v61, %v936_v26 }
 0x14f   : > { %v801_v48 = vsel %vm5150_vm6, %v4902_v32, %v798_v44  ;;  %v945_v31 = vshrl.u32 %v4393_v63, %v936_v26  ;;  %v948_v41 = vshrl.u32 %v4394_v1, %v936_v26  ;;  %v947_v58 = vshll.u32 %v4393_v63, %v935_v23 }
 0x150   : > { %4265 = vcosq.f32 %v801_v48  ;;  %v5250_v56 = vsub.s32 %v1085_v36, %v1088_v34  ;;  %v940_v14 = vor.u32 %v939_v6, %v938_v21  ;;  %v950_v52 = vshll.u32 %v4394_v1, %v935_v23 }
 0x151   : > { %4267 = vsinq.f32 %v801_v48  ;;  %v943_v5 = vor.u32 %v942_v39, %v941_v25  ;;  %v946_v62 = vor.u32 %v945_v31, %v944_v2  ;;  %v949_v43 = vor.u32 %v948_v41, %v947_v58 }
 0x152   : > { %v1091_v60 = vsub.s32 0, %v5250_v56  ;;  %v951_v50 = vshrl.u32 %v4395_v8, %v936_v26  ;;  %vm1027_vm10 = vcmp.lt.s32.totalorder %v5037_v27, 0  ;;  %v1111_v13 = vsub.s32 4, %v5227_v45 }
 0x153   : > { %v5266_v18 = vshll.u32 %v929_v54, 8  ;;  %v5269_v46 = vmul.f32 %v2124_v57, %v5260_v11  ;;  %vm5273_vm2 = vcmp.le.f32.partialorder %v1025_v35, 0.7853982  ;;  %v937_v47 = vshrl.u32 %v4390_v55, %v936_v26 }
 0x154   : > { %v3984_v51 = vmin.u32 %v1091_v60, %v5250_v56  ;;  %v952_v4 = vor.u32 %v951_v50, %v950_v52  ;;  %vm953_vm3 = vcmp.lt.s32.totalorder %v934_v53, 1  ;;  %vm956_vm4 = vcmp.lt.s32.totalorder %v934_v53, 4 }
 0x155   : > { %vm812_vm5 = vcmp.eq.s32.totalorder %v5236_v28, 2  ;;  %vm1647_vm6 = vcmp.eq.s32.totalorder %v5232_v30, 2  ;;  %vm955_vm7 = vcmp.lt.s32.totalorder %v934_v53, 3  ;;  %v958_v19 = vsel %vm956_vm4, %v946_v62, 2102212464 }
 0x156   : > { %v1093_v17 = vclz %v3984_v51  ;;  %v961_v36 = vsel %vm953_vm3, %v940_v14, %v943_v5  ;;  %v962_v3 = vsel %vm956_vm4, %v949_v43, 920167782  ;;  %vm809_vm8 = vcmp.eq.s32.totalorder %v5236_v28, 0 }
 0x157   : > { %vm1644_vm9 = vcmp.eq.s32.totalorder %v5232_v30, 0  ;;  %vm954_vm11 = vcmp.lt.s32.totalorder %v934_v53, 2  ;;  %v963_v12 = vsel %vm955_vm7, %v946_v62, %v962_v3  ;;  %v965_v37 = vsel %vm953_vm3, %v943_v5, %v946_v62 }
 0x158   : > { %v3985_v35 = vadd.s32 4294967294, %v1093_v17  ;;  %vm808_vm12 = vcmp.lt.s32.totalorder %v5236_v28, 2  ;;  %vm1643_vm13 = vcmp.lt.s32.totalorder %v5232_v30, 2  ;;  %v957_v20 = vsel %vm953_vm3, %v937_v47, %v940_v14 }
 0x159   : > { %v959_v33 = vsel %vm955_vm7, %v943_v5, %v958_v19  ;;  %v964_v38 = vsel %vm954_vm11, %v961_v36, %v963_v12  ;;  %v966_v22 = vsel %vm956_vm4, %v952_v4, 1326507024  ;;  %vm805_vm15 = vweird.f32 %v4902_v32  ;;  %v2120_v32 = vpop.permute.xlu0 %2119 }
 0x15a   : > { %vm3986_vm14 = vcmp.lt.s32.totalorder %v3985_v35, 0  ;;  %v967_v23 = vsel %vm955_vm7, %v949_v43, %v966_v22  ;;  %v5296_v10 = vmul.u32.u64.low %v5266_v18, %v964_v38  ;;  %v5297_v42 = vmul.u32.u64.high %v5266_v18, %v964_v38, %v5296_v10 }
 0x15b   : > { %v1081_v29 = vadd.s32 %v5175_v24, %v5192_v15  ;;  %v1096_v26 = vsel %vm3986_vm14, 0, %v3985_v35  ;;  %v968_v44 = vsel %vm954_vm11, %v965_v37, %v967_v23  ;;  %v2265_v34 = vand.u32 2139095040, %v5269_v46 }
 0x15c   : > { %v1097_v54 = vsub.s32 32, %v1096_v26  ;;  %v1101_v48 = vsub.s32 4294967266, %v1096_v26  ;;  %v1112_v6 = vsel %vm1027_vm10, %v1111_v13, %v5227_v45  ;;  %v2262_v39 = vand.u32 2147483647, %v5269_v46 }
 0x15d   : > { %v4266_v31 = vpop.eup %4265  ;;  %v960_v21 = vsel %vm954_vm11, %v957_v20, %v959_v33  ;;  %v5310_v41 = vmul.u32.u64.low %v5266_v18, %v968_v44  ;;  %v5311_v25 = vmul.u32.u64.high %v5266_v18, %v968_v44, %v5310_v41  ;;  %v2266_v24 = vshrl.u32 %v2265_v34, 23 }
 0x15e   : > { %v4268_v15 = vpop.eup %4267  ;;  %v813_v2 = vxor.u32 2147483648, %v4266_v31  ;;  %v1098_v58 = vshll.u32 %v5250_v56, %v1096_v26  ;;  %v1099_v60 = vshrl.u32 %v1081_v29, %v1097_v54  ;;  %v1102_v14 = vadd.s32 127, %v1101_v48 }
 0x15f   : > { %v810_v52 = vxor.u32 2147483648, %v4268_v15  ;;  %v1114_v45 = vsel %vm5273_vm2, 0, %v1112_v6  ;;  %v979_v57 = vadd.s32 1, %v5297_v42  ;;  %v4032_v5 = vadd.s32 4294967169, %v2266_v24 }
 0x160   : > { %v814_v53 = vsel %vm812_vm5, %v813_v2, %v4268_v15  ;;  %v1649_v62 = vsel %vm1647_vm6, %v813_v2, %v4268_v15  ;;  %v1100_v43 = vor.u32 %v1099_v60, %v1098_v58  ;;  %v1103_v50 = vshll.u32 %v1102_v14, 23 }
 0x161   : > { %v811_v56 = vsel %vm809_vm8, %v4266_v31, %v810_v52  ;;  %v1646_v51 = vsel %vm1644_vm9, %v4266_v31, %v810_v52  ;;  %v976_v13 = vmul.u32 %v5266_v18, %v960_v21  ;;  %vm978_vm0 = vc.u32 %v5311_v25, %v5296_v10 }
 0x162   : > { %v815_v4 = vsel %vm808_vm12, %v811_v56, %v814_v53  ;;  %v1650_v17 = vsel %vm1643_vm13, %v1646_v51, %v1649_v62  ;;  %v1104_v47 = vor.u32 4788187, %v1103_v50  ;;  %v1107_v19 = vcvt.s32.f32 %v1100_v43 }
 0x163   : > { %v816_v36 = vsel %vm805_vm15, nan, %v815_v4  ;;  %v1651_v3 = vsel %vm805_vm15, nan, %v1650_v17  ;;  %v980_v18 = vsel %vm978_vm0, %v979_v57, %v5297_v42  ;;  %v2272_v35 = vadd.s32 1, %v4032_v5 }
 0x164   : > { %v1133_v12 = vmul.f32 %v4730_v0, %v816_v36  ;;  %v1965_v28 = vmul.f32 %v4730_v0, %v1651_v3  ;;  %v1105_v37 = vand.u32 2147483647, %v1104_v47  ;;  %v981_v30 = vadd.s32 %v980_v18, %v976_v13 }
 0x165   : > { %vm2273_vm1 = vcmp.gt.s32.totalorder %v2272_v35, 0  ;;  %v1118_v23 = vadd.s32 3, %v1114_v45  ;;  %v2269_v44 = vand.u32 8388607, %v2262_v39  ;;  %v5348_v54 = vmul.f32 %v2120_v32, %v5260_v11 }
 0x166   : > { %v1996_v20 = vrot.slane %v1133_v12, %v4493_v9  ;;  %v2052_v33 = vrot.slane %v1965_v28, %v4493_v9  ;;  %v1108_v38 = vmul.f32 %v1107_v19, %v1105_v37  ;;  %v982_v22 = vadd.s32 536870912, %v981_v30 }
 0x167   : > { %v2274_v29 = vsel %vm2273_vm1, %v2272_v35, 0  ;;  %v5356_v41 = vand.u32 3, %v1114_v45  ;;  %v5358_v24 = vand.u32 3, %v1118_v23  ;;  %v2270_v2 = vor.u32 8388608, %v2269_v44 }
 0x168   : > { %2021 = vst [vmem:[%s4853_s4 + $0x8] sm:$0x3] %v1996_v20  ;;  %4023 = vst [vmem:[%s4853_s4 + $0x18] sm:$0x3] %v2052_v33  ;;  %v1109_v42 = vxor.u32 2147483648, %v1108_v38  ;;  %v5343_v26 = vshrl.u32 %v982_v22, 30  ;;  %v977_v50 = vadd.s32 %v5296_v10, %v5311_v25  ;;  %vm1117_vm13 = vweird.f32 %v5037_v27 }
 0x169   : > { %v2276_v34 = vand.u32 31, %v2274_v29  ;;  %v2161_v14 = vand.u32 2139095040, %v5348_v54  ;;  %v2275_v5 = vshrl.u32 %v2274_v29, 5  ;;  %v5375_v47 = vshll.u32 %v2270_v2, 8 }
 0x16a   : > { %v1110_v48 = vsel %vm1027_vm10, %v1109_v42, %v1108_v38  ;;  %v984_v6 = vshll.u32 %v5343_v26, 30  ;;  %v2158_v19 = vand.u32 2147483647, %v5348_v54  ;;  %vm923_vm10 = vcmp.lt.s32.totalorder %v5140_v16, 0 }
 0x16b   : > { %v2277_v31 = vsub.s32 32, %v2276_v34  ;;  %v1113_v21 = vsel %vm5273_vm2, %v5037_v27, %v1110_v48  ;;  %v2279_v7 = vshll.u32 %v4390_v55, %v2276_v34  ;;  %v2282_v45 = vshll.u32 %v4391_v59, %v2276_v34 }
 0x16c   : > { %4269 = vcosq.f32 %v1113_v21  ;;  %v5360_v15 = vsub.s32 %v981_v30, %v984_v6  ;;  %v2285_v53 = vshll.u32 %v4392_v61, %v2276_v34  ;;  %v2288_v62 = vshll.u32 %v4393_v63, %v2276_v34 }
 0x16d   : > { %4271 = vsinq.f32 %v1113_v21  ;;  %v2280_v58 = vshrl.u32 %v4391_v59, %v2277_v31  ;;  %v2283_v60 = vshrl.u32 %v4392_v61, %v2277_v31  ;;  %v2286_v57 = vshrl.u32 %v4393_v63, %v2277_v31 }
 0x16e   : > { %v987_v52 = vsub.s32 0, %v5360_v15  ;;  %v2289_v43 = vshrl.u32 %v4394_v1, %v2277_v31  ;;  %v2278_v3 = vshrl.u32 %v4390_v55, %v2277_v31  ;;  %v2291_v18 = vshll.u32 %v4394_v1, %v2276_v34 }
 0x16f   : > { %v2281_v51 = vor.u32 %v2280_v58, %v2279_v7  ;;  %v2284_v13 = vor.u32 %v2283_v60, %v2282_v45  ;;  %v2287_v4 = vor.u32 %v2286_v57, %v2285_v53  ;;  %v2162_v35 = vshrl.u32 %v2161_v14, 23 }
 0x170   : > { %v3980_v56 = vmin.u32 %v987_v52, %v5360_v15  ;;  %v2290_v17 = vor.u32 %v2289_v43, %v2288_v62  ;;  %vm1124_vm2 = vcmp.eq.s32.totalorder %v5358_v24, 2  ;;  %vm1956_vm3 = vcmp.eq.s32.totalorder %v5356_v41, 2 }
 0x171   : > { %v2292_v10 = vshrl.u32 %v4395_v8, %v2277_v31  ;;  %vm2294_vm4 = vcmp.lt.s32.totalorder %v2275_v5, 1  ;;  %vm2295_vm5 = vcmp.lt.s32.totalorder %v2275_v5, 2  ;;  %vm2296_vm6 = vcmp.lt.s32.totalorder %v2275_v5, 3 }
 0x172   : > { %v989_v36 = vclz %v3980_v56  ;;  %vm1121_vm7 = vcmp.eq.s32.totalorder %v5358_v24, 0  ;;  %vm1953_vm8 = vcmp.eq.s32.totalorder %v5356_v41, 0  ;;  %vm2297_vm9 = vcmp.lt.s32.totalorder %v2275_v5, 4 }
 0x173   : > { %v2298_v12 = vsel %vm2294_vm4, %v2278_v3, %v2281_v51  ;;  %v2302_v28 = vsel %vm2294_vm4, %v2281_v51, %v2284_v13  ;;  %vm1120_vm11 = vcmp.lt.s32.totalorder %v5358_v24, 2  ;;  %vm1952_vm12 = vcmp.lt.s32.totalorder %v5356_v41, 2 }
 0x174   : > { %v3981_v25 = vadd.s32 4294967294, %v989_v36  ;;  %v2293_v37 = vor.u32 %v2292_v10, %v2291_v18  ;;  %v2299_v30 = vsel %vm2297_vm9, %v2287_v4, 2102212464  ;;  %v2303_v20 = vsel %vm2297_vm9, %v2290_v17, 920167782 }
 0x175   : > { %v2306_v33 = vsel %vm2294_vm4, %v2284_v13, %v2287_v4  ;;  %v2300_v38 = vsel %vm2296_vm6, %v2284_v13, %v2299_v30  ;;  %v2304_v22 = vsel %vm2296_vm6, %v2287_v4, %v2303_v20  ;;  %v4028_v32 = vadd.s32 4294967169, %v2162_v35 }
 0x176   : > { %vm3982_vm15 = vcmp.lt.s32.totalorder %v3981_v25, 0  ;;  %v1007_v29 = vsub.s32 4, %v5343_v26  ;;  %v2305_v42 = vsel %vm2295_vm5, %v2302_v28, %v2304_v22  ;;  %v2307_v44 = vsel %vm2297_vm9, %v2293_v37, 1326507024 }
 0x177   : > { %v992_v23 = vsel %vm3982_vm15, 0, %v3981_v25  ;;  %v2301_v6 = vsel %vm2295_vm5, %v2298_v12, %v2300_v38  ;;  %v2308_v31 = vsel %vm2296_vm6, %v2290_v17, %v2307_v44  ;;  %v2168_v53 = vadd.s32 1, %v4028_v32  ;;  %v2132_v32 = vpop.permute.xlu1 %2131 }
 0x178   : > { %v993_v34 = vsub.s32 32, %v992_v23  ;;  %v997_v48 = vsub.s32 4294967266, %v992_v23  ;;  %v994_v2 = vshll.u32 %v5360_v15, %v992_v23  ;;  %v2309_v58 = vsel %vm2295_vm5, %v2306_v33, %v2308_v31 }
 0x179   : > { %v4270_v21 = vpop.eup %4269  ;;  %v5401_v60 = vmul.u32.u64.low %v5375_v47, %v2305_v42  ;;  %v5402_v14 = vmul.u32.u64.high %v5375_v47, %v2305_v42, %v5401_v60  ;;  %v1008_v43 = vsel %vm923_vm10, %v1007_v29, %v5343_v26  ;;  %v2317_v26 = vmul.u32 %v5375_v47, %v2301_v6 }
 0x17a   : > { %v4272_v52 = vpop.eup %4271  ;;  %v1125_v7 = vxor.u32 2147483648, %v4270_v21  ;;  %v995_v45 = vshrl.u32 %v977_v50, %v993_v34  ;;  %v998_v57 = vadd.s32 127, %v997_v48  ;;  %vm2169_vm14 = vcmp.gt.s32.totalorder %v2168_v53, 0 }
 0x17b   : > { %v1122_v62 = vxor.u32 2147483648, %v4272_v52  ;;  %v5409_v56 = vmul.u32.u64.low %v5375_v47, %v2309_v58  ;;  %v5410_v15 = vmul.u32.u64.high %v5375_v47, %v2309_v58, %v5409_v56  ;;  %v2320_v36 = vadd.s32 1, %v5402_v14 }
 0x17c   : > { %v1126_v5 = vsel %vm1124_vm2, %v1125_v7, %v4272_v52  ;;  %v1958_v51 = vsel %vm1956_vm3, %v1125_v7, %v4272_v52  ;;  %v996_v13 = vor.u32 %v995_v45, %v994_v2  ;;  %v999_v4 = vshll.u32 %v998_v57, 23 }
 0x17d   : > { %v1123_v50 = vsel %vm1121_vm7, %v4270_v21, %v1122_v62  ;;  %v1955_v17 = vsel %vm1953_vm8, %v4270_v21, %v1122_v62  ;;  %vm2319_vm0 = vc.u32 %v5410_v15, %v5401_v60  ;;  %v2165_v30 = vand.u32 8388607, %v2158_v19 }
 0x17e   : > { %v1127_v3 = vsel %vm1120_vm11, %v1123_v50, %v1126_v5  ;;  %v1959_v18 = vsel %vm1952_vm12, %v1955_v17, %v1958_v51  ;;  %v1000_v35 = vor.u32 4788187, %v999_v4  ;;  %v1003_v12 = vcvt.s32.f32 %v996_v13 }
 0x17f   : > { %v1128_v10 = vsel %vm1117_vm13, nan, %v1127_v3  ;;  %v1960_v25 = vsel %vm1117_vm13, nan, %v1959_v18  ;;  %v2321_v28 = vsel %vm2319_vm0, %v2320_v36, %v5402_v14  ;;  %v2170_v20 = vsel %vm2169_vm14, %v2168_v53, 0 }
 0x180   : > { %v1136_v47 = vmul.f32 %v4730_v0, %v1128_v10  ;;  %v1968_v24 = vmul.f32 %v4730_v0, %v1960_v25  ;;  %v1001_v41 = vand.u32 2147483647, %v1000_v35  ;;  %v2322_v37 = vadd.s32 %v2321_v28, %v2317_v26 }
 0x181   : > { %vm5441_vm1 = vcmp.le.f32.partialorder %v921_v40, 0.7853982  ;;  %v2172_v42 = vand.u32 31, %v2170_v20  ;;  %v2166_v48 = vor.u32 8388608, %v2165_v30  ;;  %v5452_v31 = vmul.f32 %v2132_v32, %v5260_v11 }
 0x182   : > { %v2008_v27 = vrot.slane %v1136_v47, %v4493_v9  ;;  %v2064_v33 = vrot.slane %v1968_v24, %v4493_v9  ;;  %v1004_v22 = vmul.f32 %v1003_v12, %v1001_v41  ;;  %v1010_v23 = vsel %vm5441_vm1, 0, %v1008_v43 }
 0x183   : > { %v2323_v29 = vadd.s32 536870912, %v2322_v37  ;;  %v2173_v6 = vsub.s32 32, %v2172_v42  ;;  %v1014_v21 = vadd.s32 3, %v1010_v23  ;;  %v2171_v2 = vshrl.u32 %v2170_v20, 5 }
 0x184   : > { %2024 = vst [vmem:[%s4853_s4 + $0xe] sm:$0x3] %v2008_v27  ;;  %4026 = vst [vmem:[%s4853_s4 + $0x1e] sm:$0x3] %v2064_v33  ;;  %v1005_v44 = vxor.u32 2147483648, %v1004_v22  ;;  %v2175_v58 = vshll.u32 %v4390_v55, %v2172_v42  ;;  %v2178_v7 = vshll.u32 %v4391_v59, %v2172_v42  ;;  %v2181_v45 = vshll.u32 %v4392_v61, %v2172_v42 }
 0x185   : > { %v5449_v34 = vshrl.u32 %v2323_v29, 30  ;;  %v2176_v57 = vshrl.u32 %v4391_v59, %v2173_v6  ;;  %v2179_v53 = vshrl.u32 %v4392_v61, %v2173_v6  ;;  %v2182_v62 = vshrl.u32 %v4393_v63, %v2173_v6 }
 0x186   : > { %v1006_v40 = vsel %vm923_vm10, %v1005_v44, %v1004_v22  ;;  %v2184_v56 = vshll.u32 %v4393_v63, %v2172_v42  ;;  %v2185_v5 = vshrl.u32 %v4394_v1, %v2173_v6  ;;  %v5470_v50 = vand.u32 3, %v1014_v21 }
 0x187   : > { %v1009_v14 = vsel %vm5441_vm1, %v5140_v16, %v1006_v40  ;;  %v2325_v52 = vshll.u32 %v5449_v34, 30  ;;  %v2177_v51 = vor.u32 %v2176_v57, %v2175_v58  ;;  %v2180_v13 = vor.u32 %v2179_v53, %v2178_v7 }
 0x188   : > { %4273 = vcosq.f32 %v1009_v14  ;;  %v2183_v4 = vor.u32 %v2182_v62, %v2181_v45  ;;  %v5472_v17 = vand.u32 3, %v1010_v23  ;;  %v2186_v36 = vor.u32 %v2185_v5, %v2184_v56 }
 0x189   : > { %4275 = vsinq.f32 %v1009_v14  ;;  %v5466_v43 = vsub.s32 %v2322_v37, %v2325_v52  ;;  %v2187_v3 = vshll.u32 %v4394_v1, %v2172_v42  ;;  %v2188_v18 = vshrl.u32 %v4395_v8, %v2173_v6 }
 0x18a   : > { %v5477_v35 = vshll.u32 %v2166_v48, 8  ;;  %v2473_v10 = vand.u32 2139095040, %v5452_v31  ;;  %v2174_v12 = vshrl.u32 %v4390_v55, %v2173_v6  ;;  %vm2190_vm10 = vcmp.lt.s32.totalorder %v2171_v2, 1 }
 0x18b   : > { %v2328_v26 = vsub.s32 0, %v5466_v43  ;;  %vm2193_vm2 = vcmp.lt.s32.totalorder %v2171_v2, 4  ;;  %v2189_v47 = vor.u32 %v2188_v18, %v2187_v3  ;;  %v2198_v41 = vsel %vm2190_vm10, %v2177_v51, %v2180_v13 }
 0x18c   : > { %v2195_v24 = vsel %vm2193_vm2, %v2183_v4, 2102212464  ;;  %v2199_v28 = vsel %vm2193_vm2, %v2186_v36, 920167782  ;;  %vm1853_vm3 = vcmp.eq.s32.totalorder %v5472_v17, 2  ;;  %vm2191_vm4 = vcmp.lt.s32.totalorder %v2171_v2, 2 }
 0x18d   : > { %v4033_v25 = vmin.u32 %v2328_v26, %v5466_v43  ;;  %vm2192_vm5 = vcmp.lt.s32.totalorder %v2171_v2, 3  ;;  %v2194_v30 = vsel %vm2190_vm10, %v2174_v12, %v2177_v51  ;;  %vm1850_vm6 = vcmp.eq.s32.totalorder %v5472_v17, 0 }
 0x18e   : > { %v2196_v20 = vsel %vm2192_vm5, %v2180_v13, %v2195_v24  ;;  %v2200_v27 = vsel %vm2192_vm5, %v2183_v4, %v2199_v28  ;;  %v2202_v33 = vsel %vm2190_vm10, %v2180_v13, %v2183_v4  ;;  %v2203_v38 = vsel %vm2193_vm2, %v2189_v47, 1326507024 }
 0x18f   : > { %v2330_v37 = vclz %v4033_v25  ;;  %vm1016_vm7 = vcmp.lt.s32.totalorder %v5470_v50, 2  ;;  %vm1849_vm8 = vcmp.lt.s32.totalorder %v5472_v17, 2  ;;  %v2201_v32 = vsel %vm2191_vm4, %v2198_v41, %v2200_v27 }
 0x190   : > { %v2204_v23 = vsel %vm2192_vm5, %v2186_v36, %v2203_v38  ;;  %vm1013_vm9 = vweird.f32 %v5140_v16  ;;  %vm2264_vm11 = vcmp.lt.s32.totalorder %v5269_v46, 0  ;;  %v2197_v29 = vsel %vm2191_vm4, %v2194_v30, %v2196_v20 }
 0x191   : > { %v4034_v22 = vadd.s32 4294967294, %v2330_v37  ;;  %v2205_v42 = vsel %vm2191_vm4, %v2202_v33, %v2204_v23  ;;  %v5492_v44 = vmul.u32.u64.low %v5477_v35, %v2201_v32  ;;  %v5493_v48 = vmul.u32.u64.high %v5477_v35, %v2201_v32, %v5492_v44 }
 0x192   : > { %v5497_v6 = vmul.u32.u64.low %v5477_v35, %v2205_v42  ;;  %v5498_v40 = vmul.u32.u64.high %v5477_v35, %v2205_v42, %v5497_v6  ;;  %v2474_v21 = vshrl.u32 %v2473_v10, 23  ;;  %vm1017_vm13 = vcmp.eq.s32.totalorder %v5470_v50, 0 }
 0x193   : > { %vm4035_vm12 = vcmp.lt.s32.totalorder %v4034_v22, 0  ;;  %vm1020_vm15 = vcmp.eq.s32.totalorder %v5470_v50, 2  ;;  %v2318_v58 = vadd.s32 %v5401_v60, %v5410_v15  ;;  %vm5506_vm14 = vcmp.le.f32.partialorder %v2262_v39, 0.7853982 }
 0x194   : > { %v2333_v2 = vsel %vm4035_vm12, 0, %v4034_v22  ;;  %v2470_v57 = vand.u32 2147483647, %v5452_v31  ;;  %v4040_v53 = vadd.s32 4294967169, %v2474_v21  ;;  %v2348_v5 = vsub.s32 4, %v5449_v34 }
 0x195   : > { %v4274_v14 = vpop.eup %4273  ;;  %v2334_v7 = vsub.s32 32, %v2333_v2  ;;  %v2338_v45 = vsub.s32 4294967266, %v2333_v2  ;;  %v2213_v51 = vmul.u32 %v5477_v35, %v2197_v29  ;;  %v2216_v60 = vadd.s32 1, %v5493_v48 }
 0x196   : > { %v4276_v62 = vpop.eup %4275  ;;  %v1021_v56 = vxor.u32 2147483648, %v4274_v14  ;;  %v2335_v13 = vshll.u32 %v5466_v43, %v2333_v2  ;;  %vm2215_vm0 = vc.u32 %v5498_v40, %v5492_v44  ;;  %v2480_v3 = vadd.s32 1, %v4040_v53 }
 0x197   : > { %v1018_v15 = vxor.u32 2147483648, %v4276_v62  ;;  %v2336_v39 = vshrl.u32 %v2318_v58, %v2334_v7  ;;  %v2339_v4 = vadd.s32 127, %v2338_v45  ;;  %v2217_v47 = vsel %vm2215_vm0, %v2216_v60, %v5493_v48 }
 0x198   : > { %v1022_v26 = vsel %vm1020_vm15, %v1021_v56, %v4276_v62  ;;  %v1855_v36 = vsel %vm1853_vm3, %v1021_v56, %v4276_v62  ;;  %vm2481_vm1 = vcmp.gt.s32.totalorder %v2480_v3, 0  ;;  %v2349_v37 = vsel %vm2264_vm11, %v2348_v5, %v5449_v34 }
 0x199   : > { %v1019_v18 = vsel %vm1017_vm13, %v4274_v14, %v1018_v15  ;;  %v1852_v35 = vsel %vm1850_vm6, %v4274_v14, %v1018_v15  ;;  %v2337_v10 = vor.u32 %v2336_v39, %v2335_v13  ;;  %v2340_v43 = vshll.u32 %v2339_v4, 23 }
 0x19a   : > { %v1023_v25 = vsel %vm1016_vm7, %v1019_v18, %v1022_v26  ;;  %v1856_v12 = vsel %vm1849_vm8, %v1852_v35, %v1855_v36  ;;  %v2218_v30 = vadd.s32 %v2217_v47, %v2213_v51  ;;  %v2482_v20 = vsel %vm2481_vm1, %v2480_v3, 0  ;;  %v2128_v18 = vpop.permute.xlu0 %2127 }
 0x19b   : > { %v1024_v24 = vsel %vm1013_vm9, nan, %v1023_v25  ;;  %v1857_v41 = vsel %vm1013_vm9, nan, %v1856_v12  ;;  %v2341_v28 = vor.u32 4788187, %v2340_v43  ;;  %v2344_v33 = vcvt.s32.f32 %v2337_v10 }
 0x19c   : > { %v1135_v50 = vmul.f32 %v4730_v0, %v1024_v24  ;;  %v1967_v17 = vmul.f32 %v4730_v0, %v1857_v41  ;;  %v2477_v38 = vand.u32 8388607, %v2470_v57  ;;  %v2484_v16 = vand.u32 31, %v2482_v20 }
 0x19d   : > { %v2342_v27 = vand.u32 2147483647, %v2341_v28  ;;  %v2351_v34 = vsel %vm5506_vm14, 0, %v2349_v37  ;;  %v2219_v23 = vadd.s32 536870912, %v2218_v30  ;;  %vm2083_vm10 = vcmp.ne.f32.partialorder %v5260_v11, 0.0 }
 0x19e   : > { %v2004_v22 = vrot.slane %v1135_v50, %v4493_v9  ;;  %v2060_v32 = vrot.slane %v1967_v17, %v4493_v9  ;;  %v2485_v42 = vsub.s32 32, %v2484_v16  ;;  %v2355_v6 = vadd.s32 3, %v2351_v34 }
 0x19f   : > { %v2345_v29 = vmul.f32 %v2344_v33, %v2342_v27  ;;  %v5548_v0 = vshrl.u32 %v2219_v23, 30  ;;  %v2478_v21 = vor.u32 8388608, %v2477_v38  ;;  %v5552_v9 = vshrl.u32 %v2482_v20, 5 }
 0x1a0   : > { %2023 = vst [vmem:[%s4853_s4 + $0xc] sm:$0x3] %v2004_v22  ;;  %4025 = vst [vmem:[%s4853_s4 + $0x1c] sm:$0x3] %v2060_v32  ;;  %v2488_v58 = vshrl.u32 %v4391_v59, %v2485_v42  ;;  %v2491_v14 = vshrl.u32 %v4392_v61, %v2485_v42  ;;  %v2494_v7 = vshrl.u32 %v4393_v63, %v2485_v42  ;;  %v5574_v10 = vsel %vm2083_vm10, 1.0, %v4396_v49 }
 0x1a1   : > { %v2346_v48 = vxor.u32 2147483648, %v2345_v29  ;;  %v2221_v2 = vshll.u32 %v5548_v0, 30  ;;  %v2487_v53 = vshll.u32 %v4390_v55, %v2484_v16  ;;  %v2497_v62 = vshrl.u32 %v4394_v1, %v2485_v42 }
 0x1a2   : > { %v2500_v56 = vshrl.u32 %v4395_v8, %v2485_v42  ;;  %v2490_v60 = vshll.u32 %v4391_v59, %v2484_v16  ;;  %v2493_v15 = vshll.u32 %v4392_v61, %v2484_v16  ;;  %v2496_v39 = vshll.u32 %v4393_v63, %v2484_v16 }
 0x1a3   : > { %v2347_v45 = vsel %vm2264_vm11, %v2346_v48, %v2345_v29  ;;  %v5564_v51 = vsub.s32 %v2218_v30, %v2221_v2  ;;  %v2489_v13 = vor.u32 %v2488_v58, %v2487_v53  ;;  %v2499_v4 = vshll.u32 %v4394_v1, %v2484_v16 }
 0x1a4   : > { %v2350_v5 = vsel %vm5506_vm14, %v5269_v46, %v2347_v45  ;;  %v2492_v36 = vor.u32 %v2491_v14, %v2490_v60  ;;  %v2495_v3 = vor.u32 %v2494_v7, %v2493_v15  ;;  %v2498_v52 = vor.u32 %v2497_v62, %v2496_v39 }
 0x1a5   : > { %4277 = vcosq.f32 %v2350_v5  ;;  %v2224_v26 = vsub.s32 0, %v5564_v51  ;;  %v2501_v35 = vor.u32 %v2500_v56, %v2499_v4  ;;  %v5576_v43 = vand.u32 3, %v2355_v6 }
 0x1a6   : > { %4279 = vsinq.f32 %v2350_v5  ;;  %v5578_v25 = vand.u32 3, %v2351_v34  ;;  %vm2502_vm2 = vcmp.lt.s32.totalorder %v5552_v9, 1  ;;  %vm2505_vm3 = vcmp.lt.s32.totalorder %v5552_v9, 4 }
 0x1a7   : > { %v4029_v12 = vmin.u32 %v2224_v26, %v5564_v51  ;;  %v5583_v47 = vshll.u32 %v2478_v21, 8  ;;  %v5586_v24 = vmul.f32 %v2128_v18, %v5260_v11  ;;  %vm2160_vm4 = vcmp.lt.s32.totalorder %v5348_v54, 0 }
 0x1a8   : > { %v2486_v49 = vshrl.u32 %v4390_v55, %v2485_v42  ;;  %v2507_v28 = vsel %vm2505_vm3, %v2495_v3, 2102212464  ;;  %v2510_v37 = vsel %vm2502_vm2, %v2489_v13, %v2492_v36  ;;  %vm2504_vm5 = vcmp.lt.s32.totalorder %v5552_v9, 3 }
 0x1a9   : > { %v2226_v41 = vclz %v4029_v12  ;;  %v2511_v50 = vsel %vm2505_vm3, %v2498_v52, 920167782  ;;  %v2514_v17 = vsel %vm2502_vm2, %v2492_v36, %v2495_v3  ;;  %v2515_v30 = vsel %vm2505_vm3, %v2501_v35, 1326507024 }
 0x1aa   : > { %vm3208_vm6 = vcmp.eq.s32.totalorder %v5578_v25, 2  ;;  %vm2503_vm7 = vcmp.lt.s32.totalorder %v5552_v9, 2  ;;  %v2512_v27 = vsel %vm2504_vm5, %v2495_v3, %v2511_v50  ;;  %v2516_v33 = vsel %vm2504_vm5, %v2498_v52, %v2515_v30 }
 0x1ab   : > { %v4030_v20 = vadd.s32 4294967294, %v2226_v41  ;;  %vm3205_vm8 = vcmp.eq.s32.totalorder %v5578_v25, 0  ;;  %v2506_v38 = vsel %vm2502_vm2, %v2486_v49, %v2489_v13  ;;  %v2508_v16 = vsel %vm2504_vm5, %v2492_v36, %v2507_v28 }
 0x1ac   : > { %v2513_v22 = vsel %vm2503_vm7, %v2510_v37, %v2512_v27  ;;  %v2517_v32 = vsel %vm2503_vm7, %v2514_v17, %v2516_v33  ;;  %vm2357_vm9 = vcmp.lt.s32.totalorder %v5576_v43, 2  ;;  %vm3204_vm11 = vcmp.lt.s32.totalorder %v5578_v25, 2 }
 0x1ad   : > { %vm4031_vm12 = vcmp.lt.s32.totalorder %v4030_v20, 0  ;;  %v5607_v34 = vmul.u32.u64.low %v5583_v47, %v2517_v32  ;;  %v5608_v23 = vmul.u32.u64.high %v5583_v47, %v2517_v32, %v5607_v34  ;;  %v2369_v29 = vand.u32 2139095040, %v5586_v24 }
 0x1ae   : > { %vm2354_vm13 = vweird.f32 %v5269_v46  ;;  %v2229_v42 = vsel %vm4031_vm12, 0, %v4030_v20  ;;  %v2244_v48 = vsub.s32 4, %v5548_v0  ;;  %v2214_v58 = vadd.s32 %v5492_v44, %v5498_v40 }
 0x1af   : > { %v5614_v6 = vmul.u32.u64.low %v5583_v47, %v2513_v22  ;;  %v5615_v21 = vmul.u32.u64.high %v5583_v47, %v2513_v22, %v5614_v6  ;;  %v2230_v2 = vsub.s32 32, %v2229_v42  ;;  %v2234_v14 = vsub.s32 4294967266, %v2229_v42 }
 0x1b0   : > { %v2370_v7 = vshrl.u32 %v2369_v29, 23  ;;  %vm2358_vm15 = vcmp.eq.s32.totalorder %v5576_v43, 0  ;;  %vm2361_vm14 = vcmp.eq.s32.totalorder %v5576_v43, 2  ;;  %v2509_v45 = vsel %vm2503_vm7, %v2506_v38, %v2508_v16 }
 0x1b1   : > { %v2366_v53 = vand.u32 2147483647, %v5586_v24  ;;  %v2231_v56 = vshll.u32 %v5564_v51, %v2229_v42  ;;  %v2232_v5 = vshrl.u32 %v2214_v58, %v2230_v2  ;;  %v2235_v60 = vadd.s32 127, %v2234_v14 }
 0x1b2   : > { %v4278_v62 = vpop.eup %4277  ;;  %vm2527_vm0 = vc.u32 %v5608_v23, %v5614_v6  ;;  %v2245_v15 = vsel %vm2160_vm4, %v2244_v48, %v5548_v0  ;;  %v2528_v13 = vadd.s32 1, %v5615_v21  ;;  %v4036_v9 = vadd.s32 4294967169, %v2370_v7 }
 0x1b3   : > { %v4280_v44 = vpop.eup %4279  ;;  %v2362_v40 = vxor.u32 2147483648, %v4278_v62  ;;  %v2233_v4 = vor.u32 %v2232_v5, %v2231_v56  ;;  %v2236_v26 = vshll.u32 %v2235_v60, 23  ;;  %v2525_v36 = vmul.u32 %v5583_v47, %v2509_v45 }
 0x1b4   : > { %v2359_v39 = vxor.u32 2147483648, %v4280_v44  ;;  %v2529_v18 = vsel %vm2527_vm0, %v2528_v13, %v5615_v21  ;;  %v2376_v52 = vadd.s32 1, %v4036_v9  ;;  %vm5654_vm10 = vcmp.le.f32.partialorder %v2158_v19, 0.7853982 }
 0x1b5   : > { %v2363_v51 = vsel %vm2361_vm14, %v2362_v40, %v4280_v44  ;;  %v3210_v3 = vsel %vm3208_vm6, %v2362_v40, %v4280_v44  ;;  %v2237_v12 = vor.u32 4788187, %v2236_v26  ;;  %v2240_v41 = vcvt.s32.f32 %v2233_v4  ;;  %v2140_v44 = vpop.permute.xlu1 %2139 }
 0x1b6   : > { %v2360_v0 = vsel %vm2358_vm15, %v4278_v62, %v2359_v39  ;;  %v3207_v35 = vsel %vm3205_vm8, %v4278_v62, %v2359_v39  ;;  %v2530_v28 = vadd.s32 %v2529_v18, %v2525_v36  ;;  %vm2377_vm1 = vcmp.gt.s32.totalorder %v2376_v52, 0 }
 0x1b7   : > { %v2364_v47 = vsel %vm2357_vm9, %v2360_v0, %v2363_v51  ;;  %v3211_v49 = vsel %vm3204_vm11, %v3207_v35, %v3210_v3  ;;  %v2238_v17 = vand.u32 2147483647, %v2237_v12  ;;  %v2378_v30 = vsel %vm2377_vm1, %v2376_v52, 0 }
 0x1b8   : > { %v2365_v37 = vsel %vm2354_vm13, nan, %v2364_v47  ;;  %v3212_v50 = vsel %vm2354_vm13, nan, %v3211_v49  ;;  %v2531_v27 = vadd.s32 536870912, %v2530_v28  ;;  %v2247_v38 = vsel %vm5654_vm10, 0, %v2245_v15 }
 0x1b9   : > { %v2991_v20 = vmul.f32 %v5574_v10, %v2365_v37  ;;  %v3832_v43 = vmul.f32 %v5574_v10, %v3212_v50  ;;  %v2241_v33 = vmul.f32 %v2240_v41, %v2238_v17  ;;  %v2373_v46 = vand.u32 8388607, %v2366_v53 }
 0x1ba   : > { %v2380_v16 = vand.u32 31, %v2378_v30  ;;  %v5664_v22 = vshrl.u32 %v2531_v27, 30  ;;  %v2251_v29 = vadd.s32 3, %v2247_v38  ;;  %v5666_v19 = vand.u32 3, %v2247_v38 }
 0x1bb   : > { %4061 = vst [vmem:[%s4853_s4 + $0x22] sm:$0x3] %v2991_v20  ;;  %4101 = vst [vmem:[%s4853_s4 + $0x32] sm:$0x3] %v3832_v43  ;;  %v2242_v32 = vxor.u32 2147483648, %v2241_v33  ;;  %v2374_v21 = vor.u32 8388608, %v2373_v46  ;;  %v5694_v18 = vmul.f32 %v2140_v44, %v5260_v11  ;;  %vm2250_vm14 = vweird.f32 %v5348_v54 }
 0x1bc   : > { %v2381_v34 = vsub.s32 32, %v2380_v16  ;;  %v2533_v42 = vshll.u32 %v5664_v22, 30  ;;  %v2383_v45 = vshll.u32 %v4390_v55, %v2380_v16  ;;  %v5680_v56 = vshrl.u32 %v2378_v30, 5 }
 0x1bd   : > { %v2243_v48 = vsel %vm2160_vm4, %v2242_v32, %v2241_v33  ;;  %v2386_v5 = vshll.u32 %v4391_v59, %v2380_v16  ;;  %v2389_v60 = vshll.u32 %v4392_v61, %v2380_v16  ;;  %v2392_v13 = vshll.u32 %v4393_v63, %v2380_v16 }
 0x1be   : > { %v2384_v58 = vshrl.u32 %v4391_v59, %v2381_v34  ;;  %v2387_v2 = vshrl.u32 %v4392_v61, %v2381_v34  ;;  %v2246_v14 = vsel %vm5654_vm10, %v5348_v54, %v2243_v48  ;;  %v5676_v7 = vsub.s32 %v2530_v28, %v2533_v42 }
 0x1bf   : > { %v2390_v62 = vshrl.u32 %v4393_v63, %v2381_v34  ;;  %4281 = vcosq.f32 %v2246_v14  ;;  %v2393_v39 = vshrl.u32 %v4394_v1, %v2381_v34  ;;  %v2395_v4 = vshll.u32 %v4394_v1, %v2380_v16 }
 0x1c0   : > { %4283 = vsinq.f32 %v2246_v14  ;;  %v2536_v40 = vsub.s32 0, %v5676_v7  ;;  %v2385_v15 = vor.u32 %v2384_v58, %v2383_v45  ;;  %v2388_v9 = vor.u32 %v2387_v2, %v2386_v5 }
 0x1c1   : > { %v2396_v26 = vshrl.u32 %v4395_v8, %v2381_v34  ;;  %v5689_v36 = vand.u32 3, %v2251_v29  ;;  %vm2472_vm2 = vcmp.lt.s32.totalorder %v5452_v31, 0  ;;  %v2391_v3 = vor.u32 %v2390_v62, %v2389_v60 }
 0x1c2   : > { %v4041_v51 = vmin.u32 %v2536_v40, %v5676_v7  ;;  %v2394_v52 = vor.u32 %v2393_v39, %v2392_v13  ;;  %vm2398_vm3 = vcmp.lt.s32.totalorder %v5680_v56, 1  ;;  %v5697_v35 = vshll.u32 %v2374_v21, 8 }
 0x1c3   : > { %v2397_v0 = vor.u32 %v2396_v26, %v2395_v4  ;;  %vm2399_vm4 = vcmp.lt.s32.totalorder %v5680_v56, 2  ;;  %vm2400_vm5 = vcmp.lt.s32.totalorder %v5680_v56, 3  ;;  %vm2401_vm6 = vcmp.lt.s32.totalorder %v5680_v56, 4 }
 0x1c4   : > { %v2538_v12 = vclz %v4041_v51  ;;  %vm5704_vm7 = vcmp.le.f32.partialorder %v2470_v57, 0.7853982  ;;  %v2556_v11 = vsub.s32 4, %v5664_v22  ;;  %v2382_v47 = vshrl.u32 %v4390_v55, %v2381_v34 }
 0x1c5   : > { %v2406_v49 = vsel %vm2398_vm3, %v2385_v15, %v2388_v9  ;;  %v2407_v28 = vsel %vm2401_vm6, %v2394_v52, 920167782  ;;  %vm3105_vm8 = vcmp.eq.s32.totalorder %v5666_v19, 2  ;;  %v2403_v50 = vsel %vm2401_vm6, %v2391_v3, 2102212464 }
 0x1c6   : > { %v4042_v37 = vadd.s32 4294967294, %v2538_v12  ;;  %v2408_v17 = vsel %vm2400_vm5, %v2391_v3, %v2407_v28  ;;  %v2410_v57 = vsel %vm2398_vm3, %v2388_v9, %v2391_v3  ;;  %vm2254_vm9 = vcmp.eq.s32.totalorder %v5689_v36, 0 }
 0x1c7   : > { %vm3102_vm11 = vcmp.eq.s32.totalorder %v5666_v19, 0  ;;  %v2402_v30 = vsel %vm2398_vm3, %v2382_v47, %v2385_v15  ;;  %v2409_v20 = vsel %vm2399_vm4, %v2406_v49, %v2408_v17  ;;  %v2411_v43 = vsel %vm2401_vm6, %v2397_v0, 1326507024 }
 0x1c8   : > { %v2681_v25 = vand.u32 2139095040, %v5694_v18  ;;  %vm2253_vm12 = vcmp.lt.s32.totalorder %v5689_v36, 2  ;;  %vm3101_vm13 = vcmp.lt.s32.totalorder %v5666_v19, 2  ;;  %vm4043_vm15 = vcmp.lt.s32.totalorder %v4042_v37, 0 }
 0x1c9   : > { %v2412_v27 = vsel %vm2400_vm5, %v2394_v52, %v2411_v43  ;;  %v5729_v33 = vmul.u32.u64.low %v5697_v35, %v2409_v20  ;;  %v5730_v38 = vmul.u32.u64.high %v5697_v35, %v2409_v20, %v5729_v33  ;;  %v2541_v46 = vsel %vm4043_vm15, 0, %v4042_v37 }
 0x1ca   : > { %v2404_v16 = vsel %vm2400_vm5, %v2388_v9, %v2403_v50  ;;  %v2413_v32 = vsel %vm2399_vm4, %v2410_v57, %v2412_v27  ;;  %v2682_v34 = vshrl.u32 %v2681_v25, 23  ;;  %vm2257_vm0 = vcmp.eq.s32.totalorder %v5689_v36, 2  ;;  %v2136_v25 = vpop.permute.xlu0 %2135 }
 0x1cb   : > { %v2526_v29 = vadd.s32 %v5614_v6, %v5608_v23  ;;  %v2542_v42 = vsub.s32 32, %v2541_v46  ;;  %v2546_v48 = vsub.s32 4294967266, %v2541_v46  ;;  %v2557_v21 = vsel %vm2472_vm2, %v2556_v11, %v5664_v22 }
 0x1cc   : > { %v5745_v58 = vmul.u32.u64.low %v5697_v35, %v2413_v32  ;;  %v5746_v2 = vmul.u32.u64.high %v5697_v35, %v2413_v32, %v5745_v58  ;;  %v4048_v14 = vadd.s32 4294967169, %v2682_v34  ;;  %v4282_v45 = vpop.eup %4281  ;;  %v2543_v62 = vshll.u32 %v5676_v7, %v2541_v46 }
 0x1cd   : > { %v2544_v5 = vshrl.u32 %v2526_v29, %v2542_v42  ;;  %v2547_v60 = vadd.s32 127, %v2546_v48  ;;  %v2405_v44 = vsel %vm2399_vm4, %v2402_v30, %v2404_v16  ;;  %v4284_v23 = vpop.eup %4283  ;;  %v2258_v6 = vxor.u32 2147483648, %v4282_v45  ;;  %v5786_v16 = vld [vmem:[%s5248_s8] sm:$0x3] }
 0x1ce   : > { %v2424_v40 = vadd.s32 1, %v5730_v38  ;;  %v2678_v15 = vand.u32 2147483647, %v5694_v18  ;;  %v2688_v22 = vadd.s32 1, %v4048_v14  ;;  %v2255_v13 = vxor.u32 2147483648, %v4284_v23 }
 0x1cf   : > { %v2545_v9 = vor.u32 %v2544_v5, %v2543_v62  ;;  %v2548_v39 = vshll.u32 %v2547_v60, 23  ;;  %v2559_v4 = vsel %vm5704_vm7, 0, %v2557_v21  ;;  %v2259_v7 = vsel %vm2257_vm0, %v2258_v6, %v4284_v23 }
 0x1d0   : > { %v3107_v56 = vsel %vm3105_vm8, %v2258_v6, %v4284_v23  ;;  %v2421_v26 = vmul.u32 %v5697_v35, %v2405_v44  ;;  %vm2423_vm1 = vc.u32 %v5746_v2, %v5729_v33  ;;  %v2256_v51 = vsel %vm2254_vm9, %v4282_v45, %v2255_v13 }
 0x1d1   : > { %v3104_v3 = vsel %vm3102_vm11, %v4282_v45, %v2255_v13  ;;  %v2549_v52 = vor.u32 4788187, %v2548_v39  ;;  %v2552_v0 = vcvt.s32.f32 %v2545_v9  ;;  %v2260_v12 = vsel %vm2253_vm12, %v2256_v51, %v2259_v7 }
 0x1d2   : > { %v3108_v11 = vsel %vm3101_vm13, %v3104_v3, %v3107_v56  ;;  %v2425_v35 = vsel %vm2423_vm1, %v2424_v40, %v5730_v38  ;;  %vm2689_vm10 = vcmp.gt.s32.totalorder %v2688_v22, 0  ;;  %v2261_v47 = vsel %vm2250_vm14, nan, %v2260_v12 }
 0x1d3   : > { %v3109_v49 = vsel %vm2250_vm14, nan, %v3108_v11  ;;  %v2550_v28 = vand.u32 2147483647, %v2549_v52  ;;  %v2426_v37 = vadd.s32 %v2425_v35, %v2421_v26  ;;  %v2990_v36 = vmul.f32 %v5574_v10, %v2261_v47 }
 0x1d4   : > { %v3831_v50 = vmul.f32 %v5574_v10, %v3109_v49  ;;  %v2563_v19 = vadd.s32 3, %v2559_v4  ;;  %v2690_v17 = vsel %vm2689_vm10, %v2688_v22, 0  ;;  %v2685_v20 = vand.u32 8388607, %v2678_v15 }
 0x1d5   : > { %v2553_v57 = vmul.f32 %v2552_v0, %v2550_v28  ;;  %v2427_v30 = vadd.s32 536870912, %v2426_v37  ;;  %v2692_v43 = vand.u32 31, %v2690_v17  ;;  %4060 = vst [vmem:[%s4853_s4 + $0x20] sm:$0x3] %v2990_v36  ;;  %v5783_v46 = vand.u32 3, %v2559_v4 }
 0x1d6   : > { %4100 = vst [vmem:[%s4853_s4 + $0x30] sm:$0x3] %v3831_v50  ;;  %v5789_v32 = vmul.f32 %v5786_v16, %v2136_v25  ;;  %v5793_v29 = vand.u32 3, %v2563_v19  ;;  %v2686_v48 = vor.u32 8388608, %v2685_v20  ;;  %v2691_v40 = vshrl.u32 %v2690_v17, 5 }
 0x1d7   : > { %v2554_v54 = vxor.u32 2147483648, %v2553_v57  ;;  %v5781_v27 = vshrl.u32 %v2427_v30, 30  ;;  %v2693_v38 = vsub.s32 32, %v2692_v43  ;;  %v2695_v5 = vshll.u32 %v4390_v55, %v2692_v43 }
 0x1d8   : > { %v2698_v44 = vshll.u32 %v4391_v59, %v2692_v43  ;;  %v2701_v23 = vshll.u32 %v4392_v61, %v2692_v43  ;;  %v2704_v41 = vshll.u32 %v4393_v63, %v2692_v43  ;;  %v2707_v13 = vshll.u32 %v4394_v1, %v2692_v43 }
 0x1d9   : > { %v2555_v34 = vsel %vm2472_vm2, %v2554_v54, %v2553_v57  ;;  %v2429_v42 = vshll.u32 %v5781_v27, 30  ;;  %v2696_v58 = vshrl.u32 %v4391_v59, %v2693_v38  ;;  %v2699_v14 = vshrl.u32 %v4392_v61, %v2693_v38 }
 0x1da   : > { %v2558_v21 = vsel %vm5704_vm7, %v5452_v31, %v2555_v34  ;;  %v2702_v45 = vshrl.u32 %v4393_v63, %v2693_v38  ;;  %v2705_v60 = vshrl.u32 %v4394_v1, %v2693_v38  ;;  %v2708_v7 = vshrl.u32 %v4395_v8, %v2693_v38 }
 0x1db   : > { %4285 = vcosq.f32 %v2558_v21  ;;  %v5802_v62 = vsub.s32 %v2426_v37, %v2429_v42  ;;  %v2697_v22 = vor.u32 %v2696_v58, %v2695_v5  ;;  %v2700_v9 = vor.u32 %v2699_v14, %v2698_v44 }
 0x1dc   : > { %4287 = vsinq.f32 %v2558_v21  ;;  %v2703_v39 = vor.u32 %v2702_v45, %v2701_v23  ;;  %v2706_v4 = vor.u32 %v2705_v60, %v2704_v41  ;;  %v2574_v26 = vand.u32 2147483647, %v5789_v32 }
 0x1dd   : > { %v2432_v6 = vsub.s32 0, %v5802_v62  ;;  %v2694_v51 = vshrl.u32 %v4390_v55, %v2693_v38  ;;  %v2709_v3 = vor.u32 %v2708_v7, %v2707_v13  ;;  %v5815_v52 = vshll.u32 %v2686_v48, 8 }
 0x1de   : > { %v2577_v0 = vand.u32 2139095040, %v5789_v32  ;;  %vm2368_vm2 = vcmp.lt.s32.totalorder %v5586_v24, 0  ;;  %vm2710_vm3 = vcmp.lt.s32.totalorder %v2691_v40, 1  ;;  %vm2711_vm4 = vcmp.lt.s32.totalorder %v2691_v40, 2 }
 0x1df   : > { %v4037_v56 = vmin.u32 %v2432_v6, %v5802_v62  ;;  %vm2713_vm5 = vcmp.lt.s32.totalorder %v2691_v40, 4  ;;  %vm2569_vm6 = vcmp.eq.s32.totalorder %v5793_v29, 2  ;;  %vm3414_vm7 = vcmp.eq.s32.totalorder %v5783_v46, 2 }
 0x1e0   : > { %vm2712_vm8 = vcmp.lt.s32.totalorder %v2691_v40, 3  ;;  %v2715_v11 = vsel %vm2713_vm5, %v2703_v39, 2102212464  ;;  %v2718_v35 = vsel %vm2710_vm3, %v2697_v22, %v2700_v9  ;;  %v2719_v47 = vsel %vm2713_vm5, %v2706_v4, 920167782 }
 0x1e1   : > { %v2434_v12 = vclz %v4037_v56  ;;  %vm2566_vm9 = vcmp.eq.s32.totalorder %v5793_v29, 0  ;;  %vm3411_vm11 = vcmp.eq.s32.totalorder %v5783_v46, 0  ;;  %v2714_v28 = vsel %vm2710_vm3, %v2694_v51, %v2697_v22 }
 0x1e2   : > { %v2720_v37 = vsel %vm2712_vm8, %v2703_v39, %v2719_v47  ;;  %v2722_v36 = vsel %vm2710_vm3, %v2700_v9, %v2703_v39  ;;  %vm2565_vm12 = vcmp.lt.s32.totalorder %v5793_v29, 2  ;;  %vm3410_vm13 = vcmp.lt.s32.totalorder %v5783_v46, 2 }
 0x1e3   : > { %v4038_v49 = vadd.s32 4294967294, %v2434_v12  ;;  %v2716_v50 = vsel %vm2712_vm8, %v2700_v9, %v2715_v11  ;;  %v2721_v19 = vsel %vm2711_vm4, %v2718_v35, %v2720_v37  ;;  %v2723_v17 = vsel %vm2713_vm5, %v2709_v3, 1326507024  ;;  %v2148_v37 = vpop.permute.xlu1 %2147 }
 0x1e4   : > { %v2578_v57 = vshrl.u32 %v2577_v0, 23  ;;  %vm2562_vm15 = vweird.f32 %v5452_v31  ;;  %v2724_v30 = vsel %vm2712_vm8, %v2706_v4, %v2723_v17  ;;  %v2452_v54 = vsub.s32 4, %v5781_v27 }
 0x1e5   : > { %vm4039_vm14 = vcmp.lt.s32.totalorder %v4038_v49, 0  ;;  %v5834_v20 = vmul.u32.u64.low %v5815_v52, %v2721_v19  ;;  %v5835_v43 = vmul.u32.u64.high %v5815_v52, %v2721_v19, %v5834_v20  ;;  %v2725_v38 = vsel %vm2711_vm4, %v2722_v36, %v2724_v30 }
 0x1e6   : > { %v2437_v25 = vsel %vm4039_vm14, 0, %v4038_v49  ;;  %v4044_v34 = vadd.s32 4294967169, %v2578_v57  ;;  %vm5842_vm0 = vcmp.le.f32.partialorder %v2366_v53, 0.7853982  ;;  %v2422_v48 = vadd.s32 %v5729_v33, %v5746_v2 }
 0x1e7   : > { %v2438_v21 = vsub.s32 32, %v2437_v25  ;;  %v2442_v58 = vsub.s32 4294967266, %v2437_v25  ;;  %v5850_v14 = vand.u32 8388607, %v2574_v26  ;;  %v2717_v5 = vsel %vm2711_vm4, %v2714_v28, %v2716_v50 }
 0x1e8   : > { %v4286_v45 = vpop.eup %4285  ;;  %v5854_v60 = vmul.u32.u64.low %v5815_v52, %v2725_v38  ;;  %v5855_v44 = vmul.u32.u64.high %v5815_v52, %v2725_v38, %v5854_v60  ;;  %v2584_v53 = vadd.s32 1, %v4044_v34  ;;  %v2439_v6 = vshll.u32 %v5802_v62, %v2437_v25 }
 0x1e9   : > { %v4288_v23 = vpop.eup %4287  ;;  %v2570_v41 = vxor.u32 2147483648, %v4286_v45  ;;  %v2440_v22 = vshrl.u32 %v2422_v48, %v2438_v21  ;;  %v2443_v33 = vadd.s32 127, %v2442_v58  ;;  %v2453_v13 = vsel %vm2368_vm2, %v2452_v54, %v5781_v27 }
 0x1ea   : > { %v2567_v2 = vxor.u32 2147483648, %v4288_v23  ;;  %v2736_v9 = vadd.s32 1, %v5835_v43  ;;  %vm2585_vm1 = vcmp.gt.s32.totalorder %v2584_v53, 0  ;;  %v2733_v51 = vmul.u32 %v5815_v52, %v2717_v5 }
 0x1eb   : > { %v2571_v40 = vsel %vm2569_vm6, %v2570_v41, %v4288_v23  ;;  %v3416_v39 = vsel %vm3414_vm7, %v2570_v41, %v4288_v23  ;;  %v2441_v4 = vor.u32 %v2440_v22, %v2439_v6  ;;  %v2444_v7 = vshll.u32 %v2443_v33, 23 }
 0x1ec   : > { %v2568_v62 = vsel %vm2566_vm9, %v4286_v45, %v2567_v2  ;;  %v3413_v56 = vsel %vm3411_vm11, %v4286_v45, %v2567_v2  ;;  %vm2735_vm10 = vc.u32 %v5855_v44, %v5834_v20  ;;  %v2586_v47 = vsel %vm2585_vm1, %v2584_v53, 0 }
 0x1ed   : > { %v2572_v27 = vsel %vm2565_vm12, %v2568_v62, %v2571_v40  ;;  %v3417_v3 = vsel %vm3410_vm13, %v3413_v56, %v3416_v39  ;;  %v2445_v0 = vor.u32 4788187, %v2444_v7  ;;  %v2448_v12 = vcvt.s32.f32 %v2441_v4 }
 0x1ee   : > { %v2573_v11 = vsel %vm2562_vm15, nan, %v2572_v27  ;;  %v3418_v35 = vsel %vm2562_vm15, nan, %v3417_v3  ;;  %v2737_v52 = vsel %vm2735_vm10, %v2736_v9, %v5835_v43  ;;  %v2455_v36 = vsel %vm5842_vm0, 0, %v2453_v13 }
 0x1ef   : > { %v2993_v29 = vmul.f32 %v5574_v10, %v2573_v11  ;;  %v3834_v49 = vmul.f32 %v5574_v10, %v3418_v35  ;;  %v2446_v28 = vand.u32 2147483647, %v2445_v0  ;;  %v2738_v46 = vadd.s32 %v2737_v52, %v2733_v51 }
 0x1f0   : > { %v2588_v50 = vand.u32 31, %v2586_v47  ;;  %v5890_v57 = vmul.f32 %v5786_v16, %v2148_v37  ;;  %v2459_v43 = vadd.s32 3, %v2455_v36  ;;  %v2582_v54 = vor.u32 8388608, %v5850_v14 }
 0x1f1   : > { %4063 = vst [vmem:[%s4853_s4 + $0x26] sm:$0x3] %v2993_v29  ;;  %4103 = vst [vmem:[%s4853_s4 + $0x36] sm:$0x3] %v3834_v49  ;;  %v2449_v19 = vmul.f32 %v2448_v12, %v2446_v28  ;;  %v2739_v31 = vadd.s32 536870912, %v2738_v46  ;;  %v5895_v38 = vshrl.u32 %v2586_v47, 5  ;;  %vm2458_vm11 = vweird.f32 %v5586_v24 }
 0x1f2   : > { %v2589_v17 = vsub.s32 32, %v2588_v50  ;;  %v2591_v34 = vshll.u32 %v4390_v55, %v2588_v50  ;;  %v2594_v53 = vshll.u32 %v4391_v59, %v2588_v50  ;;  %v2597_v23 = vshll.u32 %v4392_v61, %v2588_v50 }
 0x1f3   : > { %v2450_v30 = vxor.u32 2147483648, %v2449_v19  ;;  %v5892_v25 = vshrl.u32 %v2739_v31, 30  ;;  %v2600_v41 = vshll.u32 %v4393_v63, %v2588_v50  ;;  %v2603_v33 = vshll.u32 %v4394_v1, %v2588_v50 }
 0x1f4   : > { %v2592_v48 = vshrl.u32 %v4391_v59, %v2589_v17  ;;  %v2595_v21 = vshrl.u32 %v4392_v61, %v2589_v17  ;;  %v2598_v5 = vshrl.u32 %v4393_v63, %v2589_v17  ;;  %v2601_v60 = vshrl.u32 %v4394_v1, %v2589_v17 }
 0x1f5   : > { %v2451_v58 = vsel %vm2368_vm2, %v2450_v30, %v2449_v19  ;;  %v2741_v45 = vshll.u32 %v5892_v25, 30  ;;  %v2604_v9 = vshrl.u32 %v4395_v8, %v2589_v17  ;;  %v5916_v39 = vand.u32 3, %v2455_v36 }
 0x1f6   : > { %v2454_v14 = vsel %vm5842_vm0, %v5586_v24, %v2451_v58  ;;  %v2593_v22 = vor.u32 %v2592_v48, %v2591_v34  ;;  %v2596_v2 = vor.u32 %v2595_v21, %v2594_v53  ;;  %v2602_v13 = vor.u32 %v2601_v60, %v2600_v41 }
 0x1f7   : > { %4289 = vcosq.f32 %v2454_v14  ;;  %v5911_v6 = vsub.s32 %v2738_v46, %v2741_v45  ;;  %v2599_v40 = vor.u32 %v2598_v5, %v2597_v23  ;;  %v2605_v4 = vor.u32 %v2604_v9, %v2603_v33 }
 0x1f8   : > { %4291 = vsinq.f32 %v2454_v14  ;;  %v5918_v7 = vand.u32 3, %v2459_v43  ;;  %vm2606_vm2 = vcmp.lt.s32.totalorder %v5895_v38, 1  ;;  %vm2609_vm3 = vcmp.lt.s32.totalorder %v5895_v38, 4 }
 0x1f9   : > { %v2744_v42 = vsub.s32 0, %v5911_v6  ;;  %v2614_v56 = vsel %vm2606_vm2, %v2593_v22, %v2596_v2  ;;  %v2615_v51 = vsel %vm2609_vm3, %v2602_v13, 920167782  ;;  %v5925_v27 = vshll.u32 %v2582_v54, 8 }
 0x1fa   : > { %v2889_v3 = vand.u32 2139095040, %v5890_v57  ;;  %v2590_v12 = vshrl.u32 %v4390_v55, %v2589_v17  ;;  %vm2608_vm4 = vcmp.lt.s32.totalorder %v5895_v38, 3  ;;  %v2611_v11 = vsel %vm2609_vm3, %v2599_v40, 2102212464 }
 0x1fb   : > { %v4049_v62 = vmin.u32 %v2744_v42, %v5911_v6  ;;  %vm3311_vm5 = vcmp.eq.s32.totalorder %v5916_v39, 2  ;;  %vm2607_vm6 = vcmp.lt.s32.totalorder %v5895_v38, 2  ;;  %v2616_v35 = vsel %vm2608_vm4, %v2599_v40, %v2615_v51 }
 0x1fc   : > { %v2618_v52 = vsel %vm2606_vm2, %v2596_v2, %v2599_v40  ;;  %v2619_v47 = vsel %vm2609_vm3, %v2605_v4, 1326507024  ;;  %vm3308_vm7 = vcmp.eq.s32.totalorder %v5916_v39, 0  ;;  %v2610_v49 = vsel %vm2606_vm2, %v2590_v12, %v2593_v22 }
 0x1fd   : > { %v2746_v0 = vclz %v4049_v62  ;;  %v2617_v28 = vsel %vm2607_vm6, %v2614_v56, %v2616_v35  ;;  %v2620_v46 = vsel %vm2608_vm4, %v2602_v13, %v2619_v47  ;;  %vm3307_vm8 = vcmp.lt.s32.totalorder %v5916_v39, 2 }
 0x1fe   : > { %vm2680_vm9 = vcmp.lt.s32.totalorder %v5694_v18, 0  ;;  %v2612_v37 = vsel %vm2608_vm4, %v2596_v2, %v2611_v11  ;;  %v2621_v36 = vsel %vm2607_vm6, %v2618_v52, %v2620_v46  ;;  %v2890_v30 = vshrl.u32 %v2889_v3, 23 }
 0x1ff   : > { %v4050_v29 = vadd.s32 4294967294, %v2746_v0  ;;  %v5944_v50 = vmul.u32.u64.low %v5925_v27, %v2617_v28  ;;  %v5945_v19 = vmul.u32.u64.high %v5925_v27, %v2617_v28, %v5944_v50  ;;  %vm2461_vm13 = vcmp.lt.s32.totalorder %v5918_v7, 2  ;;  %v2144_v28 = vpop.permute.xlu0 %2143 }
 0x200   : > { %v5950_v31 = vmul.u32.u64.low %v5925_v27, %v2621_v36  ;;  %v5951_v17 = vmul.u32.u64.high %v5925_v27, %v2621_v36, %v5950_v31  ;;  %vm2462_vm15 = vcmp.eq.s32.totalorder %v5918_v7, 0  ;;  %v2734_v43 = vadd.s32 %v5834_v20, %v5855_v44 }
 0x201   : > { %vm4051_vm12 = vcmp.lt.s32.totalorder %v4050_v29, 0  ;;  %vm5959_vm14 = vcmp.le.f32.partialorder %v2678_v15, 0.7853982  ;;  %v2613_v58 = vsel %vm2607_vm6, %v2610_v49, %v2612_v37  ;;  %v4056_v45 = vadd.s32 4294967169, %v2890_v30 }
 0x202   : > { %v2749_v54 = vsel %vm4051_vm12, 0, %v4050_v29  ;;  %vm2465_vm0 = vcmp.eq.s32.totalorder %v5918_v7, 2  ;;  %v2764_v60 = vsub.s32 4, %v5892_v25  ;;  %v2632_v20 = vadd.s32 1, %v5945_v19 }
 0x203   : > { %v2750_v48 = vsub.s32 32, %v2749_v54  ;;  %v2754_v21 = vsub.s32 4294967266, %v2749_v54  ;;  %v2886_v44 = vand.u32 2147483647, %v5890_v57  ;;  %v2751_v53 = vshll.u32 %v5911_v6, %v2749_v54 }
 0x204   : > { %v4290_v5 = vpop.eup %4289  ;;  %v2629_v38 = vmul.u32 %v5925_v27, %v2613_v58  ;;  %vm2631_vm1 = vc.u32 %v5951_v17, %v5944_v50  ;;  %v2896_v33 = vadd.s32 1, %v4056_v45  ;;  %v2765_v27 = vsel %vm2680_vm9, %v2764_v60, %v5892_v25 }
 0x205   : > { %v4292_v14 = vpop.eup %4291  ;;  %v2466_v15 = vxor.u32 2147483648, %v4290_v5  ;;  %v2752_v23 = vshrl.u32 %v2734_v43, %v2750_v48  ;;  %v2755_v41 = vadd.s32 127, %v2754_v21  ;;  %v2633_v4 = vsel %vm2631_vm1, %v2632_v20, %v5945_v19 }
 0x206   : > { %v2463_v22 = vxor.u32 2147483648, %v4292_v14  ;;  %vm2897_vm10 = vcmp.gt.s32.totalorder %v2896_v33, 0  ;;  %v2634_v12 = vadd.s32 %v2633_v4, %v2629_v38  ;;  %v2767_v47 = vsel %vm5959_vm14, 0, %v2765_v27 }
 0x207   : > { %v2467_v2 = vsel %vm2465_vm0, %v2466_v15, %v4292_v14  ;;  %v3313_v13 = vsel %vm3311_vm5, %v2466_v15, %v4292_v14  ;;  %v2753_v9 = vor.u32 %v2752_v23, %v2751_v53  ;;  %v2756_v42 = vshll.u32 %v2755_v41, 23 }
 0x208   : > { %v2464_v40 = vsel %vm2462_vm15, %v4290_v5, %v2463_v22  ;;  %v3310_v6 = vsel %vm3308_vm7, %v4290_v5, %v2463_v22  ;;  %v2898_v11 = vsel %vm2897_vm10, %v2896_v33, 0  ;;  %v2635_v29 = vadd.s32 536870912, %v2634_v12 }
 0x209   : > { %v2468_v62 = vsel %vm2461_vm13, %v2464_v40, %v2467_v2  ;;  %v3314_v56 = vsel %vm3307_vm8, %v3310_v6, %v3313_v13  ;;  %v2757_v51 = vor.u32 4788187, %v2756_v42  ;;  %v2760_v52 = vcvt.s32.f32 %v2753_v9 }
 0x20a   : > { %v2469_v3 = vsel %vm2458_vm11, nan, %v2468_v62  ;;  %v3315_v0 = vsel %vm2458_vm11, nan, %v3314_v56  ;;  %v2893_v25 = vand.u32 8388607, %v2886_v44  ;;  %v2900_v49 = vand.u32 31, %v2898_v11 }
 0x20b   : > { %v2992_v7 = vmul.f32 %v5574_v10, %v2469_v3  ;;  %v3833_v39 = vmul.f32 %v5574_v10, %v3315_v0  ;;  %v2758_v35 = vand.u32 2147483647, %v2757_v51  ;;  %v5999_v46 = vshrl.u32 %v2635_v29, 30 }
 0x20c   : > { %v2901_v37 = vsub.s32 32, %v2900_v49  ;;  %v2771_v19 = vadd.s32 3, %v2767_v47  ;;  %v6001_v31 = vand.u32 3, %v2767_v47  ;;  %v2894_v43 = vor.u32 8388608, %v2893_v25 }
 0x20d   : > { %4062 = vst [vmem:[%s4853_s4 + $0x24] sm:$0x3] %v2992_v7  ;;  %4102 = vst [vmem:[%s4853_s4 + $0x34] sm:$0x3] %v3833_v39  ;;  %v2761_v24 = vmul.f32 %v2760_v52, %v2758_v35  ;;  %v2637_v30 = vshll.u32 %v5999_v46, 30  ;;  %v6006_v48 = vmul.f32 %v5786_v16, %v2144_v28  ;;  %v2903_v14 = vshll.u32 %v4390_v55, %v2900_v49 }
 0x20e   : > { %v2904_v54 = vshrl.u32 %v4391_v59, %v2901_v37  ;;  %v2907_v58 = vshrl.u32 %v4392_v61, %v2901_v37  ;;  %v2910_v45 = vshrl.u32 %v4393_v63, %v2901_v37  ;;  %v2913_v5 = vshrl.u32 %v4394_v1, %v2901_v37 }
 0x20f   : > { %v2762_v36 = vxor.u32 2147483648, %v2761_v24  ;;  %v6016_v20 = vsub.s32 %v2634_v12, %v2637_v30  ;;  %v2906_v16 = vshll.u32 %v4391_v59, %v2900_v49  ;;  %v2899_v15 = vshrl.u32 %v2898_v11, 5 }
 0x210   : > { %v2909_v53 = vshll.u32 %v4392_v61, %v2900_v49  ;;  %v2912_v23 = vshll.u32 %v4393_v63, %v2900_v49  ;;  %v2905_v22 = vor.u32 %v2904_v54, %v2903_v14  ;;  %v2915_v2 = vshll.u32 %v4394_v1, %v2900_v49 }
 0x211   : > { %v2763_v21 = vsel %vm2680_vm9, %v2762_v36, %v2761_v24  ;;  %v2640_v41 = vsub.s32 0, %v6016_v20  ;;  %v2908_v38 = vor.u32 %v2907_v58, %v2906_v16  ;;  %v2916_v13 = vshrl.u32 %v4395_v8, %v2901_v37 }
 0x212   : > { %v2766_v60 = vsel %vm5959_vm14, %v5694_v18, %v2763_v21  ;;  %v2911_v33 = vor.u32 %v2910_v45, %v2909_v53  ;;  %v2914_v34 = vor.u32 %v2913_v5, %v2912_v23  ;;  %v6025_v9 = vand.u32 3, %v2771_v19 }
 0x213   : > { %4293 = vcosq.f32 %v2766_v60  ;;  %v4045_v42 = vmin.u32 %v2640_v41, %v6016_v20  ;;  %v6028_v40 = vshll.u32 %v2894_v43, 8  ;;  %v2782_v6 = vand.u32 2147483647, %v6006_v48 }
 0x214   : > { %4295 = vsinq.f32 %v2766_v60  ;;  %v2917_v4 = vor.u32 %v2916_v13, %v2915_v2  ;;  %vm2918_vm2 = vcmp.lt.s32.totalorder %v2899_v15, 1  ;;  %vm2920_vm3 = vcmp.lt.s32.totalorder %v2899_v15, 3 }
 0x215   : > { %v2785_v62 = vand.u32 2139095040, %v6006_v48  ;;  %v2642_v56 = vclz %v4045_v42  ;;  %v2902_v51 = vshrl.u32 %v4390_v55, %v2901_v37  ;;  %vm2921_vm4 = vcmp.lt.s32.totalorder %v2899_v15, 4 }
 0x216   : > { %v2926_v27 = vsel %vm2918_vm2, %v2905_v22, %v2908_v38  ;;  %v2923_v3 = vsel %vm2921_vm4, %v2911_v33, 2102212464  ;;  %v2927_v0 = vsel %vm2921_vm4, %v2914_v34, 920167782  ;;  %v2930_v12 = vsel %vm2918_vm2, %v2908_v38, %v2911_v33 }
 0x217   : > { %v2931_v11 = vsel %vm2921_vm4, %v2917_v4, 1326507024  ;;  %vm3620_vm5 = vcmp.eq.s32.totalorder %v6001_v31, 2  ;;  %v4046_v7 = vadd.s32 4294967294, %v2642_v56  ;;  %vm2919_vm6 = vcmp.lt.s32.totalorder %v2899_v15, 2 }
 0x218   : > { %v2928_v39 = vsel %vm2920_vm3, %v2911_v33, %v2927_v0  ;;  %v2932_v35 = vsel %vm2920_vm3, %v2914_v34, %v2931_v11  ;;  %vm3617_vm7 = vcmp.eq.s32.totalorder %v6001_v31, 0  ;;  %vm2576_vm8 = vcmp.lt.s32.totalorder %v5789_v32, 0 }
 0x219   : > { %v2922_v52 = vsel %vm2918_vm2, %v2902_v51, %v2905_v22  ;;  %v2929_v47 = vsel %vm2919_vm6, %v2926_v27, %v2928_v39  ;;  %v2933_v29 = vsel %vm2919_vm6, %v2930_v12, %v2932_v35  ;;  %v2786_v25 = vshrl.u32 %v2785_v62, 23 }
 0x21a   : > { %vm2773_vm9 = vcmp.lt.s32.totalorder %v6025_v9, 2  ;;  %vm3616_vm11 = vcmp.lt.s32.totalorder %v6001_v31, 2  ;;  %vm4047_vm12 = vcmp.lt.s32.totalorder %v4046_v7, 0  ;;  %v2924_v49 = vsel %vm2920_vm3, %v2908_v38, %v2923_v3 }
 0x21b   : > { %v6047_v24 = vmul.u32.u64.low %v6028_v40, %v2933_v29  ;;  %v6048_v28 = vmul.u32.u64.high %v6028_v40, %v2933_v29, %v6047_v24  ;;  %vm2770_vm13 = vweird.f32 %v5694_v18  ;;  %v2645_v37 = vsel %vm4047_vm12, 0, %v4046_v7 }
 0x21c   : > { %v6052_v36 = vmul.u32.u64.low %v6028_v40, %v2929_v47  ;;  %v6053_v19 = vmul.u32.u64.high %v6028_v40, %v2929_v47, %v6052_v36  ;;  %v4052_v30 = vadd.s32 4294967169, %v2786_v25  ;;  %vm2774_vm15 = vcmp.eq.s32.totalorder %v6025_v9, 0 }
 0x21d   : > { %v2630_v43 = vadd.s32 %v5944_v50, %v5951_v17  ;;  %v2646_v54 = vsub.s32 32, %v2645_v37  ;;  %v2650_v21 = vsub.s32 4294967266, %v2645_v37  ;;  %vm2777_vm14 = vcmp.eq.s32.totalorder %v6025_v9, 2 }
 0x21e   : > { %v2660_v58 = vsub.s32 4, %v5999_v46  ;;  %v2925_v45 = vsel %vm2919_vm6, %v2922_v52, %v2924_v49  ;;  %v2792_v5 = vadd.s32 1, %v4052_v30  ;;  %v2647_v14 = vshll.u32 %v6016_v20, %v2645_v37 }
 0x21f   : > { %v2648_v16 = vshrl.u32 %v2630_v43, %v2646_v54  ;;  %v2651_v53 = vadd.s32 127, %v2650_v21  ;;  %vm2943_vm0 = vc.u32 %v6048_v28, %v6052_v36  ;;  %v2944_v50 = vadd.s32 1, %v6053_v19 }
 0x220   : > { %v4294_v60 = vpop.eup %4293  ;;  %v2789_v17 = vand.u32 8388607, %v2782_v6  ;;  %vm2793_vm1 = vcmp.gt.s32.totalorder %v2792_v5, 0  ;;  %v2941_v2 = vmul.u32 %v6028_v40, %v2925_v45  ;;  %v2661_v56 = vsel %vm2576_vm8, %v2660_v58, %v5999_v46 }
 0x221   : > { %v4296_v23 = vpop.eup %4295  ;;  %v2778_v41 = vxor.u32 2147483648, %v4294_v60  ;;  %v2649_v15 = vor.u32 %v2648_v16, %v2647_v14  ;;  %v2652_v38 = vshll.u32 %v2651_v53, 23  ;;  %v2794_v33 = vsel %vm2793_vm1, %v2792_v5, 0 }
 0x222   : > { %v2775_v22 = vxor.u32 2147483648, %v4296_v23  ;;  %v2945_v13 = vsel %vm2943_vm0, %v2944_v50, %v6053_v19  ;;  %v2796_v3 = vand.u32 31, %v2794_v33  ;;  %vm6093_vm10 = vcmp.le.f32.partialorder %v2574_v26, 0.7853982 }
 0x223   : > { %v2779_v20 = vsel %vm2777_vm14, %v2778_v41, %v4296_v23  ;;  %v3622_v34 = vsel %vm3620_vm5, %v2778_v41, %v4296_v23  ;;  %v2653_v62 = vor.u32 4788187, %v2652_v38  ;;  %v2946_v27 = vadd.s32 %v2945_v13, %v2941_v2 }
 0x224   : > { %v2776_v42 = vsel %vm2774_vm15, %v4294_v60, %v2775_v22  ;;  %v3619_v4 = vsel %vm3617_vm7, %v4294_v60, %v2775_v22  ;;  %v2656_v7 = vcvt.s32.f32 %v2649_v15  ;;  %v2797_v35 = vsub.s32 32, %v2796_v3 }
 0x225   : > { %v2780_v51 = vsel %vm2773_vm9, %v2776_v42, %v2779_v20  ;;  %v3623_v40 = vsel %vm3616_vm11, %v3619_v4, %v3622_v34  ;;  %v2654_v11 = vand.u32 2147483647, %v2653_v62  ;;  %v2947_v9 = vadd.s32 536870912, %v2946_v27 }
 0x226   : > { %v2781_v0 = vsel %vm2770_vm13, nan, %v2780_v51  ;;  %v3624_v12 = vsel %vm2770_vm13, nan, %v3623_v40  ;;  %v2663_v18 = vsel %vm6093_vm10, 0, %v2661_v56  ;;  %v2800_v29 = vshrl.u32 %v4391_v59, %v2797_v35 }
 0x227   : > { %v2995_v39 = vmul.f32 %v5574_v10, %v2781_v0  ;;  %v3836_v46 = vmul.f32 %v5574_v10, %v3624_v12  ;;  %v2657_v52 = vmul.f32 %v2656_v7, %v2654_v11  ;;  %v6101_v47 = vshrl.u32 %v2947_v9, 30 }
 0x228   : > { %v2803_v25 = vshrl.u32 %v4392_v61, %v2797_v35  ;;  %v2799_v24 = vshll.u32 %v4390_v55, %v2796_v3  ;;  %v2806_v26 = vshrl.u32 %v4393_v63, %v2797_v35  ;;  %v2809_v37 = vshrl.u32 %v4394_v1, %v2797_v35 }
 0x229   : > { %4065 = vst [vmem:[%s4853_s4 + $0x2a] sm:$0x3] %v2995_v39  ;;  %4105 = vst [vmem:[%s4853_s4 + $0x3a] sm:$0x3] %v3836_v46  ;;  %v2658_v49 = vxor.u32 2147483648, %v2657_v52  ;;  %v2949_v19 = vshll.u32 %v6101_v47, 30  ;;  %v2802_v54 = vshll.u32 %v4391_v59, %v2796_v3  ;;  %v2805_v45 = vshll.u32 %v4392_v61, %v2796_v3 }
 0x22a   : > { %v2790_v30 = vor.u32 8388608, %v2789_v17  ;;  %v2795_v43 = vshrl.u32 %v2794_v33, 5  ;;  %v2801_v58 = vor.u32 %v2800_v29, %v2799_v24  ;;  %v2808_v5 = vshll.u32 %v4393_v63, %v2796_v3 }
 0x22b   : > { %v2659_v21 = vsel %vm2576_vm8, %v2658_v49, %v2657_v52  ;;  %v2950_v14 = vsub.s32 %v2946_v27, %v2949_v19  ;;  %v2804_v16 = vor.u32 %v2803_v25, %v2802_v54  ;;  %v2812_v53 = vshrl.u32 %v4395_v8, %v2797_v35 }
 0x22c   : > { %v2662_v60 = vsel %vm6093_vm10, %v5789_v32, %v2659_v21  ;;  %v2807_v23 = vor.u32 %v2806_v26, %v2805_v45  ;;  %v2810_v41 = vor.u32 %v2809_v37, %v2808_v5  ;;  %v2811_v59 = vshll.u32 %v4394_v1, %v2796_v3 }
 0x22d   : > { %4297 = vcosq.f32 %v2662_v60  ;;  %v2952_v50 = vsub.s32 0, %v2950_v14  ;;  %v2667_v17 = vadd.s32 3, %v2663_v18  ;;  %vm2814_vm2 = vcmp.lt.s32.totalorder %v2795_v43, 1 }
 0x22e   : > { %4299 = vsinq.f32 %v2662_v60  ;;  %v2813_v22 = vor.u32 %v2812_v53, %v2811_v59  ;;  %vm2817_vm3 = vcmp.lt.s32.totalorder %v2795_v43, 4  ;;  %v2830_v63 = vshll.u32 %v2790_v30, 8 }
 0x22f   : > { %v4057_v61 = vmin.u32 %v2952_v50, %v2950_v14  ;;  %v2798_v15 = vshrl.u32 %v4390_v55, %v2797_v35  ;;  %v2819_v38 = vsel %vm2817_vm3, %v2807_v23, 2102212464  ;;  %v2822_v33 = vsel %vm2814_vm2, %v2801_v58, %v2804_v16 }
 0x230   : > { %v2823_v20 = vsel %vm2817_vm3, %v2810_v41, 920167782  ;;  %vm2815_vm4 = vcmp.lt.s32.totalorder %v2795_v43, 2  ;;  %vm2816_vm5 = vcmp.lt.s32.totalorder %v2795_v43, 3  ;;  %v2826_v8 = vsel %vm2814_vm2, %v2804_v16, %v2807_v23 }
 0x231   : > { %v2954_v34 = vclz %v4057_v61  ;;  %v2818_v2 = vsel %vm2814_vm2, %v2798_v15, %v2801_v58  ;;  %v2820_v13 = vsel %vm2816_vm5, %v2804_v16, %v2819_v38  ;;  %v2824_v1 = vsel %vm2816_vm5, %v2807_v23, %v2823_v20 }
 0x232   : > { %v2827_v42 = vsel %vm2817_vm3, %v2813_v22, 1326507024  ;;  %v2825_v62 = vsel %vm2815_vm4, %v2822_v33, %v2824_v1  ;;  %v3512_v51 = vand.u32 3, %v2663_v18  ;;  %v2821_v55 = vsel %vm2815_vm4, %v2818_v2, %v2820_v13 }
 0x233   : > { %v4058_v4 = vadd.s32 4294967294, %v2954_v34  ;;  %v2828_v56 = vsel %vm2816_vm5, %v2810_v41, %v2827_v42  ;;  %v6120_v27 = vmul.u32.u64.low %v2830_v63, %v2825_v62  ;;  %v6121_v3 = vmul.u32.u64.high %v2830_v63, %v2825_v62, %v6120_v27 }
 0x234   : > { %v2829_v40 = vsel %vm2815_vm4, %v2826_v8, %v2828_v56  ;;  %v2668_v11 = vand.u32 3, %v2667_v17  ;;  %v2942_v39 = vadd.s32 %v6052_v36, %v6048_v28  ;;  %vm3513_vm7 = vcmp.lt.s32.totalorder %v3512_v51, 2 }
 0x235   : > { %vm4059_vm6 = vcmp.lt.s32.totalorder %v4058_v4, 0  ;;  %v6124_v0 = vmul.u32.u64.low %v2830_v63, %v2829_v40  ;;  %v6125_v12 = vmul.u32.u64.high %v2830_v63, %v2829_v40, %v6124_v0  ;;  %v2837_v35 = vmul.u32 %v2830_v63, %v2821_v55 }
 0x236   : > { %v2957_v7 = vsel %vm4059_vm6, 0, %v4058_v4  ;;  %v2840_v31 = vadd.s32 1, %v6121_v3  ;;  %vm2673_vm9 = vcmp.eq.s32.totalorder %v2668_v11, 2  ;;  %vm3517_vm11 = vcmp.eq.s32.totalorder %v3512_v51, 2 }
 0x237   : > { %v2958_v46 = vsub.s32 32, %v2957_v7  ;;  %v2962_v9 = vsub.s32 4294967266, %v2957_v7  ;;  %v2959_v18 = vshll.u32 %v2950_v14, %v2957_v7  ;;  %vm2839_vm8 = vc.u32 %v6125_v12, %v6120_v27 }
 0x238   : > { %v2841_v26 = vsel %vm2839_vm8, %v2840_v31, %v6121_v3  ;;  %vm2670_vm12 = vcmp.eq.s32.totalorder %v2668_v11, 0  ;;  %vm3514_vm13 = vcmp.eq.s32.totalorder %v3512_v51, 0  ;;  %vm2669_vm15 = vcmp.lt.s32.totalorder %v2668_v11, 2 }
 0x239   : > { %v2960_v29 = vshrl.u32 %v2942_v39, %v2958_v46  ;;  %v2963_v25 = vadd.s32 127, %v2962_v9  ;;  %v2842_v19 = vadd.s32 %v2841_v26, %v2837_v35  ;;  %vm2666_vm14 = vweird.f32 %v5789_v32 }
 0x23a   : > { %v4298_v52 = vpop.eup %4297  ;;  %vm2888_vm0 = vcmp.lt.s32.totalorder %v5890_v57, 0  ;;  %v2972_v61 = vsub.s32 4, %v6101_v47  ;;  %vm2887_vm1 = vcmp.le.f32.partialorder %v2886_v44, 0.7853982  ;;  %v2838_v4 = vadd.s32 %v6120_v27, %v6125_v12 }
 0x23b   : > { %v4300_v49 = vpop.eup %4299  ;;  %v2674_v24 = vxor.u32 2147483648, %v4298_v52  ;;  %v2961_v36 = vor.u32 %v2960_v29, %v2959_v18  ;;  %v2964_v37 = vshll.u32 %v2963_v25, 23  ;;  %v2843_v60 = vadd.s32 536870912, %v2842_v19 }
 0x23c   : > { %v2671_v28 = vxor.u32 2147483648, %v4300_v49  ;;  %v2973_v20 = vsel %vm2888_vm0, %v2972_v61, %v6101_v47  ;;  %vm2978_vm8 = vweird.f32 %v5890_v57 }
 0x23d   : > { %v2675_v30 = vsel %vm2673_vm9, %v2674_v24, %v4300_v49  ;;  %v3519_v43 = vsel %vm3517_vm11, %v2674_v24, %v4300_v49  ;;  %v2965_v58 = vor.u32 4788187, %v2964_v37  ;;  %v2968_v23 = vcvt.s32.f32 %v2961_v36 }
 0x23e   : > { %v2672_v54 = vsel %vm2670_vm12, %v4298_v52, %v2671_v28  ;;  %v3516_v21 = vsel %vm3514_vm13, %v4298_v52, %v2671_v28  ;;  %v6137_v50 = vshrl.u32 %v2843_v60, 30  ;;  %v2975_v2 = vsel %vm2887_vm1, 0, %v2973_v20 }
 0x23f   : > { %v2676_v45 = vsel %vm2669_vm15, %v2672_v54, %v2675_v30  ;;  %v3520_v5 = vsel %vm3513_vm7, %v3516_v21, %v3519_v43  ;;  %v2966_v53 = vand.u32 2147483647, %v2965_v58  ;;  %v2979_v1 = vadd.s32 3, %v2975_v2 }
 0x240   : > { %v2677_v14 = vsel %vm2666_vm14, nan, %v2676_v45  ;;  %v3521_v16 = vsel %vm2666_vm14, nan, %v3520_v5  ;;  %v2845_v22 = vshll.u32 %v6137_v50, 30  ;;  %v3821_v56 = vand.u32 3, %v2975_v2 }
 0x241   : > { %v2994_v41 = vmul.f32 %v5574_v10, %v2677_v14  ;;  %v3835_v59 = vmul.f32 %v5574_v10, %v3521_v16  ;;  %v2969_v17 = vmul.f32 %v2968_v23, %v2966_v53  ;;  %v2980_v51 = vand.u32 3, %v2979_v1 }
 0x242   : > { %v2846_v63 = vsub.s32 %v2842_v19, %v2845_v22  ;;  %vm3822_vm2 = vcmp.lt.s32.totalorder %v3821_v56, 2  ;;  %vm3823_vm3 = vcmp.eq.s32.totalorder %v3821_v56, 0  ;;  %vm3826_vm5 = vcmp.eq.s32.totalorder %v3821_v56, 2 }
 0x243   : > { %4064 = vst [vmem:[%s4853_s4 + $0x28] sm:$0x3] %v2994_v41  ;;  %4104 = vst [vmem:[%s4853_s4 + $0x38] sm:$0x3] %v3835_v59  ;;  %v2970_v32 = vxor.u32 2147483648, %v2969_v17  ;;  %vm2985_vm4 = vcmp.eq.s32.totalorder %v2980_v51, 2 }
 0x244   : > { %v2848_v33 = vsub.s32 0, %v2846_v63  ;;  %vm2981_vm6 = vcmp.lt.s32.totalorder %v2980_v51, 2  ;;  %vm2982_vm7 = vcmp.eq.s32.totalorder %v2980_v51, 0  ;;  %vm2784_vm9 = vcmp.lt.s32.totalorder %v6006_v48, 0 }
 0x245   : > { %v2971_v15 = vsel %vm2888_vm0, %v2970_v32, %v2969_v17  ;;  %v2868_v19 = vsub.s32 4, %v6137_v50  ;;  %vm2783_vm11 = vcmp.le.f32.partialorder %v2782_v6, 0.7853982 }
 0x246   : > { %v2974_v38 = vsel %vm2887_vm1, %v5890_v57, %v2971_v15  ;;  %v4053_v34 = vmin.u32 %v2848_v33, %v2846_v63 }
 0x247   : > { %4301 = vcosq.f32 %v2974_v38  ;;  %v2869_v43 = vsel %vm2784_vm9, %v2868_v19, %v6137_v50 }
 0x248   : > { %4303 = vsinq.f32 %v2974_v38  ;;  %v2850_v8 = vclz %v4053_v34  ;;  %v2871_v54 = vsel %vm2783_vm11, 0, %v2869_v43 }
 0x249   : > { %v2875_v21 = vadd.s32 3, %v2871_v54  ;;  %v3718_v45 = vand.u32 3, %v2871_v54 }
 0x24a   : > { %v4054_v13 = vadd.s32 4294967294, %v2850_v8 }
 0x24b   : > { %v2876_v58 = vand.u32 3, %v2875_v21  ;;  %vm3723_vm13 = vcmp.eq.s32.totalorder %v3718_v45, 2  ;;  %vm3720_vm14 = vcmp.eq.s32.totalorder %v3718_v45, 0  ;;  %vm3719_vm1 = vcmp.lt.s32.totalorder %v3718_v45, 2 }
 0x24c   : > { %vm4055_vm10 = vcmp.lt.s32.totalorder %v4054_v13, 0 }
 0x24d   : > { %v2853_v42 = vsel %vm4055_vm10, 0, %v4054_v13  ;;  %vm2881_vm12 = vcmp.eq.s32.totalorder %v2876_v58, 2  ;;  %vm2878_vm15 = vcmp.eq.s32.totalorder %v2876_v58, 0  ;;  %vm2877_vm0 = vcmp.lt.s32.totalorder %v2876_v58, 2 }
 0x24e   : > { %v2854_v62 = vsub.s32 32, %v2853_v42  ;;  %v2858_v44 = vsub.s32 4294967266, %v2853_v42  ;;  %v2855_v40 = vshll.u32 %v2846_v63, %v2853_v42  ;;  %vm2874_vm10 = vweird.f32 %v6006_v48 }
 0x250   : > { %v2856_v3 = vshrl.u32 %v2838_v4, %v2854_v62  ;;  %v2859_v55 = vadd.s32 127, %v2858_v44 }
 0x252   : > { %v2857_v47 = vor.u32 %v2856_v3, %v2855_v40  ;;  %v2860_v11 = vshll.u32 %v2859_v55, 23 }
 0x254   : > { %v4302_v0 = vpop.eup %4301  ;;  %v2861_v9 = vor.u32 4788187, %v2860_v11  ;;  %v2864_v18 = vcvt.s32.f32 %v2857_v47 }
 0x255   : > { %v4304_v7 = vpop.eup %4303  ;;  %v2986_v39 = vxor.u32 2147483648, %v4302_v0 }
 0x256   : > { %v2983_v46 = vxor.u32 2147483648, %v4304_v7  ;;  %v2862_v52 = vand.u32 2147483647, %v2861_v9 }
 0x257   : > { %v2987_v27 = vsel %vm2985_vm4, %v2986_v39, %v4304_v7  ;;  %v3828_v12 = vsel %vm3826_vm5, %v2986_v39, %v4304_v7 }
 0x258   : > { %v2984_v35 = vsel %vm2982_vm7, %v4302_v0, %v2983_v46  ;;  %v3825_v31 = vsel %vm3823_vm3, %v4302_v0, %v2983_v46  ;;  %v2865_v26 = vmul.f32 %v2864_v18, %v2862_v52 }
 0x259   : > { %v2988_v29 = vsel %vm2981_vm6, %v2984_v35, %v2987_v27  ;;  %v3829_v25 = vsel %vm3822_vm2, %v3825_v31, %v3828_v12 }
 0x25a   : > { %v2989_v49 = vsel %vm2978_vm8, nan, %v2988_v29  ;;  %v3830_v24 = vsel %vm2978_vm8, nan, %v3829_v25  ;;  %v2866_v37 = vxor.u32 2147483648, %v2865_v26 }
 0x25b   : > { %v2997_v28 = vmul.f32 %v5574_v10, %v2989_v49  ;;  %v3838_v36 = vmul.f32 %v5574_v10, %v3830_v24 }
 0x25c   : > { %v2867_v57 = vsel %vm2784_vm9, %v2866_v37, %v2865_v26 }
 0x25d   : > { %4067 = vst [vmem:[%s4853_s4 + $0x2e] sm:$0x3] %v2997_v28  ;;  %4107 = vst [vmem:[%s4853_s4 + $0x3e] sm:$0x3] %v3838_v36  ;;  %v2870_v30 = vsel %vm2783_vm11, %v6006_v48, %v2867_v57 }
 0x25e   : > { %4305 = vcosq.f32 %v2870_v30 }
 0x25f   : > { %4307 = vsinq.f32 %v2870_v30 }
 0x26b   : > { %v4306_v5 = vpop.eup %4305 }
 0x26c   : > { %v4308_v60 = vpop.eup %4307  ;;  %v2882_v14 = vxor.u32 2147483648, %v4306_v5 }
 0x26d   : > { %v2879_v16 = vxor.u32 2147483648, %v4308_v60 }
 0x26e   : > { %v2883_v6 = vsel %vm2881_vm12, %v2882_v14, %v4308_v60  ;;  %v3725_v53 = vsel %vm3723_vm13, %v2882_v14, %v4308_v60 }
 0x26f   : > { %v2880_v23 = vsel %vm2878_vm15, %v4306_v5, %v2879_v16  ;;  %v3722_v41 = vsel %vm3720_vm14, %v4306_v5, %v2879_v16 }
 0x270   : > { %v2884_v59 = vsel %vm2877_vm0, %v2880_v23, %v2883_v6  ;;  %v3726_v50 = vsel %vm3719_vm1, %v3722_v41, %v3725_v53 }
 0x271   : > { %v2885_v17 = vsel %vm2874_vm10, nan, %v2884_v59  ;;  %v3727_v22 = vsel %vm2874_vm10, nan, %v3726_v50 }
 0x272   : > { %v2996_v32 = vmul.f32 %v5574_v10, %v2885_v17  ;;  %v3837_v61 = vmul.f32 %v5574_v10, %v3727_v22 }
 0x274   : > { %4066 = vst [vmem:[%s4853_s4 + $0x2c] sm:$0x3] %v2996_v32  ;;  %4106 = vst [vmem:[%s4853_s4 + $0x3c] sm:$0x3] %v3837_v61 }
 0x275   : > { %4324 = shalt.err (!%p4321_p5)
}
 0x276   : > { %s4325_s28 = scalar_lea.hbm %s6168_s19, 1024  ;;  %s4329_s4 = scalar_lea.hbm %s6226_s3, 2048 }
 0x277   : > { %p4326_p6 = scmp.ne.s32.totalorder %s6168_s19, %s4325_s28  ;;  %p4330_p10 = scmp.lt.s32.totalorder %s6168_s19, %s6226_s3 }
 0x278   : > { %p4331_p11 = scmp.lt.s32.totalorder %s4329_s4, %s4325_s28 }
 0x279   : > { %p4327_p7 = pnand %p4326_p6, %p4460_p4 }
 0x27a   : > { %p4332_p12 = por %p4331_p11, %p4330_p10 }
 0x27b   : > { %p4328_p9 = pneg %p4327_p7 }
 0x27d   : > { %p4333_p13 = pnand %p4332_p12, %p4328_p9 }
 0x27f   : > { %4336 = shalt.err (!%p4333_p13)
}
 0x280   : > { %s4398_s7 = smov 32   ;;  %s4399_s8 = smov 2  }
 0x281   : > { %4178 = dma.vmem_to_hbm [thread:$0]  (%p4460_p4), %s6170_s10, 1024, %s6168_s19, %s6178_s15, %s4398_s7, %s4398_s7, %s4399_s8  }
 0x282 PF: > { %p4184_p0 = scmp.ge.s32.totalorder %s4387_s17, 2  ;;  %s3878_s9 = sand.u32 1, %s4367_s12  }
 0x283   : > { %s3879_s11 = scalar_lea.sflag [#allocation3], %s3878_s9 }
 0x284   : > { %p4181_p1 = pnand %p4184_p0, %p4467_p8 }
 0x286   : > { %p4182_p2 = pneg %p4181_p1 }
 0x288   : > { %4362 = dma.done.wait (%p4182_p2), %s3879_s11, 1024  }
 0x289   : > { %4364 = vsyncadd (%p4182_p2), %s3879_s11, 4294966272  ;;  %s16_s17 = sadd.s32 1, %s4387_s17   ;;  %s6257_s12 = smov %s4371_s13 }
 0x28a   : > { %p13_p3 = scmp.ge.s32.totalorder %s16_s17, 4   ;;  %s6258_s13 = smov %s4375_s14 }
 0x28b   : > { %s6259_s14 = smov %s4473_s25  ;;  %s6260_s15 = smov %s4383_s16 }
 0x28c   : > { %s6261_s16 = smov %s6263_s20  ;;  %15 = sbr.rel (!%p13_p3) target bundleno = 4 (0x4), region = 73 }
 0x291   :  { %3884 = vsyncpa [#allocation3], 1 }
 0x292   :  { %3886 = vsyncpa [#allocation3 + $0x1], 1 }

</bundles_post_ra>
